<compile_context>
chip_gen: v7x
topology: tpu7x:2x2x1
jax: 0.10.0
libtpu: 0.0.40
codegen_flags: <defaults>
</compile_context>

<pallas_src>
import math
import functools

import jax
import jax.numpy as jnp
from jax.experimental import pallas as pl
from jax.experimental.pallas import tpu as pltpu


def _layernorm(x, gamma, beta, eps=1e-5):
    mu = jnp.mean(x, axis=-1, keepdims=True)
    xc = x - mu
    var = jnp.mean(xc * xc, axis=-1, keepdims=True)
    return xc * jax.lax.rsqrt(var + eps) * gamma + beta


# ---------------------------------------------------------------------------
# Fused kernel: embed (+pos) -> L x transformer encoder layer -> projection
# ---------------------------------------------------------------------------
def fused_encoder_kernel(actions_ref, key_bias_ref,
                         emb_w_ref, emb_b_ref, pos_ref,
                         wqkv_ref, bqkv_ref, wo_ref, bo_ref,
                         g1_ref, b1_ref, g2_ref, b2_ref,
                         w1_ref, bf1_ref, w2_ref, bf2_ref,
                         proj_w_ref, proj_b_ref,
                         out_ref, x_scr, *, n_heads, ff_chunk):
    l = pl.program_id(0)
    B, T, A = actions_ref.shape
    H = emb_w_ref.shape[1]
    Dp = proj_w_ref.shape[1]
    F = w1_ref.shape[2]
    BT = B * T
    hd = H // n_heads

    # ---- embedding + positional encoding (first grid step only) ----
    @pl.when(l == 0)
    def _():
        a = actions_ref[...].reshape(BT, A)                          # tiny matmul, keep f32
        e = jnp.dot(a, emb_w_ref[...],
                    preferred_element_type=jnp.float32) + emb_b_ref[...]
        e = e.reshape(B, T, H) + pos_ref[...]                        # broadcast pos over batch
        x_scr[...] = e.reshape(BT, H)

    x = x_scr[...]                                                   # (BT, H) f32, VMEM-resident

    # ---- self-attention sublayer: x = x + Wo @ MHA(LN1(x)) ----
    # TODO(synk): nn.Dropout is stochastic; treated as identity (eval-mode semantics).
    xn = _layernorm(x, g1_ref[0], b1_ref[0])
    # Fused QKV projection: ONE (BT,H)x(H,3H) matmul; 1/sqrt(hd) already folded into the
    # Q-block of the weight at init.  Cast to bf16 exactly once.
    qkv = jnp.dot(xn.astype(jnp.bfloat16), wqkv_ref[0],
                  preferred_element_type=jnp.float32) + bqkv_ref[0]
    qkv = qkv.astype(jnp.bfloat16).reshape(B, T, 3 * H)

    kb = key_bias_ref[...][:, None, :]                               # (B,1,T), hoisted out of loop
    wo = wo_ref[0]                                                   # (H, H) bf16
    attn = jnp.zeros((BT, H), jnp.float32)
    for h in range(n_heads):                                         # static unroll over heads
        qs = slice(h * hd, (h + 1) * hd)
        ks = slice(H + h * hd, H + (h + 1) * hd)
        vs = slice(2 * H + h * hd, 2 * H + (h + 1) * hd)
        s = jnp.einsum('bqd,bkd->bqk', qkv[:, :, qs], qkv[:, :, ks],
                       preferred_element_type=jnp.float32) + kb      # already scaled
        m = jnp.max(s, axis=-1, keepdims=True)                       # softmax in f32
        p = jnp.exp(s - m)
        p = p * pl.reciprocal(jnp.sum(p, axis=-1, keepdims=True), approx=True)
        o_h = jnp.einsum('bqk,bkd->bqd', p.astype(jnp.bfloat16), qkv[:, :, vs],
                         preferred_element_type=jnp.float32)         # (B, T, hd)
        # fold this head straight through its slice of the output projection (no concat)
        attn = attn + jnp.dot(o_h.reshape(BT, hd).astype(jnp.bfloat16),
                              wo[qs, :], preferred_element_type=jnp.float32)
    x = x + attn + bo_ref[0]

    # ---- feed-forward sublayer: x = x + W2 @ relu(W1 @ LN2(x)), chunked over ff ----
    xn2 = _layernorm(x, g2_ref[0], b2_ref[0]).astype(jnp.bfloat16)
    ffn = jnp.zeros((BT, H), jnp.float32)
    for c in range(0, F, ff_chunk):                                  # (BT, ff) never materializes
        h1 = jnp.dot(xn2, w1_ref[0, :, c:c + ff_chunk],
                     preferred_element_type=jnp.float32) + bf1_ref[0, :, c:c + ff_chunk]
        h1 = jnp.maximum(h1, 0.0)                                    # ReLU (PyTorch default)
        ffn = ffn + jnp.dot(h1.astype(jnp.bfloat16), w2_ref[0, c:c + ff_chunk, :],
                            preferred_element_type=jnp.float32)
    x = x + ffn + bf2_ref[0]
    x_scr[...] = x

    # ---- final projection (lane-dense, padded to 128 cols), last grid step only ----
    @pl.when(l == pl.num_programs(0) - 1)
    def _():
        y = jnp.dot(x.astype(jnp.bfloat16), proj_w_ref[...],
                    preferred_element_type=jnp.float32) + proj_b_ref[...]
        out_ref[...] = y.reshape(B, T, Dp)


# ---------------------------------------------------------------------------
# BlockSpec helpers
# ---------------------------------------------------------------------------
def _const_spec(shape):
    # Whole-array block, same block for every layer step (fetched once, stays in VMEM).
    n = len(shape)
    return pl.BlockSpec(tuple(shape), lambda l, n=n: (0,) * n)


def _layer_spec(shape):
    # Stacked per-layer parameter: stream layer l's slab each grid step (double-buffered).
    n = len(shape) - 1
    return pl.BlockSpec((1,) + tuple(shape[1:]), lambda l, n=n: (l,) + (0,) * n)


# ---------------------------------------------------------------------------
# Parameters & forward
# ---------------------------------------------------------------------------
def init_params(key, d_action, d_model, hidden, n_heads, n_layers, max_seq_len, ff):
    keys = jax.random.split(key, 4 + n_layers)

    def w(k, shape, dtype=jnp.bfloat16, scale=0.02):
        return (scale * jax.random.normal(k, shape, dtype=jnp.float32)).astype(dtype)

    d_model_pad = ((d_model + 127) // 128) * 128                     # lane-dense output width
    proj_w = jnp.zeros((hidden, d_model_pad), jnp.bfloat16)
    proj_w = proj_w.at[:, :d_model].set(w(keys[3], (hidden, d_model)))

    layer_keys = [jax.random.split(keys[4 + i], 6) for i in range(n_layers)]

    def wstack(kidx, shape, dtype=jnp.bfloat16):
        return jnp.stack([w(layer_keys[i][kidx], shape, dtype=dtype)
                          for i in range(n_layers)], axis=0)

    # Fused QKV weight with 1/sqrt(head_dim) pre-folded into the Q block (and its bias).
    qk_scale = 1.0 / math.sqrt(hidden // n_heads)
    wq = wstack(0, (hidden, hidden), dtype=jnp.float32) * qk_scale
    wk = wstack(1, (hidden, hidden), dtype=jnp.float32)
    wv = wstack(2, (hidden, hidden), dtype=jnp.float32)
    wqkv = jnp.concatenate([wq, wk, wv], axis=-1).astype(jnp.bfloat16)   # (L, H, 3H)

    zeros_h = jnp.zeros((n_layers, 1, hidden), jnp.float32)
    ones_h = jnp.ones((n_layers, 1, hidden), jnp.float32)

    return {
        'emb_w': w(keys[0], (d_action, hidden), dtype=jnp.float32),  # tiny, keep f32
        'emb_b': w(keys[1], (1, hidden), dtype=jnp.float32),
        'pos': jax.random.normal(keys[2], (1, max_seq_len, hidden), dtype=jnp.float32),
        'proj_w': proj_w,                                            # (hidden, 128) bf16 padded
        'proj_b': jnp.zeros((1, d_model_pad), jnp.float32),
        'd_model': d_model,
        # stacked per-layer parameters (leading layer axis) -------------------
        'wqkv': wqkv,
        'bqkv': jnp.zeros((n_layers, 1, 3 * hidden), jnp.float32),   # Q-part is pre-scaled (zeros)
        'wo': wstack(3, (hidden, hidden)), 'bo': zeros_h,
        'w1': wstack(4, (hidden, ff)), 'w2': wstack(5, (ff, hidden)),
        'g1': ones_h, 'b1': zeros_h, 'g2': ones_h, 'b2': zeros_h,
        'bf1': jnp.zeros((n_layers, 1, ff), jnp.float32),
        'bf2': zeros_h,
    }


def action_encoder_forward(actions, params, n_heads):
    B, T, _ = actions.shape
    # src_key_padding_mask = (actions == -100).any(dim=-1) -> additive key bias
    pad = jnp.any(actions == -100.0, axis=-1)                        # (B, T) bool
    key_bias = jnp.where(pad, -1e9, 0.0).astype(jnp.float32)

    pos = params['pos'][:, :T, :]
    H = params['emb_w'].shape[1]
    L = params['wqkv'].shape[0]
    Dp = params['proj_w'].shape[1]
    F = params['w1'].shape[2]
    ff_chunk = 512 if F % 512 == 0 else F

    ins = (actions, key_bias,
           params['emb_w'], params['emb_b'], pos,
           params['wqkv'], params['bqkv'], params['wo'], params['bo'],
           params['g1'], params['b1'], params['g2'], params['b2'],
           params['w1'], params['bf1'], params['w2'], params['bf2'],
           params['proj_w'], params['proj_b'])

    in_specs = [
        _const_spec(actions.shape), _const_spec(key_bias.shape),
        _const_spec(params['emb_w'].shape), _const_spec(params['emb_b'].shape),
        _const_spec(pos.shape),
        _layer_spec(params['wqkv'].shape), _layer_spec(params['bqkv'].shape),
        _layer_spec(params['wo'].shape), _layer_spec(params['bo'].shape),
        _layer_spec(params['g1'].shape), _layer_spec(params['b1'].shape),
        _layer_spec(params['g2'].shape), _layer_spec(params['b2'].shape),
        _layer_spec(params['w1'].shape), _layer_spec(params['bf1'].shape),
        _layer_spec(params['w2'].shape), _layer_spec(params['bf2'].shape),
        _const_spec(params['proj_w'].shape), _const_spec(params['proj_b'].shape),
    ]

    out = pl.pallas_call(
        functools.partial(fused_encoder_kernel, n_heads=n_heads, ff_chunk=ff_chunk),
        out_shape=jax.ShapeDtypeStruct((B, T, Dp), jnp.float32),
        grid_spec=pltpu.PrefetchScalarGridSpec(
            num_scalar_prefetch=0,
            grid=(L,),
            in_specs=in_specs,
            out_specs=_const_spec((B, T, Dp)),
            scratch_shapes=[pltpu.VMEM((B * T, H), jnp.float32)]),
        compiler_params=pltpu.CompilerParams(
            dimension_semantics=("arbitrary",),
            vmem_limit_bytes=32 * 1024 * 1024),                      # explicit, v7x-safe
    )(*ins)

    return out[:, :, :params['d_model']]


if __name__ == "__main__":
    # Small shapes consistent with the module (shrunk from the PyTorch defaults).
    B, T = 2, 8
    d_action, d_model = 8, 64
    hidden, n_heads, n_layers = 128, 8, 2
    max_seq_len = 16
    ff = 2048  # PyTorch TransformerEncoderLayer default dim_feedforward

    key = jax.random.PRNGKey(0)
    k_act, k_par = jax.random.split(key)
    params = init_params(k_par, d_action, d_model, hidden, n_heads,
                         n_layers, max_seq_len, ff)

    actions = jax.random.normal(k_act, (B, T, d_action), dtype=jnp.float32)
    # Mark the tail of the second sequence as padding (sentinel value -100).
    actions = actions.at[1, 5:, :].set(-100.0)

    out = action_encoder_forward(actions, params, n_heads)
    out = jax.block_until_ready(out)
    assert out.shape == (B, T, d_model)
    assert bool(jnp.all(jnp.isfinite(out)))
    print("KERNEL_OK")
</pallas_src>

<mosaic_0001>
module attributes {stable_mosaic.version = 11 : i64} {
  func.func @fused_encoder_kernel(%arg0: i32, %arg1: memref<2x8x8xf32, #tpu.memory_space<vmem>>, %arg2: memref<2x8xf32, #tpu.memory_space<vmem>>, %arg3: memref<8x128xf32, #tpu.memory_space<vmem>>, %arg4: memref<1x128xf32, #tpu.memory_space<vmem>>, %arg5: memref<1x8x128xf32, #tpu.memory_space<vmem>>, %arg6: memref<1x128x384xbf16, #tpu.memory_space<vmem>>, %arg7: memref<1x1x384xf32, #tpu.memory_space<vmem>>, %arg8: memref<1x128x128xbf16, #tpu.memory_space<vmem>>, %arg9: memref<1x1x128xf32, #tpu.memory_space<vmem>>, %arg10: memref<1x1x128xf32, #tpu.memory_space<vmem>>, %arg11: memref<1x1x128xf32, #tpu.memory_space<vmem>>, %arg12: memref<1x1x128xf32, #tpu.memory_space<vmem>>, %arg13: memref<1x1x128xf32, #tpu.memory_space<vmem>>, %arg14: memref<1x128x2048xbf16, #tpu.memory_space<vmem>>, %arg15: memref<1x1x2048xf32, #tpu.memory_space<vmem>>, %arg16: memref<1x2048x128xbf16, #tpu.memory_space<vmem>>, %arg17: memref<1x1x128xf32, #tpu.memory_space<vmem>>, %arg18: memref<128x128xbf16, #tpu.memory_space<vmem>>, %arg19: memref<1x128xf32, #tpu.memory_space<vmem>>, %arg20: memref<2x8x128xf32, #tpu.memory_space<vmem>>, %arg21: memref<16x128xf32, #tpu.memory_space<vmem>>) attributes {dimension_semantics = [#tpu.dimension_semantics<arbitrary>], iteration_bounds = array<i64: 2>, scalar_prefetch = 0 : i64, scratch_operands = 1 : i64, tpu.core_type = #tpu.core_type<tc>, window_params = [{pipeline_mode = #tpu.pipeline_mode<synchronous>, transform_indices = @transform_0, window_bounds = array<i64: 2, 8, 8>}, {pipeline_mode = #tpu.pipeline_mode<synchronous>, transform_indices = @transform_1, window_bounds = array<i64: 2, 8>}, {pipeline_mode = #tpu.pipeline_mode<synchronous>, transform_indices = @transform_2, window_bounds = array<i64: 8, 128>}, {pipeline_mode = #tpu.pipeline_mode<synchronous>, transform_indices = @transform_3, window_bounds = array<i64: 1, 128>}, {pipeline_mode = #tpu.pipeline_mode<synchronous>, transform_indices = @transform_4, window_bounds = array<i64: 1, 8, 128>}, {transform_indices = @transform_5, window_bounds = array<i64: 1, 128, 384>}, {transform_indices = @transform_6, window_bounds = array<i64: 1, 1, 384>}, {transform_indices = @transform_7, window_bounds = array<i64: 1, 128, 128>}, {transform_indices = @transform_8, window_bounds = array<i64: 1, 1, 128>}, {transform_indices = @transform_9, window_bounds = array<i64: 1, 1, 128>}, {transform_indices = @transform_10, window_bounds = array<i64: 1, 1, 128>}, {transform_indices = @transform_11, window_bounds = array<i64: 1, 1, 128>}, {transform_indices = @transform_12, window_bounds = array<i64: 1, 1, 128>}, {transform_indices = @transform_13, window_bounds = array<i64: 1, 128, 2048>}, {transform_indices = @transform_14, window_bounds = array<i64: 1, 1, 2048>}, {transform_indices = @transform_15, window_bounds = array<i64: 1, 2048, 128>}, {transform_indices = @transform_16, window_bounds = array<i64: 1, 1, 128>}, {pipeline_mode = #tpu.pipeline_mode<synchronous>, transform_indices = @transform_17, window_bounds = array<i64: 128, 128>}, {pipeline_mode = #tpu.pipeline_mode<synchronous>, transform_indices = @transform_18, window_bounds = array<i64: 1, 128>}, {pipeline_mode = #tpu.pipeline_mode<synchronous>, transform_indices = @transform_19, window_bounds = array<i64: 2, 8, 128>}]} {
    %c0_i32 = arith.constant 0 : i32
    %0 = arith.cmpi eq, %arg0, %c0_i32 : i32
    %1 = arith.extui %0 : i1 to i32
    %c0_i32_0 = arith.constant 0 : i32
    %2 = arith.cmpi ne, %1, %c0_i32_0 : i32
    scf.if %2 {
      %c0_131 = arith.constant 0 : index
      %c0_132 = arith.constant 0 : index
      %c0_133 = arith.constant 0 : index
      %323 = vector.load %arg1[%c0_131, %c0_132, %c0_133] : memref<2x8x8xf32, #tpu.memory_space<vmem>>, vector<2x8x8xf32>
      %324 = vector.shape_cast %323 : vector<2x8x8xf32> to vector<16x8xf32>
      %c0_134 = arith.constant 0 : index
      %c0_135 = arith.constant 0 : index
      %325 = vector.load %arg3[%c0_134, %c0_135] : memref<8x128xf32, #tpu.memory_space<vmem>>, vector<8x128xf32>
      %cst_136 = arith.constant dense<0.000000e+00> : vector<16x128xf32>
      %326 = tpu.matmul %324, %325, %cst_136 {dimension_numbers = #tpu.dot_dimension_numbers<[1], [0], [0], [1], [0, 0, 1, 1], [], []>} : vector<16x8xf32>, vector<8x128xf32>, vector<16x128xf32> -> vector<16x128xf32>
      %c0_137 = arith.constant 0 : index
      %c0_138 = arith.constant 0 : index
      %327 = vector.load %arg4[%c0_137, %c0_138] : memref<1x128xf32, #tpu.memory_space<vmem>>, vector<1x128xf32>
      %328 = vector.broadcast %327 : vector<1x128xf32> to vector<16x128xf32>
      %329 = arith.addf %326, %328 : vector<16x128xf32>
      %330 = vector.shape_cast %329 : vector<16x128xf32> to vector<2x8x128xf32>
      %c0_139 = arith.constant 0 : index
      %c0_140 = arith.constant 0 : index
      %c0_141 = arith.constant 0 : index
      %331 = vector.load %arg5[%c0_139, %c0_140, %c0_141] : memref<1x8x128xf32, #tpu.memory_space<vmem>>, vector<1x8x128xf32>
      %332 = vector.broadcast %331 : vector<1x8x128xf32> to vector<2x8x128xf32>
      %333 = arith.addf %330, %332 : vector<2x8x128xf32>
      %334 = vector.shape_cast %333 : vector<2x8x128xf32> to vector<16x128xf32>
      %c0_142 = arith.constant 0 : index
      %c0_143 = arith.constant 0 : index
      %335 = vector.load %arg21[%c0_142, %c0_143] : memref<16x128xf32, #tpu.memory_space<vmem>>, vector<16x128xf32>
      tpu.vector_store %arg21[%c0_142, %c0_143], %334 {strides = array<i32>} : memref<16x128xf32, #tpu.memory_space<vmem>>, vector<16x128xf32>,
    } else {
    }
    %c0 = arith.constant 0 : index
    %c0_1 = arith.constant 0 : index
    %3 = vector.load %arg21[%c0, %c0_1] : memref<16x128xf32, #tpu.memory_space<vmem>>, vector<16x128xf32>
    %c0_2 = arith.constant 0 : index
    %c0_3 = arith.constant 0 : index
    %c0_4 = arith.constant 0 : index
    %4 = vector.load %arg10[%c0_2, %c0_3, %c0_4] : memref<1x1x128xf32, #tpu.memory_space<vmem>>, vector<1x1x128xf32>
    %5 = vector.shape_cast %4 : vector<1x1x128xf32> to vector<1x128xf32>
    %c0_5 = arith.constant 0 : index
    %c0_6 = arith.constant 0 : index
    %c0_7 = arith.constant 0 : index
    %6 = vector.load %arg11[%c0_5, %c0_6, %c0_7] : memref<1x1x128xf32, #tpu.memory_space<vmem>>, vector<1x1x128xf32>
    %7 = vector.shape_cast %6 : vector<1x1x128xf32> to vector<1x128xf32>
    %cst = arith.constant dense<0.000000e+00> : vector<16xf32>
    %8 = vector.multi_reduction <add>, %3, %cst [1] : vector<16x128xf32> to vector<16xf32>
    %9 = vector.shape_cast %8 : vector<16xf32> to vector<16x1xf32>
    %cst_8 = arith.constant 1.280000e+02 : f32
    %10 = vector.broadcast %cst_8 : f32 to vector<16x1xf32>
    %11 = arith.divf %9, %10 : vector<16x1xf32>
    %12 = vector.broadcast %11 : vector<16x1xf32> to vector<16x128xf32>
    %13 = arith.subf %3, %12 : vector<16x128xf32>
    %14 = arith.mulf %13, %13 : vector<16x128xf32>
    %cst_9 = arith.constant dense<0.000000e+00> : vector<16xf32>
    %15 = vector.multi_reduction <add>, %14, %cst_9 [1] : vector<16x128xf32> to vector<16xf32>
    %16 = vector.shape_cast %15 : vector<16xf32> to vector<16x1xf32>
    %cst_10 = arith.constant 1.280000e+02 : f32
    %17 = vector.broadcast %cst_10 : f32 to vector<16x1xf32>
    %18 = arith.divf %16, %17 : vector<16x1xf32>
    %cst_11 = arith.constant 9.99999974E-6 : f32
    %19 = vector.broadcast %cst_11 : f32 to vector<16x1xf32>
    %20 = arith.addf %18, %19 : vector<16x1xf32>
    %21 = math.rsqrt %20 : vector<16x1xf32>
    %22 = vector.broadcast %21 : vector<16x1xf32> to vector<16x128xf32>
    %23 = arith.mulf %13, %22 : vector<16x128xf32>
    %24 = vector.broadcast %5 : vector<1x128xf32> to vector<16x128xf32>
    %25 = arith.mulf %23, %24 : vector<16x128xf32>
    %26 = vector.broadcast %7 : vector<1x128xf32> to vector<16x128xf32>
    %27 = arith.addf %25, %26 : vector<16x128xf32>
    %28 = arith.truncf %27 : vector<16x128xf32> to vector<16x128xbf16>
    %c0_12 = arith.constant 0 : index
    %c0_13 = arith.constant 0 : index
    %c0_14 = arith.constant 0 : index
    %29 = vector.load %arg6[%c0_12, %c0_13, %c0_14] : memref<1x128x384xbf16, #tpu.memory_space<vmem>>, vector<1x128x384xbf16>
    %30 = vector.shape_cast %29 : vector<1x128x384xbf16> to vector<128x384xbf16>
    %cst_15 = arith.constant dense<0.000000e+00> : vector<16x384xf32>
    %31 = tpu.matmul %28, %30, %cst_15 {dimension_numbers = #tpu.dot_dimension_numbers<[1], [0], [0], [1], [0, 0, 1, 1], [], []>} : vector<16x128xbf16>, vector<128x384xbf16>, vector<16x384xf32> -> vector<16x384xf32>
    %c0_16 = arith.constant 0 : index
    %c0_17 = arith.constant 0 : index
    %c0_18 = arith.constant 0 : index
    %32 = vector.load %arg7[%c0_16, %c0_17, %c0_18] : memref<1x1x384xf32, #tpu.memory_space<vmem>>, vector<1x1x384xf32>
    %33 = vector.shape_cast %32 : vector<1x1x384xf32> to vector<1x384xf32>
    %34 = vector.broadcast %33 : vector<1x384xf32> to vector<16x384xf32>
    %35 = arith.addf %31, %34 : vector<16x384xf32>
    %36 = arith.truncf %35 : vector<16x384xf32> to vector<16x384xbf16>
    %37 = vector.shape_cast %36 : vector<16x384xbf16> to vector<2x8x384xbf16>
    %c0_19 = arith.constant 0 : index
    %c0_20 = arith.constant 0 : index
    %38 = vector.load %arg2[%c0_19, %c0_20] : memref<2x8xf32, #tpu.memory_space<vmem>>, vector<2x8xf32>
    %39 = vector.shape_cast %38 : vector<2x8xf32> to vector<2x1x8xf32>
    %c0_21 = arith.constant 0 : index
    %c0_22 = arith.constant 0 : index
    %c0_23 = arith.constant 0 : index
    %40 = vector.load %arg8[%c0_21, %c0_22, %c0_23] : memref<1x128x128xbf16, #tpu.memory_space<vmem>>, vector<1x128x128xbf16>
    %41 = vector.shape_cast %40 : vector<1x128x128xbf16> to vector<128x128xbf16>
    %cst_24 = arith.constant 0.000000e+00 : f32
    %42 = vector.broadcast %cst_24 : f32 to vector<16x128xf32>
    %43 = vector.extract_strided_slice %37 {offsets = [0, 0, 0], sizes = [2, 8, 16], strides = [1, 1, 1]} : vector<2x8x384xbf16> to vector<2x8x16xbf16>
    %44 = vector.extract_strided_slice %37 {offsets = [0, 0, 128], sizes = [2, 8, 16], strides = [1, 1, 1]} : vector<2x8x384xbf16> to vector<2x8x16xbf16>
    "tpu.trace_start"() <{level = 10 : i32, message = "bqd,bkd->bqk"}> : () -> ()
    %cst_25 = arith.constant dense<0.000000e+00> : vector<2x8x8xf32>
    %45 = tpu.matmul %43, %44, %cst_25 {dimension_numbers = #tpu.dot_dimension_numbers<[2], [2], [1], [1], [0, 0, 0, 1, 1, 1], [0], [0]>} : vector<2x8x16xbf16>, vector<2x8x16xbf16>, vector<2x8x8xf32> -> vector<2x8x8xf32>
    "tpu.trace_stop"() : () -> ()
    %46 = vector.broadcast %39 : vector<2x1x8xf32> to vector<2x8x8xf32>
    %47 = arith.addf %45, %46 : vector<2x8x8xf32>
    %cst_26 = arith.constant dense<0xFF800000> : vector<2x8xf32>
    %48 = vector.multi_reduction <maximumf>, %47, %cst_26 [2] : vector<2x8x8xf32> to vector<2x8xf32>
    %49 = vector.shape_cast %48 : vector<2x8xf32> to vector<2x8x1xf32>
    %50 = vector.broadcast %49 : vector<2x8x1xf32> to vector<2x8x8xf32>
    %51 = arith.subf %47, %50 : vector<2x8x8xf32>
    %52 = math.exp %51 : vector<2x8x8xf32>
    %cst_27 = arith.constant dense<0.000000e+00> : vector<2x8xf32>
    %53 = vector.multi_reduction <add>, %52, %cst_27 [2] : vector<2x8x8xf32> to vector<2x8xf32>
    %54 = vector.shape_cast %53 : vector<2x8xf32> to vector<2x8x1xf32>
    %55 = tpu.reciprocal %54 {approx = true} : vector<2x8x1xf32> -> vector<2x8x1xf32>
    %56 = vector.broadcast %55 : vector<2x8x1xf32> to vector<2x8x8xf32>
    %57 = arith.mulf %52, %56 : vector<2x8x8xf32>
    %58 = arith.truncf %57 : vector<2x8x8xf32> to vector<2x8x8xbf16>
    %59 = vector.extract_strided_slice %37 {offsets = [0, 0, 256], sizes = [2, 8, 16], strides = [1, 1, 1]} : vector<2x8x384xbf16> to vector<2x8x16xbf16>
    "tpu.trace_start"() <{level = 10 : i32, message = "bqk,bkd->bqd"}> : () -> ()
    %cst_28 = arith.constant dense<0.000000e+00> : vector<2x8x16xf32>
    %60 = tpu.matmul %58, %59, %cst_28 {dimension_numbers = #tpu.dot_dimension_numbers<[2], [1], [1], [2], [0, 0, 0, 1, 1, 2], [0], [0]>} : vector<2x8x8xbf16>, vector<2x8x16xbf16>, vector<2x8x16xf32> -> vector<2x8x16xf32>
    "tpu.trace_stop"() : () -> ()
    %61 = vector.shape_cast %60 : vector<2x8x16xf32> to vector<16x16xf32>
    %62 = arith.truncf %61 : vector<16x16xf32> to vector<16x16xbf16>
    %63 = vector.extract_strided_slice %41 {offsets = [0, 0], sizes = [16, 128], strides = [1, 1]} : vector<128x128xbf16> to vector<16x128xbf16>
    %cst_29 = arith.constant dense<0.000000e+00> : vector<16x128xf32>
    %64 = tpu.matmul %62, %63, %cst_29 {dimension_numbers = #tpu.dot_dimension_numbers<[1], [0], [0], [1], [0, 0, 1, 1], [], []>} : vector<16x16xbf16>, vector<16x128xbf16>, vector<16x128xf32> -> vector<16x128xf32>
    %65 = arith.addf %42, %64 : vector<16x128xf32>
    %66 = vector.extract_strided_slice %37 {offsets = [0, 0, 16], sizes = [2, 8, 16], strides = [1, 1, 1]} : vector<2x8x384xbf16> to vector<2x8x16xbf16>
    %67 = vector.extract_strided_slice %37 {offsets = [0, 0, 144], sizes = [2, 8, 16], strides = [1, 1, 1]} : vector<2x8x384xbf16> to vector<2x8x16xbf16>
    "tpu.trace_start"() <{level = 10 : i32, message = "bqd,bkd->bqk"}> : () -> ()
    %cst_30 = arith.constant dense<0.000000e+00> : vector<2x8x8xf32>
    %68 = tpu.matmul %66, %67, %cst_30 {dimension_numbers = #tpu.dot_dimension_numbers<[2], [2], [1], [1], [0, 0, 0, 1, 1, 1], [0], [0]>} : vector<2x8x16xbf16>, vector<2x8x16xbf16>, vector<2x8x8xf32> -> vector<2x8x8xf32>
    "tpu.trace_stop"() : () -> ()
    %69 = vector.broadcast %39 : vector<2x1x8xf32> to vector<2x8x8xf32>
    %70 = arith.addf %68, %69 : vector<2x8x8xf32>
    %cst_31 = arith.constant dense<0xFF800000> : vector<2x8xf32>
    %71 = vector.multi_reduction <maximumf>, %70, %cst_31 [2] : vector<2x8x8xf32> to vector<2x8xf32>
    %72 = vector.shape_cast %71 : vector<2x8xf32> to vector<2x8x1xf32>
    %73 = vector.broadcast %72 : vector<2x8x1xf32> to vector<2x8x8xf32>
    %74 = arith.subf %70, %73 : vector<2x8x8xf32>
    %75 = math.exp %74 : vector<2x8x8xf32>
    %cst_32 = arith.constant dense<0.000000e+00> : vector<2x8xf32>
    %76 = vector.multi_reduction <add>, %75, %cst_32 [2] : vector<2x8x8xf32> to vector<2x8xf32>
    %77 = vector.shape_cast %76 : vector<2x8xf32> to vector<2x8x1xf32>
    %78 = tpu.reciprocal %77 {approx = true} : vector<2x8x1xf32> -> vector<2x8x1xf32>
    %79 = vector.broadcast %78 : vector<2x8x1xf32> to vector<2x8x8xf32>
    %80 = arith.mulf %75, %79 : vector<2x8x8xf32>
    %81 = arith.truncf %80 : vector<2x8x8xf32> to vector<2x8x8xbf16>
    %82 = vector.extract_strided_slice %37 {offsets = [0, 0, 272], sizes = [2, 8, 16], strides = [1, 1, 1]} : vector<2x8x384xbf16> to vector<2x8x16xbf16>
    "tpu.trace_start"() <{level = 10 : i32, message = "bqk,bkd->bqd"}> : () -> ()
    %cst_33 = arith.constant dense<0.000000e+00> : vector<2x8x16xf32>
    %83 = tpu.matmul %81, %82, %cst_33 {dimension_numbers = #tpu.dot_dimension_numbers<[2], [1], [1], [2], [0, 0, 0, 1, 1, 2], [0], [0]>} : vector<2x8x8xbf16>, vector<2x8x16xbf16>, vector<2x8x16xf32> -> vector<2x8x16xf32>
    "tpu.trace_stop"() : () -> ()
    %84 = vector.shape_cast %83 : vector<2x8x16xf32> to vector<16x16xf32>
    %85 = arith.truncf %84 : vector<16x16xf32> to vector<16x16xbf16>
    %86 = vector.extract_strided_slice %41 {offsets = [16, 0], sizes = [16, 128], strides = [1, 1]} : vector<128x128xbf16> to vector<16x128xbf16>
    %cst_34 = arith.constant dense<0.000000e+00> : vector<16x128xf32>
    %87 = tpu.matmul %85, %86, %cst_34 {dimension_numbers = #tpu.dot_dimension_numbers<[1], [0], [0], [1], [0, 0, 1, 1], [], []>} : vector<16x16xbf16>, vector<16x128xbf16>, vector<16x128xf32> -> vector<16x128xf32>
    %88 = arith.addf %65, %87 : vector<16x128xf32>
    %89 = vector.extract_strided_slice %37 {offsets = [0, 0, 32], sizes = [2, 8, 16], strides = [1, 1, 1]} : vector<2x8x384xbf16> to vector<2x8x16xbf16>
    %90 = vector.extract_strided_slice %37 {offsets = [0, 0, 160], sizes = [2, 8, 16], strides = [1, 1, 1]} : vector<2x8x384xbf16> to vector<2x8x16xbf16>
    "tpu.trace_start"() <{level = 10 : i32, message = "bqd,bkd->bqk"}> : () -> ()
    %cst_35 = arith.constant dense<0.000000e+00> : vector<2x8x8xf32>
    %91 = tpu.matmul %89, %90, %cst_35 {dimension_numbers = #tpu.dot_dimension_numbers<[2], [2], [1], [1], [0, 0, 0, 1, 1, 1], [0], [0]>} : vector<2x8x16xbf16>, vector<2x8x16xbf16>, vector<2x8x8xf32> -> vector<2x8x8xf32>
    "tpu.trace_stop"() : () -> ()
    %92 = vector.broadcast %39 : vector<2x1x8xf32> to vector<2x8x8xf32>
    %93 = arith.addf %91, %92 : vector<2x8x8xf32>
    %cst_36 = arith.constant dense<0xFF800000> : vector<2x8xf32>
    %94 = vector.multi_reduction <maximumf>, %93, %cst_36 [2] : vector<2x8x8xf32> to vector<2x8xf32>
    %95 = vector.shape_cast %94 : vector<2x8xf32> to vector<2x8x1xf32>
    %96 = vector.broadcast %95 : vector<2x8x1xf32> to vector<2x8x8xf32>
    %97 = arith.subf %93, %96 : vector<2x8x8xf32>
    %98 = math.exp %97 : vector<2x8x8xf32>
    %cst_37 = arith.constant dense<0.000000e+00> : vector<2x8xf32>
    %99 = vector.multi_reduction <add>, %98, %cst_37 [2] : vector<2x8x8xf32> to vector<2x8xf32>
    %100 = vector.shape_cast %99 : vector<2x8xf32> to vector<2x8x1xf32>
    %101 = tpu.reciprocal %100 {approx = true} : vector<2x8x1xf32> -> vector<2x8x1xf32>
    %102 = vector.broadcast %101 : vector<2x8x1xf32> to vector<2x8x8xf32>
    %103 = arith.mulf %98, %102 : vector<2x8x8xf32>
    %104 = arith.truncf %103 : vector<2x8x8xf32> to vector<2x8x8xbf16>
    %105 = vector.extract_strided_slice %37 {offsets = [0, 0, 288], sizes = [2, 8, 16], strides = [1, 1, 1]} : vector<2x8x384xbf16> to vector<2x8x16xbf16>
    "tpu.trace_start"() <{level = 10 : i32, message = "bqk,bkd->bqd"}> : () -> ()
    %cst_38 = arith.constant dense<0.000000e+00> : vector<2x8x16xf32>
    %106 = tpu.matmul %104, %105, %cst_38 {dimension_numbers = #tpu.dot_dimension_numbers<[2], [1], [1], [2], [0, 0, 0, 1, 1, 2], [0], [0]>} : vector<2x8x8xbf16>, vector<2x8x16xbf16>, vector<2x8x16xf32> -> vector<2x8x16xf32>
    "tpu.trace_stop"() : () -> ()
    %107 = vector.shape_cast %106 : vector<2x8x16xf32> to vector<16x16xf32>
    %108 = arith.truncf %107 : vector<16x16xf32> to vector<16x16xbf16>
    %109 = vector.extract_strided_slice %41 {offsets = [32, 0], sizes = [16, 128], strides = [1, 1]} : vector<128x128xbf16> to vector<16x128xbf16>
    %cst_39 = arith.constant dense<0.000000e+00> : vector<16x128xf32>
    %110 = tpu.matmul %108, %109, %cst_39 {dimension_numbers = #tpu.dot_dimension_numbers<[1], [0], [0], [1], [0, 0, 1, 1], [], []>} : vector<16x16xbf16>, vector<16x128xbf16>, vector<16x128xf32> -> vector<16x128xf32>
    %111 = arith.addf %88, %110 : vector<16x128xf32>
    %112 = vector.extract_strided_slice %37 {offsets = [0, 0, 48], sizes = [2, 8, 16], strides = [1, 1, 1]} : vector<2x8x384xbf16> to vector<2x8x16xbf16>
    %113 = vector.extract_strided_slice %37 {offsets = [0, 0, 176], sizes = [2, 8, 16], strides = [1, 1, 1]} : vector<2x8x384xbf16> to vector<2x8x16xbf16>
    "tpu.trace_start"() <{level = 10 : i32, message = "bqd,bkd->bqk"}> : () -> ()
    %cst_40 = arith.constant dense<0.000000e+00> : vector<2x8x8xf32>
    %114 = tpu.matmul %112, %113, %cst_40 {dimension_numbers = #tpu.dot_dimension_numbers<[2], [2], [1], [1], [0, 0, 0, 1, 1, 1], [0], [0]>} : vector<2x8x16xbf16>, vector<2x8x16xbf16>, vector<2x8x8xf32> -> vector<2x8x8xf32>
    "tpu.trace_stop"() : () -> ()
    %115 = vector.broadcast %39 : vector<2x1x8xf32> to vector<2x8x8xf32>
    %116 = arith.addf %114, %115 : vector<2x8x8xf32>
    %cst_41 = arith.constant dense<0xFF800000> : vector<2x8xf32>
    %117 = vector.multi_reduction <maximumf>, %116, %cst_41 [2] : vector<2x8x8xf32> to vector<2x8xf32>
    %118 = vector.shape_cast %117 : vector<2x8xf32> to vector<2x8x1xf32>
    %119 = vector.broadcast %118 : vector<2x8x1xf32> to vector<2x8x8xf32>
    %120 = arith.subf %116, %119 : vector<2x8x8xf32>
    %121 = math.exp %120 : vector<2x8x8xf32>
    %cst_42 = arith.constant dense<0.000000e+00> : vector<2x8xf32>
    %122 = vector.multi_reduction <add>, %121, %cst_42 [2] : vector<2x8x8xf32> to vector<2x8xf32>
    %123 = vector.shape_cast %122 : vector<2x8xf32> to vector<2x8x1xf32>
    %124 = tpu.reciprocal %123 {approx = true} : vector<2x8x1xf32> -> vector<2x8x1xf32>
    %125 = vector.broadcast %124 : vector<2x8x1xf32> to vector<2x8x8xf32>
    %126 = arith.mulf %121, %125 : vector<2x8x8xf32>
    %127 = arith.truncf %126 : vector<2x8x8xf32> to vector<2x8x8xbf16>
    %128 = vector.extract_strided_slice %37 {offsets = [0, 0, 304], sizes = [2, 8, 16], strides = [1, 1, 1]} : vector<2x8x384xbf16> to vector<2x8x16xbf16>
    "tpu.trace_start"() <{level = 10 : i32, message = "bqk,bkd->bqd"}> : () -> ()
    %cst_43 = arith.constant dense<0.000000e+00> : vector<2x8x16xf32>
    %129 = tpu.matmul %127, %128, %cst_43 {dimension_numbers = #tpu.dot_dimension_numbers<[2], [1], [1], [2], [0, 0, 0, 1, 1, 2], [0], [0]>} : vector<2x8x8xbf16>, vector<2x8x16xbf16>, vector<2x8x16xf32> -> vector<2x8x16xf32>
    "tpu.trace_stop"() : () -> ()
    %130 = vector.shape_cast %129 : vector<2x8x16xf32> to vector<16x16xf32>
    %131 = arith.truncf %130 : vector<16x16xf32> to vector<16x16xbf16>
    %132 = vector.extract_strided_slice %41 {offsets = [48, 0], sizes = [16, 128], strides = [1, 1]} : vector<128x128xbf16> to vector<16x128xbf16>
    %cst_44 = arith.constant dense<0.000000e+00> : vector<16x128xf32>
    %133 = tpu.matmul %131, %132, %cst_44 {dimension_numbers = #tpu.dot_dimension_numbers<[1], [0], [0], [1], [0, 0, 1, 1], [], []>} : vector<16x16xbf16>, vector<16x128xbf16>, vector<16x128xf32> -> vector<16x128xf32>
    %134 = arith.addf %111, %133 : vector<16x128xf32>
    %135 = vector.extract_strided_slice %37 {offsets = [0, 0, 64], sizes = [2, 8, 16], strides = [1, 1, 1]} : vector<2x8x384xbf16> to vector<2x8x16xbf16>
    %136 = vector.extract_strided_slice %37 {offsets = [0, 0, 192], sizes = [2, 8, 16], strides = [1, 1, 1]} : vector<2x8x384xbf16> to vector<2x8x16xbf16>
    "tpu.trace_start"() <{level = 10 : i32, message = "bqd,bkd->bqk"}> : () -> ()
    %cst_45 = arith.constant dense<0.000000e+00> : vector<2x8x8xf32>
    %137 = tpu.matmul %135, %136, %cst_45 {dimension_numbers = #tpu.dot_dimension_numbers<[2], [2], [1], [1], [0, 0, 0, 1, 1, 1], [0], [0]>} : vector<2x8x16xbf16>, vector<2x8x16xbf16>, vector<2x8x8xf32> -> vector<2x8x8xf32>
    "tpu.trace_stop"() : () -> ()
    %138 = vector.broadcast %39 : vector<2x1x8xf32> to vector<2x8x8xf32>
    %139 = arith.addf %137, %138 : vector<2x8x8xf32>
    %cst_46 = arith.constant dense<0xFF800000> : vector<2x8xf32>
    %140 = vector.multi_reduction <maximumf>, %139, %cst_46 [2] : vector<2x8x8xf32> to vector<2x8xf32>
    %141 = vector.shape_cast %140 : vector<2x8xf32> to vector<2x8x1xf32>
    %142 = vector.broadcast %141 : vector<2x8x1xf32> to vector<2x8x8xf32>
    %143 = arith.subf %139, %142 : vector<2x8x8xf32>
    %144 = math.exp %143 : vector<2x8x8xf32>
    %cst_47 = arith.constant dense<0.000000e+00> : vector<2x8xf32>
    %145 = vector.multi_reduction <add>, %144, %cst_47 [2] : vector<2x8x8xf32> to vector<2x8xf32>
    %146 = vector.shape_cast %145 : vector<2x8xf32> to vector<2x8x1xf32>
    %147 = tpu.reciprocal %146 {approx = true} : vector<2x8x1xf32> -> vector<2x8x1xf32>
    %148 = vector.broadcast %147 : vector<2x8x1xf32> to vector<2x8x8xf32>
    %149 = arith.mulf %144, %148 : vector<2x8x8xf32>
    %150 = arith.truncf %149 : vector<2x8x8xf32> to vector<2x8x8xbf16>
    %151 = vector.extract_strided_slice %37 {offsets = [0, 0, 320], sizes = [2, 8, 16], strides = [1, 1, 1]} : vector<2x8x384xbf16> to vector<2x8x16xbf16>
    "tpu.trace_start"() <{level = 10 : i32, message = "bqk,bkd->bqd"}> : () -> ()
    %cst_48 = arith.constant dense<0.000000e+00> : vector<2x8x16xf32>
    %152 = tpu.matmul %150, %151, %cst_48 {dimension_numbers = #tpu.dot_dimension_numbers<[2], [1], [1], [2], [0, 0, 0, 1, 1, 2], [0], [0]>} : vector<2x8x8xbf16>, vector<2x8x16xbf16>, vector<2x8x16xf32> -> vector<2x8x16xf32>
    "tpu.trace_stop"() : () -> ()
    %153 = vector.shape_cast %152 : vector<2x8x16xf32> to vector<16x16xf32>
    %154 = arith.truncf %153 : vector<16x16xf32> to vector<16x16xbf16>
    %155 = vector.extract_strided_slice %41 {offsets = [64, 0], sizes = [16, 128], strides = [1, 1]} : vector<128x128xbf16> to vector<16x128xbf16>
    %cst_49 = arith.constant dense<0.000000e+00> : vector<16x128xf32>
    %156 = tpu.matmul %154, %155, %cst_49 {dimension_numbers = #tpu.dot_dimension_numbers<[1], [0], [0], [1], [0, 0, 1, 1], [], []>} : vector<16x16xbf16>, vector<16x128xbf16>, vector<16x128xf32> -> vector<16x128xf32>
    %157 = arith.addf %134, %156 : vector<16x128xf32>
    %158 = vector.extract_strided_slice %37 {offsets = [0, 0, 80], sizes = [2, 8, 16], strides = [1, 1, 1]} : vector<2x8x384xbf16> to vector<2x8x16xbf16>
    %159 = vector.extract_strided_slice %37 {offsets = [0, 0, 208], sizes = [2, 8, 16], strides = [1, 1, 1]} : vector<2x8x384xbf16> to vector<2x8x16xbf16>
    "tpu.trace_start"() <{level = 10 : i32, message = "bqd,bkd->bqk"}> : () -> ()
    %cst_50 = arith.constant dense<0.000000e+00> : vector<2x8x8xf32>
    %160 = tpu.matmul %158, %159, %cst_50 {dimension_numbers = #tpu.dot_dimension_numbers<[2], [2], [1], [1], [0, 0, 0, 1, 1, 1], [0], [0]>} : vector<2x8x16xbf16>, vector<2x8x16xbf16>, vector<2x8x8xf32> -> vector<2x8x8xf32>
    "tpu.trace_stop"() : () -> ()
    %161 = vector.broadcast %39 : vector<2x1x8xf32> to vector<2x8x8xf32>
    %162 = arith.addf %160, %161 : vector<2x8x8xf32>
    %cst_51 = arith.constant dense<0xFF800000> : vector<2x8xf32>
    %163 = vector.multi_reduction <maximumf>, %162, %cst_51 [2] : vector<2x8x8xf32> to vector<2x8xf32>
    %164 = vector.shape_cast %163 : vector<2x8xf32> to vector<2x8x1xf32>
    %165 = vector.broadcast %164 : vector<2x8x1xf32> to vector<2x8x8xf32>
    %166 = arith.subf %162, %165 : vector<2x8x8xf32>
    %167 = math.exp %166 : vector<2x8x8xf32>
    %cst_52 = arith.constant dense<0.000000e+00> : vector<2x8xf32>
    %168 = vector.multi_reduction <add>, %167, %cst_52 [2] : vector<2x8x8xf32> to vector<2x8xf32>
    %169 = vector.shape_cast %168 : vector<2x8xf32> to vector<2x8x1xf32>
    %170 = tpu.reciprocal %169 {approx = true} : vector<2x8x1xf32> -> vector<2x8x1xf32>
    %171 = vector.broadcast %170 : vector<2x8x1xf32> to vector<2x8x8xf32>
    %172 = arith.mulf %167, %171 : vector<2x8x8xf32>
    %173 = arith.truncf %172 : vector<2x8x8xf32> to vector<2x8x8xbf16>
    %174 = vector.extract_strided_slice %37 {offsets = [0, 0, 336], sizes = [2, 8, 16], strides = [1, 1, 1]} : vector<2x8x384xbf16> to vector<2x8x16xbf16>
    "tpu.trace_start"() <{level = 10 : i32, message = "bqk,bkd->bqd"}> : () -> ()
    %cst_53 = arith.constant dense<0.000000e+00> : vector<2x8x16xf32>
    %175 = tpu.matmul %173, %174, %cst_53 {dimension_numbers = #tpu.dot_dimension_numbers<[2], [1], [1], [2], [0, 0, 0, 1, 1, 2], [0], [0]>} : vector<2x8x8xbf16>, vector<2x8x16xbf16>, vector<2x8x16xf32> -> vector<2x8x16xf32>
    "tpu.trace_stop"() : () -> ()
    %176 = vector.shape_cast %175 : vector<2x8x16xf32> to vector<16x16xf32>
    %177 = arith.truncf %176 : vector<16x16xf32> to vector<16x16xbf16>
    %178 = vector.extract_strided_slice %41 {offsets = [80, 0], sizes = [16, 128], strides = [1, 1]} : vector<128x128xbf16> to vector<16x128xbf16>
    %cst_54 = arith.constant dense<0.000000e+00> : vector<16x128xf32>
    %179 = tpu.matmul %177, %178, %cst_54 {dimension_numbers = #tpu.dot_dimension_numbers<[1], [0], [0], [1], [0, 0, 1, 1], [], []>} : vector<16x16xbf16>, vector<16x128xbf16>, vector<16x128xf32> -> vector<16x128xf32>
    %180 = arith.addf %157, %179 : vector<16x128xf32>
    %181 = vector.extract_strided_slice %37 {offsets = [0, 0, 96], sizes = [2, 8, 16], strides = [1, 1, 1]} : vector<2x8x384xbf16> to vector<2x8x16xbf16>
    %182 = vector.extract_strided_slice %37 {offsets = [0, 0, 224], sizes = [2, 8, 16], strides = [1, 1, 1]} : vector<2x8x384xbf16> to vector<2x8x16xbf16>
    "tpu.trace_start"() <{level = 10 : i32, message = "bqd,bkd->bqk"}> : () -> ()
    %cst_55 = arith.constant dense<0.000000e+00> : vector<2x8x8xf32>
    %183 = tpu.matmul %181, %182, %cst_55 {dimension_numbers = #tpu.dot_dimension_numbers<[2], [2], [1], [1], [0, 0, 0, 1, 1, 1], [0], [0]>} : vector<2x8x16xbf16>, vector<2x8x16xbf16>, vector<2x8x8xf32> -> vector<2x8x8xf32>
    "tpu.trace_stop"() : () -> ()
    %184 = vector.broadcast %39 : vector<2x1x8xf32> to vector<2x8x8xf32>
    %185 = arith.addf %183, %184 : vector<2x8x8xf32>
    %cst_56 = arith.constant dense<0xFF800000> : vector<2x8xf32>
    %186 = vector.multi_reduction <maximumf>, %185, %cst_56 [2] : vector<2x8x8xf32> to vector<2x8xf32>
    %187 = vector.shape_cast %186 : vector<2x8xf32> to vector<2x8x1xf32>
    %188 = vector.broadcast %187 : vector<2x8x1xf32> to vector<2x8x8xf32>
    %189 = arith.subf %185, %188 : vector<2x8x8xf32>
    %190 = math.exp %189 : vector<2x8x8xf32>
    %cst_57 = arith.constant dense<0.000000e+00> : vector<2x8xf32>
    %191 = vector.multi_reduction <add>, %190, %cst_57 [2] : vector<2x8x8xf32> to vector<2x8xf32>
    %192 = vector.shape_cast %191 : vector<2x8xf32> to vector<2x8x1xf32>
    %193 = tpu.reciprocal %192 {approx = true} : vector<2x8x1xf32> -> vector<2x8x1xf32>
    %194 = vector.broadcast %193 : vector<2x8x1xf32> to vector<2x8x8xf32>
    %195 = arith.mulf %190, %194 : vector<2x8x8xf32>
    %196 = arith.truncf %195 : vector<2x8x8xf32> to vector<2x8x8xbf16>
    %197 = vector.extract_strided_slice %37 {offsets = [0, 0, 352], sizes = [2, 8, 16], strides = [1, 1, 1]} : vector<2x8x384xbf16> to vector<2x8x16xbf16>
    "tpu.trace_start"() <{level = 10 : i32, message = "bqk,bkd->bqd"}> : () -> ()
    %cst_58 = arith.constant dense<0.000000e+00> : vector<2x8x16xf32>
    %198 = tpu.matmul %196, %197, %cst_58 {dimension_numbers = #tpu.dot_dimension_numbers<[2], [1], [1], [2], [0, 0, 0, 1, 1, 2], [0], [0]>} : vector<2x8x8xbf16>, vector<2x8x16xbf16>, vector<2x8x16xf32> -> vector<2x8x16xf32>
    "tpu.trace_stop"() : () -> ()
    %199 = vector.shape_cast %198 : vector<2x8x16xf32> to vector<16x16xf32>
    %200 = arith.truncf %199 : vector<16x16xf32> to vector<16x16xbf16>
    %201 = vector.extract_strided_slice %41 {offsets = [96, 0], sizes = [16, 128], strides = [1, 1]} : vector<128x128xbf16> to vector<16x128xbf16>
    %cst_59 = arith.constant dense<0.000000e+00> : vector<16x128xf32>
    %202 = tpu.matmul %200, %201, %cst_59 {dimension_numbers = #tpu.dot_dimension_numbers<[1], [0], [0], [1], [0, 0, 1, 1], [], []>} : vector<16x16xbf16>, vector<16x128xbf16>, vector<16x128xf32> -> vector<16x128xf32>
    %203 = arith.addf %180, %202 : vector<16x128xf32>
    %204 = vector.extract_strided_slice %37 {offsets = [0, 0, 112], sizes = [2, 8, 16], strides = [1, 1, 1]} : vector<2x8x384xbf16> to vector<2x8x16xbf16>
    %205 = vector.extract_strided_slice %37 {offsets = [0, 0, 240], sizes = [2, 8, 16], strides = [1, 1, 1]} : vector<2x8x384xbf16> to vector<2x8x16xbf16>
    "tpu.trace_start"() <{level = 10 : i32, message = "bqd,bkd->bqk"}> : () -> ()
    %cst_60 = arith.constant dense<0.000000e+00> : vector<2x8x8xf32>
    %206 = tpu.matmul %204, %205, %cst_60 {dimension_numbers = #tpu.dot_dimension_numbers<[2], [2], [1], [1], [0, 0, 0, 1, 1, 1], [0], [0]>} : vector<2x8x16xbf16>, vector<2x8x16xbf16>, vector<2x8x8xf32> -> vector<2x8x8xf32>
    "tpu.trace_stop"() : () -> ()
    %207 = vector.broadcast %39 : vector<2x1x8xf32> to vector<2x8x8xf32>
    %208 = arith.addf %206, %207 : vector<2x8x8xf32>
    %cst_61 = arith.constant dense<0xFF800000> : vector<2x8xf32>
    %209 = vector.multi_reduction <maximumf>, %208, %cst_61 [2] : vector<2x8x8xf32> to vector<2x8xf32>
    %210 = vector.shape_cast %209 : vector<2x8xf32> to vector<2x8x1xf32>
    %211 = vector.broadcast %210 : vector<2x8x1xf32> to vector<2x8x8xf32>
    %212 = arith.subf %208, %211 : vector<2x8x8xf32>
    %213 = math.exp %212 : vector<2x8x8xf32>
    %cst_62 = arith.constant dense<0.000000e+00> : vector<2x8xf32>
    %214 = vector.multi_reduction <add>, %213, %cst_62 [2] : vector<2x8x8xf32> to vector<2x8xf32>
    %215 = vector.shape_cast %214 : vector<2x8xf32> to vector<2x8x1xf32>
    %216 = tpu.reciprocal %215 {approx = true} : vector<2x8x1xf32> -> vector<2x8x1xf32>
    %217 = vector.broadcast %216 : vector<2x8x1xf32> to vector<2x8x8xf32>
    %218 = arith.mulf %213, %217 : vector<2x8x8xf32>
    %219 = arith.truncf %218 : vector<2x8x8xf32> to vector<2x8x8xbf16>
    %220 = vector.extract_strided_slice %37 {offsets = [0, 0, 368], sizes = [2, 8, 16], strides = [1, 1, 1]} : vector<2x8x384xbf16> to vector<2x8x16xbf16>
    "tpu.trace_start"() <{level = 10 : i32, message = "bqk,bkd->bqd"}> : () -> ()
    %cst_63 = arith.constant dense<0.000000e+00> : vector<2x8x16xf32>
    %221 = tpu.matmul %219, %220, %cst_63 {dimension_numbers = #tpu.dot_dimension_numbers<[2], [1], [1], [2], [0, 0, 0, 1, 1, 2], [0], [0]>} : vector<2x8x8xbf16>, vector<2x8x16xbf16>, vector<2x8x16xf32> -> vector<2x8x16xf32>
    "tpu.trace_stop"() : () -> ()
    %222 = vector.shape_cast %221 : vector<2x8x16xf32> to vector<16x16xf32>
    %223 = arith.truncf %222 : vector<16x16xf32> to vector<16x16xbf16>
    %224 = vector.extract_strided_slice %41 {offsets = [112, 0], sizes = [16, 128], strides = [1, 1]} : vector<128x128xbf16> to vector<16x128xbf16>
    %cst_64 = arith.constant dense<0.000000e+00> : vector<16x128xf32>
    %225 = tpu.matmul %223, %224, %cst_64 {dimension_numbers = #tpu.dot_dimension_numbers<[1], [0], [0], [1], [0, 0, 1, 1], [], []>} : vector<16x16xbf16>, vector<16x128xbf16>, vector<16x128xf32> -> vector<16x128xf32>
    %226 = arith.addf %203, %225 : vector<16x128xf32>
    %227 = arith.addf %3, %226 : vector<16x128xf32>
    %c0_65 = arith.constant 0 : index
    %c0_66 = arith.constant 0 : index
    %c0_67 = arith.constant 0 : index
    %228 = vector.load %arg9[%c0_65, %c0_66, %c0_67] : memref<1x1x128xf32, #tpu.memory_space<vmem>>, vector<1x1x128xf32>
    %229 = vector.shape_cast %228 : vector<1x1x128xf32> to vector<1x128xf32>
    %230 = vector.broadcast %229 : vector<1x128xf32> to vector<16x128xf32>
    %231 = arith.addf %227, %230 : vector<16x128xf32>
    %c0_68 = arith.constant 0 : index
    %c0_69 = arith.constant 0 : index
    %c0_70 = arith.constant 0 : index
    %232 = vector.load %arg12[%c0_68, %c0_69, %c0_70] : memref<1x1x128xf32, #tpu.memory_space<vmem>>, vector<1x1x128xf32>
    %233 = vector.shape_cast %232 : vector<1x1x128xf32> to vector<1x128xf32>
    %c0_71 = arith.constant 0 : index
    %c0_72 = arith.constant 0 : index
    %c0_73 = arith.constant 0 : index
    %234 = vector.load %arg13[%c0_71, %c0_72, %c0_73] : memref<1x1x128xf32, #tpu.memory_space<vmem>>, vector<1x1x128xf32>
    %235 = vector.shape_cast %234 : vector<1x1x128xf32> to vector<1x128xf32>
    %cst_74 = arith.constant dense<0.000000e+00> : vector<16xf32>
    %236 = vector.multi_reduction <add>, %231, %cst_74 [1] : vector<16x128xf32> to vector<16xf32>
    %237 = vector.shape_cast %236 : vector<16xf32> to vector<16x1xf32>
    %cst_75 = arith.constant 1.280000e+02 : f32
    %238 = vector.broadcast %cst_75 : f32 to vector<16x1xf32>
    %239 = arith.divf %237, %238 : vector<16x1xf32>
    %240 = vector.broadcast %239 : vector<16x1xf32> to vector<16x128xf32>
    %241 = arith.subf %231, %240 : vector<16x128xf32>
    %242 = arith.mulf %241, %241 : vector<16x128xf32>
    %cst_76 = arith.constant dense<0.000000e+00> : vector<16xf32>
    %243 = vector.multi_reduction <add>, %242, %cst_76 [1] : vector<16x128xf32> to vector<16xf32>
    %244 = vector.shape_cast %243 : vector<16xf32> to vector<16x1xf32>
    %cst_77 = arith.constant 1.280000e+02 : f32
    %245 = vector.broadcast %cst_77 : f32 to vector<16x1xf32>
    %246 = arith.divf %244, %245 : vector<16x1xf32>
    %cst_78 = arith.constant 9.99999974E-6 : f32
    %247 = vector.broadcast %cst_78 : f32 to vector<16x1xf32>
    %248 = arith.addf %246, %247 : vector<16x1xf32>
    %249 = math.rsqrt %248 : vector<16x1xf32>
    %250 = vector.broadcast %249 : vector<16x1xf32> to vector<16x128xf32>
    %251 = arith.mulf %241, %250 : vector<16x128xf32>
    %252 = vector.broadcast %233 : vector<1x128xf32> to vector<16x128xf32>
    %253 = arith.mulf %251, %252 : vector<16x128xf32>
    %254 = vector.broadcast %235 : vector<1x128xf32> to vector<16x128xf32>
    %255 = arith.addf %253, %254 : vector<16x128xf32>
    %256 = arith.truncf %255 : vector<16x128xf32> to vector<16x128xbf16>
    %cst_79 = arith.constant 0.000000e+00 : f32
    %257 = vector.broadcast %cst_79 : f32 to vector<16x128xf32>
    %c0_80 = arith.constant 0 : index
    %c0_81 = arith.constant 0 : index
    %c0_82 = arith.constant 0 : index
    %258 = vector.load %arg14[%c0_80, %c0_81, %c0_82] : memref<1x128x2048xbf16, #tpu.memory_space<vmem>>, vector<1x128x512xbf16>
    %259 = vector.shape_cast %258 : vector<1x128x512xbf16> to vector<128x512xbf16>
    %cst_83 = arith.constant dense<0.000000e+00> : vector<16x512xf32>
    %260 = tpu.matmul %256, %259, %cst_83 {dimension_numbers = #tpu.dot_dimension_numbers<[1], [0], [0], [1], [0, 0, 1, 1], [], []>} : vector<16x128xbf16>, vector<128x512xbf16>, vector<16x512xf32> -> vector<16x512xf32>
    %c0_84 = arith.constant 0 : index
    %c0_85 = arith.constant 0 : index
    %c0_86 = arith.constant 0 : index
    %261 = vector.load %arg15[%c0_84, %c0_85, %c0_86] : memref<1x1x2048xf32, #tpu.memory_space<vmem>>, vector<1x1x512xf32>
    %262 = vector.shape_cast %261 : vector<1x1x512xf32> to vector<1x512xf32>
    %263 = vector.broadcast %262 : vector<1x512xf32> to vector<16x512xf32>
    %264 = arith.addf %260, %263 : vector<16x512xf32>
    %cst_87 = arith.constant 0.000000e+00 : f32
    %265 = vector.broadcast %cst_87 : f32 to vector<16x512xf32>
    %266 = arith.maximumf %264, %265 : vector<16x512xf32>
    %267 = arith.truncf %266 : vector<16x512xf32> to vector<16x512xbf16>
    %c0_88 = arith.constant 0 : index
    %c0_89 = arith.constant 0 : index
    %c0_90 = arith.constant 0 : index
    %268 = vector.load %arg16[%c0_88, %c0_89, %c0_90] : memref<1x2048x128xbf16, #tpu.memory_space<vmem>>, vector<1x512x128xbf16>
    %269 = vector.shape_cast %268 : vector<1x512x128xbf16> to vector<512x128xbf16>
    %cst_91 = arith.constant dense<0.000000e+00> : vector<16x128xf32>
    %270 = tpu.matmul %267, %269, %cst_91 {dimension_numbers = #tpu.dot_dimension_numbers<[1], [0], [0], [1], [0, 0, 1, 1], [], []>} : vector<16x512xbf16>, vector<512x128xbf16>, vector<16x128xf32> -> vector<16x128xf32>
    %271 = arith.addf %257, %270 : vector<16x128xf32>
    %c0_92 = arith.constant 0 : index
    %c0_93 = arith.constant 0 : index
    %c512 = arith.constant 512 : index
    %272 = vector.load %arg14[%c0_92, %c0_93, %c512] : memref<1x128x2048xbf16, #tpu.memory_space<vmem>>, vector<1x128x512xbf16>
    %273 = vector.shape_cast %272 : vector<1x128x512xbf16> to vector<128x512xbf16>
    %cst_94 = arith.constant dense<0.000000e+00> : vector<16x512xf32>
    %274 = tpu.matmul %256, %273, %cst_94 {dimension_numbers = #tpu.dot_dimension_numbers<[1], [0], [0], [1], [0, 0, 1, 1], [], []>} : vector<16x128xbf16>, vector<128x512xbf16>, vector<16x512xf32> -> vector<16x512xf32>
    %c0_95 = arith.constant 0 : index
    %c0_96 = arith.constant 0 : index
    %c512_97 = arith.constant 512 : index
    %275 = vector.load %arg15[%c0_95, %c0_96, %c512_97] : memref<1x1x2048xf32, #tpu.memory_space<vmem>>, vector<1x1x512xf32>
    %276 = vector.shape_cast %275 : vector<1x1x512xf32> to vector<1x512xf32>
    %277 = vector.broadcast %276 : vector<1x512xf32> to vector<16x512xf32>
    %278 = arith.addf %274, %277 : vector<16x512xf32>
    %cst_98 = arith.constant 0.000000e+00 : f32
    %279 = vector.broadcast %cst_98 : f32 to vector<16x512xf32>
    %280 = arith.maximumf %278, %279 : vector<16x512xf32>
    %281 = arith.truncf %280 : vector<16x512xf32> to vector<16x512xbf16>
    %c0_99 = arith.constant 0 : index
    %c512_100 = arith.constant 512 : index
    %c0_101 = arith.constant 0 : index
    %282 = vector.load %arg16[%c0_99, %c512_100, %c0_101] : memref<1x2048x128xbf16, #tpu.memory_space<vmem>>, vector<1x512x128xbf16>
    %283 = vector.shape_cast %282 : vector<1x512x128xbf16> to vector<512x128xbf16>
    %cst_102 = arith.constant dense<0.000000e+00> : vector<16x128xf32>
    %284 = tpu.matmul %281, %283, %cst_102 {dimension_numbers = #tpu.dot_dimension_numbers<[1], [0], [0], [1], [0, 0, 1, 1], [], []>} : vector<16x512xbf16>, vector<512x128xbf16>, vector<16x128xf32> -> vector<16x128xf32>
    %285 = arith.addf %271, %284 : vector<16x128xf32>
    %c0_103 = arith.constant 0 : index
    %c0_104 = arith.constant 0 : index
    %c1024 = arith.constant 1024 : index
    %286 = vector.load %arg14[%c0_103, %c0_104, %c1024] : memref<1x128x2048xbf16, #tpu.memory_space<vmem>>, vector<1x128x512xbf16>
    %287 = vector.shape_cast %286 : vector<1x128x512xbf16> to vector<128x512xbf16>
    %cst_105 = arith.constant dense<0.000000e+00> : vector<16x512xf32>
    %288 = tpu.matmul %256, %287, %cst_105 {dimension_numbers = #tpu.dot_dimension_numbers<[1], [0], [0], [1], [0, 0, 1, 1], [], []>} : vector<16x128xbf16>, vector<128x512xbf16>, vector<16x512xf32> -> vector<16x512xf32>
    %c0_106 = arith.constant 0 : index
    %c0_107 = arith.constant 0 : index
    %c1024_108 = arith.constant 1024 : index
    %289 = vector.load %arg15[%c0_106, %c0_107, %c1024_108] : memref<1x1x2048xf32, #tpu.memory_space<vmem>>, vector<1x1x512xf32>
    %290 = vector.shape_cast %289 : vector<1x1x512xf32> to vector<1x512xf32>
    %291 = vector.broadcast %290 : vector<1x512xf32> to vector<16x512xf32>
    %292 = arith.addf %288, %291 : vector<16x512xf32>
    %cst_109 = arith.constant 0.000000e+00 : f32
    %293 = vector.broadcast %cst_109 : f32 to vector<16x512xf32>
    %294 = arith.maximumf %292, %293 : vector<16x512xf32>
    %295 = arith.truncf %294 : vector<16x512xf32> to vector<16x512xbf16>
    %c0_110 = arith.constant 0 : index
    %c1024_111 = arith.constant 1024 : index
    %c0_112 = arith.constant 0 : index
    %296 = vector.load %arg16[%c0_110, %c1024_111, %c0_112] : memref<1x2048x128xbf16, #tpu.memory_space<vmem>>, vector<1x512x128xbf16>
    %297 = vector.shape_cast %296 : vector<1x512x128xbf16> to vector<512x128xbf16>
    %cst_113 = arith.constant dense<0.000000e+00> : vector<16x128xf32>
    %298 = tpu.matmul %295, %297, %cst_113 {dimension_numbers = #tpu.dot_dimension_numbers<[1], [0], [0], [1], [0, 0, 1, 1], [], []>} : vector<16x512xbf16>, vector<512x128xbf16>, vector<16x128xf32> -> vector<16x128xf32>
    %299 = arith.addf %285, %298 : vector<16x128xf32>
    %c0_114 = arith.constant 0 : index
    %c0_115 = arith.constant 0 : index
    %c1536 = arith.constant 1536 : index
    %300 = vector.load %arg14[%c0_114, %c0_115, %c1536] : memref<1x128x2048xbf16, #tpu.memory_space<vmem>>, vector<1x128x512xbf16>
    %301 = vector.shape_cast %300 : vector<1x128x512xbf16> to vector<128x512xbf16>
    %cst_116 = arith.constant dense<0.000000e+00> : vector<16x512xf32>
    %302 = tpu.matmul %256, %301, %cst_116 {dimension_numbers = #tpu.dot_dimension_numbers<[1], [0], [0], [1], [0, 0, 1, 1], [], []>} : vector<16x128xbf16>, vector<128x512xbf16>, vector<16x512xf32> -> vector<16x512xf32>
    %c0_117 = arith.constant 0 : index
    %c0_118 = arith.constant 0 : index
    %c1536_119 = arith.constant 1536 : index
    %303 = vector.load %arg15[%c0_117, %c0_118, %c1536_119] : memref<1x1x2048xf32, #tpu.memory_space<vmem>>, vector<1x1x512xf32>
    %304 = vector.shape_cast %303 : vector<1x1x512xf32> to vector<1x512xf32>
    %305 = vector.broadcast %304 : vector<1x512xf32> to vector<16x512xf32>
    %306 = arith.addf %302, %305 : vector<16x512xf32>
    %cst_120 = arith.constant 0.000000e+00 : f32
    %307 = vector.broadcast %cst_120 : f32 to vector<16x512xf32>
    %308 = arith.maximumf %306, %307 : vector<16x512xf32>
    %309 = arith.truncf %308 : vector<16x512xf32> to vector<16x512xbf16>
    %c0_121 = arith.constant 0 : index
    %c1536_122 = arith.constant 1536 : index
    %c0_123 = arith.constant 0 : index
    %310 = vector.load %arg16[%c0_121, %c1536_122, %c0_123] : memref<1x2048x128xbf16, #tpu.memory_space<vmem>>, vector<1x512x128xbf16>
    %311 = vector.shape_cast %310 : vector<1x512x128xbf16> to vector<512x128xbf16>
    %cst_124 = arith.constant dense<0.000000e+00> : vector<16x128xf32>
    %312 = tpu.matmul %309, %311, %cst_124 {dimension_numbers = #tpu.dot_dimension_numbers<[1], [0], [0], [1], [0, 0, 1, 1], [], []>} : vector<16x512xbf16>, vector<512x128xbf16>, vector<16x128xf32> -> vector<16x128xf32>
    %313 = arith.addf %299, %312 : vector<16x128xf32>
    %314 = arith.addf %231, %313 : vector<16x128xf32>
    %c0_125 = arith.constant 0 : index
    %c0_126 = arith.constant 0 : index
    %c0_127 = arith.constant 0 : index
    %315 = vector.load %arg17[%c0_125, %c0_126, %c0_127] : memref<1x1x128xf32, #tpu.memory_space<vmem>>, vector<1x1x128xf32>
    %316 = vector.shape_cast %315 : vector<1x1x128xf32> to vector<1x128xf32>
    %317 = vector.broadcast %316 : vector<1x128xf32> to vector<16x128xf32>
    %318 = arith.addf %314, %317 : vector<16x128xf32>
    %c0_128 = arith.constant 0 : index
    %c0_129 = arith.constant 0 : index
    %319 = vector.load %arg21[%c0_128, %c0_129] : memref<16x128xf32, #tpu.memory_space<vmem>>, vector<16x128xf32>
    tpu.vector_store %arg21[%c0_128, %c0_129], %318 {strides = array<i32>} : memref<16x128xf32, #tpu.memory_space<vmem>>, vector<16x128xf32>,
    %c1_i32 = arith.constant 1 : i32
    %320 = arith.cmpi eq, %arg0, %c1_i32 : i32
    %321 = arith.extui %320 : i1 to i32
    %c0_i32_130 = arith.constant 0 : i32
    %322 = arith.cmpi ne, %321, %c0_i32_130 : i32
    scf.if %322 {
      %323 = arith.truncf %318 : vector<16x128xf32> to vector<16x128xbf16>
      %c0_131 = arith.constant 0 : index
      %c0_132 = arith.constant 0 : index
      %324 = vector.load %arg18[%c0_131, %c0_132] : memref<128x128xbf16, #tpu.memory_space<vmem>>, vector<128x128xbf16>
      %cst_133 = arith.constant dense<0.000000e+00> : vector<16x128xf32>
      %325 = tpu.matmul %323, %324, %cst_133 {dimension_numbers = #tpu.dot_dimension_numbers<[1], [0], [0], [1], [0, 0, 1, 1], [], []>} : vector<16x128xbf16>, vector<128x128xbf16>, vector<16x128xf32> -> vector<16x128xf32>
      %c0_134 = arith.constant 0 : index
      %c0_135 = arith.constant 0 : index
      %326 = vector.load %arg19[%c0_134, %c0_135] : memref<1x128xf32, #tpu.memory_space<vmem>>, vector<1x128xf32>
      %327 = vector.broadcast %326 : vector<1x128xf32> to vector<16x128xf32>
      %328 = arith.addf %325, %327 : vector<16x128xf32>
      %329 = vector.shape_cast %328 : vector<16x128xf32> to vector<2x8x128xf32>
      %c0_136 = arith.constant 0 : index
      %c0_137 = arith.constant 0 : index
      %c0_138 = arith.constant 0 : index
      %330 = vector.load %arg20[%c0_136, %c0_137, %c0_138] : memref<2x8x128xf32, #tpu.memory_space<vmem>>, vector<2x8x128xf32>
      tpu.vector_store %arg20[%c0_136, %c0_137, %c0_138], %329 {strides = array<i32>} : memref<2x8x128xf32, #tpu.memory_space<vmem>>, vector<2x8x128xf32>,
    } else {
    }
    return
  }
  func.func @transform_0(%arg0: i32) -> (i32, i32, i32) {
    %c0_i32 = arith.constant 0 : i32
    %c0_i32_0 = arith.constant 0 : i32
    %c0_i32_1 = arith.constant 0 : i32
    %c0_i32_2 = arith.constant 0 : i32
    return %c0_i32, %c0_i32_0, %c0_i32_1 : i32, i32, i32
  }
  func.func @transform_1(%arg0: i32) -> (i32, i32) {
    %c0_i32 = arith.constant 0 : i32
    %c0_i32_0 = arith.constant 0 : i32
    %c0_i32_1 = arith.constant 0 : i32
    return %c0_i32, %c0_i32_0 : i32, i32
  }
  func.func @transform_2(%arg0: i32) -> (i32, i32) {
    %c0_i32 = arith.constant 0 : i32
    %c0_i32_0 = arith.constant 0 : i32
    %c0_i32_1 = arith.constant 0 : i32
    return %c0_i32, %c0_i32_0 : i32, i32
  }
  func.func @transform_3(%arg0: i32) -> (i32, i32) {
    %c0_i32 = arith.constant 0 : i32
    %c0_i32_0 = arith.constant 0 : i32
    %c0_i32_1 = arith.constant 0 : i32
    return %c0_i32, %c0_i32_0 : i32, i32
  }
  func.func @transform_4(%arg0: i32) -> (i32, i32, i32) {
    %c0_i32 = arith.constant 0 : i32
    %c0_i32_0 = arith.constant 0 : i32
    %c0_i32_1 = arith.constant 0 : i32
    %c0_i32_2 = arith.constant 0 : i32
    return %c0_i32, %c0_i32_0, %c0_i32_1 : i32, i32, i32
  }
  func.func @transform_5(%arg0: i32) -> (i32, i32, i32) {
    %c0_i32 = arith.constant 0 : i32
    %c0_i32_0 = arith.constant 0 : i32
    %c0_i32_1 = arith.constant 0 : i32
    return %arg0, %c0_i32, %c0_i32_0 : i32, i32, i32
  }
  func.func @transform_6(%arg0: i32) -> (i32, i32, i32) {
    %c0_i32 = arith.constant 0 : i32
    %c0_i32_0 = arith.constant 0 : i32
    %c0_i32_1 = arith.constant 0 : i32
    return %arg0, %c0_i32, %c0_i32_0 : i32, i32, i32
  }
  func.func @transform_7(%arg0: i32) -> (i32, i32, i32) {
    %c0_i32 = arith.constant 0 : i32
    %c0_i32_0 = arith.constant 0 : i32
    %c0_i32_1 = arith.constant 0 : i32
    return %arg0, %c0_i32, %c0_i32_0 : i32, i32, i32
  }
  func.func @transform_8(%arg0: i32) -> (i32, i32, i32) {
    %c0_i32 = arith.constant 0 : i32
    %c0_i32_0 = arith.constant 0 : i32
    %c0_i32_1 = arith.constant 0 : i32
    return %arg0, %c0_i32, %c0_i32_0 : i32, i32, i32
  }
  func.func @transform_9(%arg0: i32) -> (i32, i32, i32) {
    %c0_i32 = arith.constant 0 : i32
    %c0_i32_0 = arith.constant 0 : i32
    %c0_i32_1 = arith.constant 0 : i32
    return %arg0, %c0_i32, %c0_i32_0 : i32, i32, i32
  }
  func.func @transform_10(%arg0: i32) -> (i32, i32, i32) {
    %c0_i32 = arith.constant 0 : i32
    %c0_i32_0 = arith.constant 0 : i32
    %c0_i32_1 = arith.constant 0 : i32
    return %arg0, %c0_i32, %c0_i32_0 : i32, i32, i32
  }
  func.func @transform_11(%arg0: i32) -> (i32, i32, i32) {
    %c0_i32 = arith.constant 0 : i32
    %c0_i32_0 = arith.constant 0 : i32
    %c0_i32_1 = arith.constant 0 : i32
    return %arg0, %c0_i32, %c0_i32_0 : i32, i32, i32
  }
  func.func @transform_12(%arg0: i32) -> (i32, i32, i32) {
    %c0_i32 = arith.constant 0 : i32
    %c0_i32_0 = arith.constant 0 : i32
    %c0_i32_1 = arith.constant 0 : i32
    return %arg0, %c0_i32, %c0_i32_0 : i32, i32, i32
  }
  func.func @transform_13(%arg0: i32) -> (i32, i32, i32) {
    %c0_i32 = arith.constant 0 : i32
    %c0_i32_0 = arith.constant 0 : i32
    %c0_i32_1 = arith.constant 0 : i32
    return %arg0, %c0_i32, %c0_i32_0 : i32, i32, i32
  }
  func.func @transform_14(%arg0: i32) -> (i32, i32, i32) {
    %c0_i32 = arith.constant 0 : i32
    %c0_i32_0 = arith.constant 0 : i32
    %c0_i32_1 = arith.constant 0 : i32
    return %arg0, %c0_i32, %c0_i32_0 : i32, i32, i32
  }
  func.func @transform_15(%arg0: i32) -> (i32, i32, i32) {
    %c0_i32 = arith.constant 0 : i32
    %c0_i32_0 = arith.constant 0 : i32
    %c0_i32_1 = arith.constant 0 : i32
    return %arg0, %c0_i32, %c0_i32_0 : i32, i32, i32
  }
  func.func @transform_16(%arg0: i32) -> (i32, i32, i32) {
    %c0_i32 = arith.constant 0 : i32
    %c0_i32_0 = arith.constant 0 : i32
    %c0_i32_1 = arith.constant 0 : i32
    return %arg0, %c0_i32, %c0_i32_0 : i32, i32, i32
  }
  func.func @transform_17(%arg0: i32) -> (i32, i32) {
    %c0_i32 = arith.constant 0 : i32
    %c0_i32_0 = arith.constant 0 : i32
    %c0_i32_1 = arith.constant 0 : i32
    return %c0_i32, %c0_i32_0 : i32, i32
  }
  func.func @transform_18(%arg0: i32) -> (i32, i32) {
    %c0_i32 = arith.constant 0 : i32
    %c0_i32_0 = arith.constant 0 : i32
    %c0_i32_1 = arith.constant 0 : i32
    return %c0_i32, %c0_i32_0 : i32, i32
  }
  func.func @transform_19(%arg0: i32) -> (i32, i32, i32) {
    %c0_i32 = arith.constant 0 : i32
    %c0_i32_0 = arith.constant 0 : i32
    %c0_i32_1 = arith.constant 0 : i32
    %c0_i32_2 = arith.constant 0 : i32
    return %c0_i32, %c0_i32_0, %c0_i32_1 : i32, i32, i32
  }
}

</mosaic_0001>

<bundles_post_ra>
// kernel: tpu_custom_call.1
= control target key start
LH: loop header
LB: loop body
LE: loop exit
PB: predicated region body
PF: predicated region fallthrough
CT: control target
= control target key end

     0   :  { %s10476_s0 = inlined_call_operand.hbm [shape: f32[2,8,8], index: 0, kind: input, shape index: {}]   ;;  %s10477_s1 = inlined_call_operand.hbm [shape: f32[2,8], index: 1, kind: input, shape index: {}]   ;;  %s10478_s2 = inlined_call_operand.hbm [shape: f32[8,128], index: 2, kind: input, shape index: {}]   ;;  %s10479_s3 = inlined_call_operand.hbm [shape: f32[1,128], index: 3, kind: input, shape index: {}]   ;;  %s10480_s4 = inlined_call_operand.hbm [shape: f32[1,8,128], index: 4, kind: input, shape index: {}]   ;;  %s10481_s5 = inlined_call_operand.hbm [shape: bf16[2,128,384], index: 5, kind: input, shape index: {}]   ;;  %s10482_s6 = inlined_call_operand.hbm [shape: f32[2,1,384], index: 6, kind: input, shape index: {}]   ;;  %s10483_s7 = inlined_call_operand.hbm [shape: bf16[2,128,128], index: 7, kind: input, shape index: {}]   ;;  %s10484_s8 = inlined_call_operand.hbm [shape: f32[2,1,128], index: 8, kind: input, shape index: {}]   ;;  %s10485_s9 = inlined_call_operand.hbm [shape: f32[2,1,128], index: 9, kind: input, shape index: {}]   ;;  %s10486_s10 = inlined_call_operand.hbm [shape: f32[2,1,128], index: 10, kind: input, shape index: {}]   ;;  %s10487_s11 = inlined_call_operand.hbm [shape: f32[2,1,128], index: 11, kind: input, shape index: {}]   ;;  %s10488_s12 = inlined_call_operand.hbm [shape: f32[2,1,128], index: 12, kind: input, shape index: {}]   ;;  %s10489_s13 = inlined_call_operand.hbm [shape: bf16[2,128,2048], index: 13, kind: input, shape index: {}]   ;;  %s10490_s14 = inlined_call_operand.hbm [shape: f32[2,1,2048], index: 14, kind: input, shape index: {}]   ;;  %s10491_s15 = inlined_call_operand.hbm [shape: bf16[2,2048,128], index: 15, kind: input, shape index: {}]   ;;  %s10492_s16 = inlined_call_operand.hbm [shape: f32[2,1,128], index: 16, kind: input, shape index: {}]   ;;  %s10493_s17 = inlined_call_operand.vmem [shape: bf16[128,128], index: 17, kind: input, shape index: {}]   ;;  %s10494_s18 = inlined_call_operand.vmem [shape: f32[1,128], index: 18, kind: input, shape index: {}]   ;;  %s10495_s19 = inlined_call_operand.hbm [shape: f32[2,8,128], index: 19, kind: output, shape index: {}]  }
   0x1   :  { %10535 = sst [smem:[#allocation48_spill]] %s10476_s0 }
   0x2   :  { %10536 = sst [smem:[#allocation49_spill]] %s10477_s1 }
   0x3   :  { %10537 = sst [smem:[#allocation50_spill]] %s10478_s2 }
   0x4   :  { %10538 = sst [smem:[#allocation51_spill]] %s10479_s3 }
   0x5   :  { %10539 = sst [smem:[#allocation52_spill]] %s10481_s5 }
   0x6   :  { %10540 = sst [smem:[#allocation53_spill]] %s10483_s7 }
   0x7   :  { %10541 = sst [smem:[#allocation54_spill]] %s10485_s9 }
   0x8   :  { %10542 = sst [smem:[#allocation55_spill]] %s10487_s11 }
   0x9   :  { %10543 = sst [smem:[#allocation56_spill]] %s10489_s13 }
   0xa   :  { %10544 = sst [smem:[#allocation57_spill]] %s10490_s14 }
   0xb   :  { %10545 = sst [smem:[#allocation58_spill]] %s10491_s15 }
   0xc   :  { %10546 = sst [smem:[#allocation59_spill]] %s10492_s16 }
   0xd   :  { %10547 = sst [smem:[#allocation60_spill]] %s10493_s17 }
   0xe   :  { %10548 = sst [smem:[#allocation61_spill]] %s10494_s18 }
   0xf   :  { %10549 = sst [smem:[#allocation62_spill]] %s10495_s19 }
  0x10   :  { %24 = vsyncpa [#allocation4], 0 }
  0x11   :  { %25 = vsyncpa [#allocation7], 0 }
  0x12   :  { %26 = vsyncpa [#allocation10], 0 }
  0x13   :  { %27 = vsyncpa [#allocation13], 0 }
  0x14   :  { %29 = vsyncpa [#allocation13 + $0x1], 0 }
  0x15   :  { %30 = vsyncpa [#allocation16], 0 }
  0x16   :  { %32 = vsyncpa [#allocation16 + $0x1], 0 }
  0x17   :  { %33 = vsyncpa [#allocation19], 0 }
  0x18   :  { %35 = vsyncpa [#allocation19 + $0x1], 0 }
  0x19   :  { %36 = vsyncpa [#allocation22], 0 }
  0x1a   :  { %38 = vsyncpa [#allocation22 + $0x1], 0 }
  0x1b   :  { %39 = vsyncpa [#allocation25], 0 }
  0x1c   :  { %41 = vsyncpa [#allocation25 + $0x1], 0 }
  0x1d   :  { %42 = vsyncpa [#allocation28], 0 }
  0x1e   :  { %44 = vsyncpa [#allocation28 + $0x1], 0 }
  0x1f   :  { %45 = vsyncpa [#allocation5], 0  ;;  %s8969_s0 = smov 0   ;;  %s8971_s30 = smov 0  }
  0x20   :  { %s8973_s20 = smov 0   ;;  %s8975_s21 = smov 0  }
  0x21 LB: > { %10550 = sst [smem:[#allocation41_spill]] %s8819_s30  ;;  %s8988_s1 = sadd.s32 4294967295, %s8827_s21   ;;  %s8827_s21 = sphi %s8975_s21, %s10613_s21   ;;  %s8823_s20 = sphi %s8973_s20, %s10616_s20   ;;  %s8819_s30 = sphi %s8971_s30, %s10615_s30   ;;  %s8815_s0 = sphi %s8969_s0, %s10614_s0  }
  0x22   : > { %10551 = sst [smem:[#allocation42_spill]] %s8823_s20  ;;  %s8991_s22 = sadd.s32 1, %s8827_s21  }
  0x23   : > { %10552 = sst [smem:[#allocation43_spill]] %s8988_s1  ;;  %s160_s2 = ssub.s32 %s8827_s21, %s8991_s22 }
  0x24   : > { %10553 = sst [smem:[#allocation44_spill]] %s8991_s22  ;;  %s163_s23 = sadd.s32 1, %s8823_s20 }
  0x25   : > { %p161_p0 = scmp.eq.s32.totalorder %s160_s2, 0  ;;  %p170_p1 = scmp.ne.s32.totalorder %s8823_s20, %s8819_s30 }
  0x26   : > { %p171_p2 = scmp.eq.s32.totalorder %s8827_s21, 0  ;;  %p176_p3 = scmp.ne.s32.totalorder %s8819_s30, %s8815_s0 }
  0x27   : > { %s9001_s24 = scalar_select %p161_p0, %s8823_s20, %s163_s23  }
  0x28   : > { %p9003_p4 = por %p171_p2, %p170_p1  ;;  %p10507_p5 = scmp.eq.s32.totalorder %s8988_s1, 0 }
  0x29   : > { %10554 = sst [smem:[#allocation45_spill]] %s9001_s24  ;;  %p6833_p6 = scmp.ge.s32.totalorder %s8827_s21, 1 }
  0x2a   : > { %p536_p7 = scmp.lt.s32.totalorder %s8827_s21, 3  ;;  %p9012_p8 = por %p10507_p5, %p176_p3 }
  0x2b   : > { %s8829_s27 = smov [#allocation6]   ;;  %p7913_p12 = scmp.lt.s32.totalorder %s8827_s21, 2 }
  0x2c   : > { %s10556_s3 = scalar_select %p9012_p8, 1, 0 }
  0x2d   : > { %p9017_p10 = pnand %p6833_p6, %p536_p7  ;;  %s562_s28 = sshll.u32 %s8829_s27, 4  ;;  %s563_s28 = int_to_ptr.vmem [resolvable:$true] %s562_s28 }
  0x2e   : > { %10557 = sst [smem:[#allocation46_spill]] %s10556_s3  ;;  %s9025_s29 = sand.u32 1, %s8823_s20  }
  0x2f   : > { %s10558_s26 = scalar_select %p9017_p10, 1, 0 }
  0x30   : > { %p7855_p11 = pneg %p9017_p10  ;;  %p9035_p0 = pnand %p7913_p12, %p9003_p4 }
  0x31   : > { %10559 = sst [smem:[#allocation47_spill]] %s10558_s26  ;;  %s8830_s23 = smov [#allocation9]  }
  0x32   : > { %p9029_p13 = pnand %p7855_p11, %p10507_p5  ;;  %s584_s24 = sshll.u32 %s8830_s23, 4  ;;  %s9039_s24 = int_to_ptr.vmem [resolvable:$true] %s584_s24 }
  0x33   : > { %s10561_s2 = scalar_select %p9035_p0, 1, 0 }
  0x34   : > { %s10560_s0 = scalar_select %p9029_p13, 1, 0 }
  0x35   : > { %s10562_s19 = sld [smem:[#allocation49_spill]]  ;;  %p9049_p2 = pneg %p9029_p13 }
  0x37   : > { %s10563_s25 = scalar_select %p9049_p2, 1, 0 }
  0x3b   : > { %s8231_s20 = scalar_lea.hbm %s10562_s19, 32 }
  0x3c   : > { %p8232_p1 = scmp.ne.s32.totalorder %s10562_s19, %s8231_s20  ;;  %p8238_p6 = scmp.lt.u32.totalorder %s8231_s20, %s10562_s19 }
  0x3e   : > { %p8234_p3 = pnand %p9049_p2, %p8232_p1 }
  0x40   : > { %p8235_p4 = pneg %p8234_p3 }
  0x42   : > { %p8240_p7 = pnand %p8238_p6, %p8235_p4 }
  0x44   : > { %8243 = shalt.err (!%p8240_p7)
}
  0x45   : > { %s8244_s22 = scalar_lea.vmem %s563_s28, 32  ;;  %p8252_p5 = scmp.lt.s32.totalorder %s563_s28, %s563_s28 }
  0x46   : > { %p8245_p11 = scmp.ne.s32.totalorder %s563_s28, %s8244_s22  ;;  %p8253_p8 = scmp.lt.s32.totalorder %s8244_s22, %s8244_s22 }
  0x48   : > { %p8247_p12 = pnand %p8245_p11, %p9049_p2  ;;  %p8254_p10 = por %p8253_p8, %p8252_p5 }
  0x4a   : > { %p8248_p9 = pneg %p8247_p12 }
  0x4c   : > { %p8255_p0 = pnand %p8254_p10, %p8248_p9 }
  0x4e   : > { %8258 = shalt.err (!%p8255_p0)
}
  0x4f   : > { %7861 = dma.hbm_to_vmem [thread:$0]  (!%p9029_p13), %s10562_s19, 32, %s563_s28, [#allocation7]  }
  0x50   : > { %s9066_s20 = sand.u32 1, %s8827_s21   ;;  %s10564_s23 = sld [smem:[#allocation51_spill]] }
  0x56   : > { %s8259_s30 = scalar_lea.hbm %s10564_s23, 16 }
  0x57   : > { %p8260_p5 = scmp.ne.s32.totalorder %s10564_s23, %s8259_s30  ;;  %p8266_p10 = scmp.lt.u32.totalorder %s8259_s30, %s10564_s23 }
  0x59   : > { %p8262_p8 = pnand %p8260_p5, %p9049_p2 }
  0x5b   : > { %p8263_p9 = pneg %p8262_p8 }
  0x5d   : > { %p8268_p0 = pnand %p8266_p10, %p8263_p9 }
  0x5f   : > { %8271 = shalt.err (!%p8268_p0)
}
  0x60   : > { %s8272_s28 = scalar_lea.vmem %s9039_s24, 16  ;;  %s8279_s1 = scalar_lea.vmem %s9039_s24, 32 }
  0x61   : > { %p8273_p1 = scmp.ne.s32.totalorder %s9039_s24, %s8272_s28  ;;  %p8280_p6 = scmp.lt.s32.totalorder %s9039_s24, %s9039_s24 }
  0x62   : > { %p8281_p7 = scmp.lt.s32.totalorder %s8279_s1, %s8272_s28 }
  0x63   : > { %p8275_p3 = pnand %p8273_p1, %p9049_p2 }
  0x64   : > { %p8282_p11 = por %p8281_p7, %p8280_p6 }
  0x65   : > { %p8276_p4 = pneg %p8275_p3 }
  0x67   : > { %p8283_p12 = pnand %p8282_p11, %p8276_p4 }
  0x69   : > { %8286 = shalt.err (!%p8283_p12)
}
  0x6a   : > { %7867 = dma.hbm_to_vmem [thread:$0]  (!%p9029_p13), %s10564_s23, 16, %s9039_s24, [#allocation10]  }
  0x6b   : > { %s7801_s26 = smul.u32 192, %s9025_s29  ;;  %s10565_s5 = sld [smem:[#allocation52_spill]] }
  0x6c   : > { %s7802_s17 = smul.u32 3072, %s8827_s21  ;;  %s10525_s1 = scalar_lea.sflag [#allocation13], %s9066_s20 }
  0x6d   : > { %s616_s22 = scalar_lea.vmem [#allocation12], %s7801_s26  ;;  %p10566_p8 = scmp.ne.s32.totalorder %s10561_s2, 0 }
  0x6e   : > { %s623_s28 = sshll.u32 %s616_s22, 4  ;;  %s9099_s28 = int_to_ptr.vmem [resolvable:$true] %s623_s28 }
  0x6f   : > { %p9106_p9 = pneg %p10566_p8 }
  0x71   : > { %s9097_s27 = scalar_lea.hbm %s10565_s5, %s7802_s17  ;;  %s8292_s18 = scalar_lea.hbm %s10565_s5, 6144 }
  0x72   : > { %s8287_s16 = scalar_lea.hbm %s9097_s27, 3072  ;;  %p8293_p1 = scmp.lt.u32.totalorder %s9097_s27, %s10565_s5 }
  0x73   : > { %p8288_p5 = scmp.ne.s32.totalorder %s9097_s27, %s8287_s16  ;;  %p8294_p3 = scmp.lt.u32.totalorder %s8292_s18, %s8287_s16 }
  0x74   : > { %s10567_s24 = scalar_select %p9106_p9, 1, 0 }
  0x75   : > { %p8290_p10 = pnand %p9106_p9, %p8288_p5  ;;  %p8295_p4 = por %p8294_p3, %p8293_p1 }
  0x76   : > { %p8296_p6 = scmp.lt.u32.totalorder %s8287_s16, %s9097_s27 }
  0x77   : > { %p8291_p0 = pneg %p8290_p10 }
  0x78   : > { %p8297_p7 = por %p8296_p6, %p8295_p4 }
  0x7a   : > { %p8298_p11 = pnand %p8297_p7, %p8291_p0 }
  0x7c   : > { %8301 = shalt.err (!%p8298_p11)
}
  0x7d   : > { %s8302_s22 = scalar_lea.vmem %s9099_s28, 3072  ;;  %s8831_s30 = smov [#allocation12]  }
  0x7e   : > { %p8303_p12 = scmp.ne.s32.totalorder %s9099_s28, %s8302_s22  ;;  %s8307_s17 = sshll.u32 %s8831_s30, 4  ;;  %s8308_s17 = int_to_ptr.vmem [resolvable:$false] %s8307_s17 }
  0x7f   : > { %s8309_s26 = scalar_lea.vmem %s8308_s17, 6144  ;;  %p8310_p13 = scmp.lt.s32.totalorder %s9099_s28, %s8308_s17 }
  0x80   : > { %p8305_p5 = pnand %p8303_p12, %p9106_p9  ;;  %p8311_p2 = scmp.lt.s32.totalorder %s8309_s26, %s8302_s22 }
  0x82   : > { %p8306_p10 = pneg %p8305_p5  ;;  %p8312_p1 = por %p8311_p2, %p8310_p13 }
  0x84   : > { %p8313_p3 = pnand %p8312_p1, %p8306_p10 }
  0x86   : > { %8316 = shalt.err (!%p8313_p3)
}
  0x87   : > { %s8832_s16 = smov 192   ;;  %s8833_s18 = smov 12  }
  0x88   : > { %7874 = dma.hbm_to_vmem [thread:$0]  (!%p10566_p8), %s9097_s27, 3072, %s9099_s28, %s10525_s1, %s8832_s16, %s8832_s16, %s8833_s18  }
  0x89   : > { %s6842_s3 = sshll.u32 %s9025_s29, 6  ;;  %s7229_s30 = sshll.u32 %s8827_s21, 10 }
  0x8a   : > { %s10568_s7 = sld [smem:[#allocation53_spill]]  ;;  %s656_s5 = scalar_lea.vmem [#allocation15], %s6842_s3 }
  0x8b   : > { %s663_s19 = sshll.u32 %s656_s5, 4  ;;  %s10524_s23 = scalar_lea.sflag [#allocation16], %s9066_s20  ;;  %s9138_s19 = int_to_ptr.vmem [resolvable:$true] %s663_s19 }
  0x90   : > { %s9136_s26 = scalar_lea.hbm %s10568_s7, %s7229_s30  ;;  %s8322_s16 = scalar_lea.hbm %s10568_s7, 2048 }
  0x91   : > { %s8317_s14 = scalar_lea.hbm %s9136_s26, 1024  ;;  %p8323_p4 = scmp.lt.u32.totalorder %s9136_s26, %s10568_s7 }
  0x92   : > { %p8318_p13 = scmp.ne.s32.totalorder %s9136_s26, %s8317_s14  ;;  %p8324_p6 = scmp.lt.u32.totalorder %s8322_s16, %s8317_s14 }
  0x93   : > { %p8326_p11 = scmp.lt.u32.totalorder %s8317_s14, %s9136_s26 }
  0x94   : > { %p8320_p2 = pnand %p8318_p13, %p9106_p9  ;;  %p8325_p7 = por %p8324_p6, %p8323_p4 }
  0x96   : > { %p8321_p0 = pneg %p8320_p2  ;;  %p8327_p12 = por %p8326_p11, %p8325_p7 }
  0x98   : > { %p8328_p5 = pnand %p8327_p12, %p8321_p0 }
  0x9a   : > { %8331 = shalt.err (!%p8328_p5)
}
  0x9b   : > { %s8332_s5 = scalar_lea.vmem %s9138_s19, 1024  ;;  %s8834_s3 = smov [#allocation15]  }
  0x9c   : > { %p8333_p10 = scmp.ne.s32.totalorder %s9138_s19, %s8332_s5  ;;  %s8337_s17 = sshll.u32 %s8834_s3, 4  ;;  %s8338_s17 = int_to_ptr.vmem [resolvable:$false] %s8337_s17 }
  0x9d   : > { %s8339_s22 = scalar_lea.vmem %s8338_s17, 2048  ;;  %p8340_p13 = scmp.lt.s32.totalorder %s9138_s19, %s8338_s17 }
  0x9e   : > { %p8335_p1 = pnand %p8333_p10, %p9106_p9  ;;  %p8341_p2 = scmp.lt.s32.totalorder %s8339_s22, %s8332_s5 }
  0xa0   : > { %p8336_p3 = pneg %p8335_p1  ;;  %p8342_p4 = por %p8341_p2, %p8340_p13 }
  0xa2   : > { %p8343_p6 = pnand %p8342_p4, %p8336_p3 }
  0xa4   : > { %8346 = shalt.err (!%p8343_p6)
}
  0xa5   : > { %s8835_s14 = smov 64   ;;  %s10526_s27 = smov 4  }
  0xa6   : > { %7880 = dma.hbm_to_vmem [thread:$0]  (!%p10566_p8), %s9136_s26, 1024, %s9138_s19, %s10524_s23, %s8835_s14, %s8835_s14, %s10526_s27  }
  0xa7   : > { %s9168_s28 = sshll.u32 %s8827_s21, 4  ;;  %s10569_s9 = sld [smem:[#allocation54_spill]] }
  0xa8   : > { %s693_s5 = scalar_lea.vmem [#allocation18], %s9025_s29  ;;  %s10528_s17 = scalar_lea.sflag [#allocation19], %s9066_s20 }
  0xa9   : > { %s700_s3 = sshll.u32 %s693_s5, 4  ;;  %s701_s3 = int_to_ptr.vmem [resolvable:$true] %s700_s3 }
  0xad   : > { %s9174_s30 = scalar_lea.hbm %s10569_s9, %s9168_s28  ;;  %s8352_s23 = scalar_lea.hbm %s10569_s9, 32 }
  0xae   : > { %s8347_s22 = scalar_lea.hbm %s9174_s30, 16  ;;  %p8353_p12 = scmp.lt.u32.totalorder %s9174_s30, %s10569_s9 }
  0xaf   : > { %p8348_p0 = scmp.ne.s32.totalorder %s9174_s30, %s8347_s22  ;;  %p8354_p5 = scmp.lt.u32.totalorder %s8352_s23, %s8347_s22 }
  0xb0   : > { %p8356_p1 = scmp.lt.u32.totalorder %s8347_s22, %s9174_s30 }
  0xb1   : > { %p8350_p7 = pnand %p8348_p0, %p9106_p9  ;;  %p8355_p10 = por %p8354_p5, %p8353_p12 }
  0xb3   : > { %p8351_p11 = pneg %p8350_p7  ;;  %p8357_p3 = por %p8356_p1, %p8355_p10 }
  0xb5   : > { %p8358_p13 = pnand %p8357_p3, %p8351_p11 }
  0xb7   : > { %8361 = shalt.err (!%p8358_p13)
}
  0xb8   : > { %s8362_s5 = scalar_lea.vmem %s701_s3, 16  ;;  %s8837_s1 = smov [#allocation18]  }
  0xb9   : > { %p8363_p2 = scmp.ne.s32.totalorder %s701_s3, %s8362_s5  ;;  %s8367_s27 = sshll.u32 %s8837_s1, 4  ;;  %s8368_s27 = int_to_ptr.vmem [resolvable:$false] %s8367_s27 }
  0xba   : > { %s8369_s19 = scalar_lea.vmem %s8368_s27, 32  ;;  %p8370_p0 = scmp.lt.s32.totalorder %s701_s3, %s8368_s27 }
  0xbb   : > { %p8365_p4 = pnand %p8363_p2, %p9106_p9  ;;  %p8371_p7 = scmp.lt.s32.totalorder %s8369_s19, %s8362_s5 }
  0xbd   : > { %p8366_p6 = pneg %p8365_p4  ;;  %p8372_p8 = por %p8371_p7, %p8370_p0 }
  0xbf   : > { %p8373_p5 = pnand %p8372_p8, %p8366_p6 }
  0xc1   : > { %8376 = shalt.err (!%p8373_p5)
}
  0xc2   : > { %p10570_p12 = scmp.ne.s32.totalorder %s10561_s2, 0  ;;  %s10571_s11 = sld [smem:[#allocation55_spill]] }
  0xc3   : > { %s727_s27 = scalar_lea.vmem [#allocation21], %s9025_s29  ;;  %s10529_s16 = scalar_lea.sflag [#allocation22], %s9066_s20 }
  0xc4   : > { %7886 = dma.hbm_to_vmem [thread:$0]  (!%p10570_p12), %s9174_s30, 16, %s701_s3, %s10528_s17  }
  0xc5   : > { %s734_s26 = sshll.u32 %s727_s27, 4  ;;  %s735_s26 = int_to_ptr.vmem [resolvable:$true] %s734_s26 }
  0xc8   : > { %s9201_s1 = scalar_lea.hbm %s10571_s11, %s9168_s28  ;;  %s8382_s3 = scalar_lea.hbm %s10571_s11, 32 }
  0xc9   : > { %s8377_s18 = scalar_lea.hbm %s9201_s1, 16  ;;  %p8383_p1 = scmp.lt.u32.totalorder %s9201_s1, %s10571_s11 }
  0xca   : > { %p8378_p8 = scmp.ne.s32.totalorder %s9201_s1, %s8377_s18  ;;  %p8384_p3 = scmp.lt.u32.totalorder %s8382_s3, %s8377_s18 }
  0xcb   : > { %p8386_p2 = scmp.lt.u32.totalorder %s8377_s18, %s9201_s1 }
  0xcc   : > { %p8380_p11 = pnand %p8378_p8, %p9106_p9  ;;  %p8385_p13 = por %p8384_p3, %p8383_p1 }
  0xce   : > { %p8381_p10 = pneg %p8380_p11  ;;  %p8387_p4 = por %p8386_p2, %p8385_p13 }
  0xd0   : > { %p8388_p6 = pnand %p8387_p4, %p8381_p10 }
  0xd2   : > { %8391 = shalt.err (!%p8388_p6)
}
  0xd3   : > { %s8392_s22 = scalar_lea.vmem %s735_s26, 16  ;;  %s8838_s27 = smov [#allocation21]  }
  0xd4   : > { %p8393_p0 = scmp.ne.s32.totalorder %s735_s26, %s8392_s22  ;;  %s8397_s17 = sshll.u32 %s8838_s27, 4  ;;  %s8398_s17 = int_to_ptr.vmem [resolvable:$false] %s8397_s17 }
  0xd5   : > { %s8399_s5 = scalar_lea.vmem %s8398_s17, 32  ;;  %p8400_p8 = scmp.lt.s32.totalorder %s735_s26, %s8398_s17 }
  0xd6   : > { %p8395_p7 = pnand %p8393_p0, %p9106_p9  ;;  %p8401_p11 = scmp.lt.s32.totalorder %s8399_s5, %s8392_s22 }
  0xd8   : > { %p8396_p5 = pneg %p8395_p7  ;;  %p8402_p12 = por %p8401_p11, %p8400_p8 }
  0xda   : > { %p8403_p1 = pnand %p8402_p12, %p8396_p5 }
  0xdc   : > { %8406 = shalt.err (!%p8403_p1)
}
  0xdd   : > { %p10572_p3 = scmp.ne.s32.totalorder %s10561_s2, 0  ;;  %s6850_s18 = sshll.u32 %s9025_s29, 10 }
  0xde   : > { %s7230_s30 = sshll.u32 %s8827_s21, 14  ;;  %s10573_s13 = sld [smem:[#allocation56_spill]] }
  0xdf   : > { %7892 = dma.hbm_to_vmem [thread:$0]  (!%p10572_p3), %s9201_s1, 16, %s735_s26, %s10529_s16  }
  0xe0   : > { %s762_s23 = scalar_lea.vmem [#allocation24], %s6850_s18  ;;  %s10530_s27 = scalar_lea.sflag [#allocation25], %s9066_s20 }
  0xe1   : > { %s769_s22 = sshll.u32 %s762_s23, 4  ;;  %s9235_s22 = int_to_ptr.vmem [resolvable:$true] %s769_s22 }
  0xe4   : > { %s9231_s19 = scalar_lea.hbm %s10573_s13, %s7230_s30  ;;  %s8412_s17 = scalar_lea.hbm %s10573_s13, 32768 }
  0xe5   : > { %s8407_s5 = scalar_lea.hbm %s9231_s19, 16384  ;;  %p8413_p2 = scmp.lt.u32.totalorder %s9231_s19, %s10573_s13 }
  0xe6   : > { %p8408_p12 = scmp.ne.s32.totalorder %s9231_s19, %s8407_s5  ;;  %p8414_p4 = scmp.lt.u32.totalorder %s8412_s17, %s8407_s5 }
  0xe7   : > { %p8416_p0 = scmp.lt.u32.totalorder %s8407_s5, %s9231_s19 }
  0xe8   : > { %p8410_p10 = pnand %p8408_p12, %p9106_p9  ;;  %p8415_p6 = por %p8414_p4, %p8413_p2 }
  0xea   : > { %p8411_p13 = pneg %p8410_p10  ;;  %p8417_p7 = por %p8416_p0, %p8415_p6 }
  0xec   : > { %p8418_p5 = pnand %p8417_p7, %p8411_p13 }
  0xee   : > { %8421 = shalt.err (!%p8418_p5)
}
  0xef   : > { %s8422_s23 = scalar_lea.vmem %s9235_s22, 16384  ;;  %s8839_s1 = smov [#allocation24]  }
  0xf0   : > { %p8423_p8 = scmp.ne.s32.totalorder %s9235_s22, %s8422_s23  ;;  %s8427_s26 = sshll.u32 %s8839_s1, 4  ;;  %s8428_s26 = int_to_ptr.vmem [resolvable:$false] %s8427_s26 }
  0xf1   : > { %s8429_s16 = scalar_lea.vmem %s8428_s26, 32768  ;;  %p8430_p12 = scmp.lt.s32.totalorder %s9235_s22, %s8428_s26 }
  0xf2   : > { %p8425_p11 = pnand %p8423_p8, %p9106_p9  ;;  %p8431_p10 = scmp.lt.s32.totalorder %s8429_s16, %s8422_s23 }
  0xf4   : > { %p8426_p1 = pneg %p8425_p11  ;;  %p8432_p2 = por %p8431_p10, %p8430_p12 }
  0xf6   : > { %p8433_p4 = pnand %p8432_p2, %p8426_p1 }
  0xf8   : > { %8436 = shalt.err (!%p8433_p4)
}
  0xf9   : > { %s8840_s5 = smov 1024   ;;  %s10574_s15 = sld [smem:[#allocation58_spill]] }
  0xfa   : > { %7898 = dma.hbm_to_vmem [thread:$0]  (!%p10572_p3), %s9231_s19, 16384, %s9235_s22, %s10530_s27, %s8840_s5, %s8840_s5, %s8835_s14  }
  0xfb   : > { %s802_s1 = scalar_lea.vmem [#allocation27], %s6850_s18  ;;  %s8841_s16 = smov [#allocation3]  }
  0xfc   : > { %s809_s26 = sshll.u32 %s802_s1, 4  ;;  %s9273_s7 = sshll.u32 %s8841_s16, 4  ;;  %s9271_s26 = int_to_ptr.vmem [resolvable:$true] %s809_s26  ;;  %s549_s7 = int_to_ptr.vmem [resolvable:$true] %s9273_s7 }
  0xfd   : > { %s10532_s9 = scalar_lea.sflag [#allocation28], %s9066_s20 }
  0xff   : > { %s9267_s23 = scalar_lea.hbm %s10574_s15, %s7230_s30  ;;  %s8442_s5 = scalar_lea.hbm %s10574_s15, 32768 }
 0x100   : > { %s8437_s19 = scalar_lea.hbm %s9267_s23, 16384  ;;  %p8443_p7 = scmp.lt.u32.totalorder %s9267_s23, %s10574_s15 }
 0x101   : > { %p8438_p13 = scmp.ne.s32.totalorder %s9267_s23, %s8437_s19  ;;  %p8444_p5 = scmp.lt.u32.totalorder %s8442_s5, %s8437_s19 }
 0x102   : > { %p8446_p11 = scmp.lt.u32.totalorder %s8437_s19, %s9267_s23 }
 0x103   : > { %p8440_p6 = pnand %p8438_p13, %p9106_p9  ;;  %p8445_p8 = por %p8444_p5, %p8443_p7 }
 0x105   : > { %p8441_p0 = pneg %p8440_p6  ;;  %p8447_p1 = por %p8446_p11, %p8445_p8 }
 0x107   : > { %p8448_p12 = pnand %p8447_p1, %p8441_p0 }
 0x109   : > { %8451 = shalt.err (!%p8448_p12)
}
 0x10a   : > { %s8452_s18 = scalar_lea.vmem %s9271_s26, 16384  ;;  %s8842_s1 = smov [#allocation27]  }
 0x10b   : > { %p8453_p10 = scmp.ne.s32.totalorder %s9271_s26, %s8452_s18  ;;  %s8457_s16 = sshll.u32 %s8842_s1, 4  ;;  %s8458_s16 = int_to_ptr.vmem [resolvable:$false] %s8457_s16 }
 0x10c   : > { %s8459_s30 = scalar_lea.vmem %s8458_s16, 32768  ;;  %p8460_p13 = scmp.lt.s32.totalorder %s9271_s26, %s8458_s16 }
 0x10d   : > { %p8455_p2 = pnand %p8453_p10, %p9106_p9  ;;  %p8461_p6 = scmp.lt.s32.totalorder %s8459_s30, %s8452_s18 }
 0x10f   : > { %p8456_p4 = pneg %p8455_p2  ;;  %p8462_p7 = por %p8461_p6, %p8460_p13 }
 0x111   : > { %p8463_p5 = pnand %p8462_p7, %p8456_p4 }
 0x113   : > { %8466 = shalt.err (!%p8463_p5)
}
 0x114   : > { %s10575_s19 = smov 4   ;;  %s10576_s17 = sld [smem:[#allocation48_spill]] }
 0x115   : > { %7904 = dma.hbm_to_vmem [thread:$0]  (!%p10572_p3), %s9267_s23, 16384, %s9271_s26, %s10532_s9, %s8835_s14, %s8835_s14, %s10575_s19  }
 0x116   : > { %p10577_p8 = scmp.ne.s32.totalorder %s10563_s25, 0 }
 0x11a   : > { %s8467_s3 = scalar_lea.hbm %s10576_s17, 256 }
 0x11b   : > { %p8468_p0 = scmp.ne.s32.totalorder %s10576_s17, %s8467_s3  ;;  %p8474_p12 = scmp.lt.u32.totalorder %s8467_s3, %s10576_s17 }
 0x11d   : > { %p8470_p11 = pnand %p8468_p0, %p10577_p8 }
 0x11f   : > { %p8471_p1 = pneg %p8470_p11 }
 0x121   : > { %p8476_p10 = pnand %p8474_p12, %p8471_p1 }
 0x123   : > { %8479 = shalt.err (!%p8476_p10)
}
 0x124   : > { %s8480_s27 = scalar_lea.vmem %s549_s7, 256  ;;  %p8488_p6 = scmp.lt.s32.totalorder %s549_s7, %s549_s7 }
 0x125   : > { %p8481_p2 = scmp.ne.s32.totalorder %s549_s7, %s8480_s27  ;;  %p8489_p7 = scmp.lt.s32.totalorder %s8480_s27, %s8480_s27 }
 0x127   : > { %p8483_p4 = pnand %p8481_p2, %p10577_p8  ;;  %p8490_p5 = por %p8489_p7, %p8488_p6 }
 0x129   : > { %p8484_p13 = pneg %p8483_p4 }
 0x12b   : > { %p8491_p3 = pnand %p8490_p5, %p8484_p13 }
 0x12d   : > { %8494 = shalt.err (!%p8491_p3)
}
 0x12e   : > { %s8843_s14 = smov 128   ;;  %s8844_s23 = smov 8  }
 0x12f   : > { %p10578_p0 = scmp.ne.s32.totalorder %s10560_s0, 0  ;;  %s8845_s22 = smov [#allocation8]  }
 0x130   : > { %s573_s5 = sshll.u32 %s8845_s22, 4  ;;  %s8846_s3 = smov [#allocation11]   ;;  %s574_s5 = int_to_ptr.vmem [resolvable:$true] %s573_s5 }
 0x131   : > { %7858 = dma.hbm_to_vmem [thread:$0]  (!%p10578_p0), %s10576_s17, 256, %s549_s7, [#allocation4], %s8843_s14, %s8843_s14, %s8844_s23  }
 0x132   : > { %s595_s18 = sshll.u32 %s8846_s3, 4  ;;  %s10579_s27 = sld [smem:[#allocation50_spill]]  ;;  %s596_s18 = int_to_ptr.vmem [resolvable:$true] %s595_s18 }
 0x138   : > { %s8495_s30 = scalar_lea.hbm %s10579_s27, 128 }
 0x139   : > { %p8496_p3 = scmp.ne.s32.totalorder %s10579_s27, %s8495_s30  ;;  %p8502_p12 = scmp.lt.u32.totalorder %s8495_s30, %s10579_s27 }
 0x13b   : > { %p8498_p11 = pnand %p8496_p3, %p10577_p8 }
 0x13d   : > { %p8499_p1 = pneg %p8498_p11 }
 0x13f   : > { %p8504_p10 = pnand %p8502_p12, %p8499_p1 }
 0x141   : > { %8507 = shalt.err (!%p8504_p10)
}
 0x142   : > { %s8508_s7 = scalar_lea.vmem %s574_s5, 128  ;;  %p8516_p6 = scmp.lt.s32.totalorder %s574_s5, %s574_s5 }
 0x143   : > { %p8509_p2 = scmp.ne.s32.totalorder %s574_s5, %s8508_s7  ;;  %p8517_p7 = scmp.lt.s32.totalorder %s8508_s7, %s8508_s7 }
 0x145   : > { %p8511_p4 = pnand %p8509_p2, %p10577_p8  ;;  %p8518_p5 = por %p8517_p7, %p8516_p6 }
 0x147   : > { %p8512_p13 = pneg %p8511_p4 }
 0x149   : > { %p8519_p9 = pnand %p8518_p5, %p8512_p13 }
 0x14b   : > { %8522 = shalt.err (!%p8519_p9)
}
 0x14c   : > { %7864 = dma.hbm_to_vmem [thread:$0]  (!%p10578_p0), %s10579_s27, 128, %s574_s5, [#allocation7]  }
 0x14d   : > { %s7803_s13 = smul.u32 3, %s9025_s29  ;;  %s8523_s23 = scalar_lea.hbm %s10480_s4, 128 }
 0x14e   : > { %p8524_p3 = scmp.ne.s32.totalorder %s10480_s4, %s8523_s23  ;;  %p8530_p1 = scmp.lt.u32.totalorder %s8523_s23, %s10480_s4 }
 0x150   : > { %p8526_p9 = pnand %p8524_p3, %p10577_p8 }
 0x152   : > { %p8527_p11 = pneg %p8526_p9 }
 0x154   : > { %p8532_p12 = pnand %p8530_p1, %p8527_p11 }
 0x156   : > { %8535 = shalt.err (!%p8532_p12)
}
 0x157   : > { %s8536_s5 = scalar_lea.vmem %s596_s18, 128  ;;  %p8544_p13 = scmp.lt.s32.totalorder %s596_s18, %s596_s18 }
 0x158   : > { %p8537_p10 = scmp.ne.s32.totalorder %s596_s18, %s8536_s5  ;;  %p8545_p6 = scmp.lt.s32.totalorder %s8536_s5, %s8536_s5 }
 0x15a   : > { %p8539_p2 = pnand %p8537_p10, %p10577_p8  ;;  %p8546_p7 = por %p8545_p6, %p8544_p13 }
 0x15c   : > { %p8540_p4 = pneg %p8539_p2 }
 0x15e   : > { %p8547_p5 = pnand %p8546_p7, %p8540_p4 }
 0x160   : > { %8550 = shalt.err (!%p8547_p5)
}
 0x161   : > { %7870 = dma.hbm_to_vmem [thread:$0]  (!%p10578_p0), %s10480_s4, 128, %s596_s18, [#allocation10]  }
 0x162   : > { %s7804_s30 = smul.u32 48, %s8827_s21  ;;  %s637_s7 = scalar_lea.vmem [#allocation14], %s7803_s13 }
 0x163   : > { %s645_s9 = sshll.u32 %s637_s7, 4  ;;  %p10580_p3 = scmp.ne.s32.totalorder %s10567_s24, 0  ;;  %s646_s9 = int_to_ptr.vmem [resolvable:$true] %s645_s9 }
 0x164   : > { %s643_s15 = scalar_lea.hbm %s10482_s6, %s7804_s30  ;;  %s8556_s26 = scalar_lea.hbm %s10482_s6, 96 }
 0x165   : > { %s8551_s14 = scalar_lea.hbm %s643_s15, 48  ;;  %p8557_p0 = scmp.lt.u32.totalorder %s643_s15, %s10482_s6 }
 0x166   : > { %p8552_p8 = scmp.ne.s32.totalorder %s643_s15, %s8551_s14  ;;  %p8558_p1 = scmp.lt.u32.totalorder %s8556_s26, %s8551_s14 }
 0x167   : > { %p8560_p10 = scmp.lt.u32.totalorder %s8551_s14, %s643_s15 }
 0x168   : > { %p8554_p9 = pnand %p8552_p8, %p10580_p3  ;;  %p8559_p12 = por %p8558_p1, %p8557_p0 }
 0x16a   : > { %p8555_p11 = pneg %p8554_p9  ;;  %p8561_p2 = por %p8560_p10, %p8559_p12 }
 0x16c   : > { %p8562_p4 = pnand %p8561_p2, %p8555_p11 }
 0x16e   : > { %8565 = shalt.err (!%p8562_p4)
}
 0x16f   : > { %s8566_s18 = scalar_lea.vmem %s646_s9, 48  ;;  %s8847_s13 = smov [#allocation14]  }
 0x170   : > { %p8567_p13 = scmp.ne.s32.totalorder %s646_s9, %s8566_s18  ;;  %s8571_s3 = sshll.u32 %s8847_s13, 4  ;;  %s8572_s3 = int_to_ptr.vmem [resolvable:$false] %s8571_s3 }
 0x171   : > { %s8573_s5 = scalar_lea.vmem %s8572_s3, 96  ;;  %p8574_p5 = scmp.lt.s32.totalorder %s646_s9, %s8572_s3 }
 0x172   : > { %p8569_p6 = pnand %p8567_p13, %p10580_p3  ;;  %p8575_p8 = scmp.lt.s32.totalorder %s8573_s5, %s8566_s18 }
 0x174   : > { %p8570_p7 = pneg %p8569_p6  ;;  %p8576_p9 = por %p8575_p8, %p8574_p5 }
 0x176   : > { %p8577_p0 = pnand %p8576_p9, %p8570_p7 }
 0x178   : > { %8580 = shalt.err (!%p8577_p0)
}
 0x179   : > { %p10581_p1 = scmp.ne.s32.totalorder %s10561_s2, 0  ;;  %s10582_s1 = scalar_lea.sflag [#allocation13], %s9066_s20 }
 0x17a   : > { %s9380_s7 = scalar_lea.hbm %s10484_s8, %s9168_s28  ;;  %s676_s11 = scalar_lea.vmem [#allocation17], %s9025_s29 }
 0x17b   : > { %7877 = dma.hbm_to_vmem [thread:$0]  (!%p10581_p1), %s643_s15, 48, %s646_s9, %s10582_s1  }
 0x17c   : > { %s683_s25 = sshll.u32 %s676_s11, 4  ;;  %s8581_s14 = scalar_lea.hbm %s9380_s7, 16  ;;  %s684_s25 = int_to_ptr.vmem [resolvable:$true] %s683_s25 }
 0x17d   : > { %p8582_p11 = scmp.ne.s32.totalorder %s9380_s7, %s8581_s14  ;;  %s8586_s9 = scalar_lea.hbm %s10484_s8, 32 }
 0x17e   : > { %p8587_p2 = scmp.lt.u32.totalorder %s9380_s7, %s10484_s8  ;;  %p8588_p4 = scmp.lt.u32.totalorder %s8586_s9, %s8581_s14 }
 0x17f   : > { %p8584_p12 = pnand %p8582_p11, %p10580_p3  ;;  %p8590_p6 = scmp.lt.u32.totalorder %s8581_s14, %s9380_s7 }
 0x180   : > { %p8589_p13 = por %p8588_p4, %p8587_p2 }
 0x181   : > { %p8585_p10 = pneg %p8584_p12 }
 0x182   : > { %p8591_p7 = por %p8590_p6, %p8589_p13 }
 0x184   : > { %p8592_p5 = pnand %p8591_p7, %p8585_p10 }
 0x186   : > { %8595 = shalt.err (!%p8592_p5)
}
 0x187   : > { %s8596_s19 = scalar_lea.vmem %s684_s25, 16  ;;  %s8848_s22 = smov [#allocation17]  }
 0x188   : > { %p8597_p8 = scmp.ne.s32.totalorder %s684_s25, %s8596_s19  ;;  %s8601_s18 = sshll.u32 %s8848_s22, 4  ;;  %s8602_s18 = int_to_ptr.vmem [resolvable:$false] %s8601_s18 }
 0x189   : > { %s8603_s13 = scalar_lea.vmem %s8602_s18, 32  ;;  %p8604_p11 = scmp.lt.s32.totalorder %s684_s25, %s8602_s18 }
 0x18a   : > { %p8599_p9 = pnand %p8597_p8, %p10580_p3  ;;  %p8605_p12 = scmp.lt.s32.totalorder %s8603_s13, %s8596_s19 }
 0x18c   : > { %p8600_p0 = pneg %p8599_p9  ;;  %p8606_p1 = por %p8605_p12, %p8604_p11 }
 0x18e   : > { %p8607_p2 = pnand %p8606_p1, %p8600_p0 }
 0x190   : > { %8610 = shalt.err (!%p8607_p2)
}
 0x191   : > { %p10583_p4 = scmp.ne.s32.totalorder %s10561_s2, 0  ;;  %s10584_s3 = scalar_lea.sflag [#allocation16], %s9066_s20 }
 0x192   : > { %s9406_s16 = scalar_lea.hbm %s10486_s10, %s9168_s28  ;;  %s710_s30 = scalar_lea.vmem [#allocation20], %s9025_s29 }
 0x193   : > { %7883 = dma.hbm_to_vmem [thread:$0]  (!%p10583_p4), %s9380_s7, 16, %s684_s25, %s10584_s3  }
 0x194   : > { %s717_s11 = sshll.u32 %s710_s30, 4  ;;  %s8611_s14 = scalar_lea.hbm %s9406_s16, 16  ;;  %s718_s11 = int_to_ptr.vmem [resolvable:$true] %s717_s11 }
 0x195   : > { %p8612_p1 = scmp.ne.s32.totalorder %s9406_s16, %s8611_s14  ;;  %s8616_s7 = scalar_lea.hbm %s10486_s10, 32 }
 0x196   : > { %p8617_p6 = scmp.lt.u32.totalorder %s9406_s16, %s10486_s10  ;;  %p8618_p7 = scmp.lt.u32.totalorder %s8616_s7, %s8611_s14 }
 0x197   : > { %p8614_p10 = pnand %p8612_p1, %p10580_p3  ;;  %p8620_p8 = scmp.lt.u32.totalorder %s8611_s14, %s9406_s16 }
 0x198   : > { %p8619_p5 = por %p8618_p7, %p8617_p6 }
 0x199   : > { %p8615_p13 = pneg %p8614_p10 }
 0x19a   : > { %p8621_p9 = por %p8620_p8, %p8619_p5 }
 0x19c   : > { %p8622_p0 = pnand %p8621_p9, %p8615_p13 }
 0x19e   : > { %8625 = shalt.err (!%p8622_p0)
}
 0x19f   : > { %s8626_s15 = scalar_lea.vmem %s718_s11, 16  ;;  %s8849_s26 = smov [#allocation20]  }
 0x1a0   : > { %p8627_p11 = scmp.ne.s32.totalorder %s718_s11, %s8626_s15  ;;  %s8631_s19 = sshll.u32 %s8849_s26, 4  ;;  %s8632_s19 = int_to_ptr.vmem [resolvable:$false] %s8631_s19 }
 0x1a1   : > { %s8633_s22 = scalar_lea.vmem %s8632_s19, 32  ;;  %p8634_p1 = scmp.lt.s32.totalorder %s718_s11, %s8632_s19 }
 0x1a2   : > { %p8629_p12 = pnand %p8627_p11, %p10580_p3  ;;  %p8635_p10 = scmp.lt.s32.totalorder %s8633_s22, %s8626_s15 }
 0x1a4   : > { %p8630_p2 = pneg %p8629_p12  ;;  %p8636_p4 = por %p8635_p10, %p8634_p1 }
 0x1a6   : > { %p8637_p6 = pnand %p8636_p4, %p8630_p2 }
 0x1a8   : > { %8640 = shalt.err (!%p8637_p6)
}
 0x1a9   : > { %p10585_p7 = scmp.ne.s32.totalorder %s10561_s2, 0  ;;  %s10586_s18 = scalar_lea.sflag [#allocation19], %s9066_s20 }
 0x1aa   : > { %s9432_s5 = scalar_lea.hbm %s10488_s12, %s9168_s28  ;;  %s744_s1 = scalar_lea.vmem [#allocation23], %s9025_s29 }
 0x1ab   : > { %7889 = dma.hbm_to_vmem [thread:$0]  (!%p10585_p7), %s9406_s16, 16, %s718_s11, %s10586_s18  }
 0x1ac   : > { %s751_s30 = sshll.u32 %s744_s1, 4  ;;  %s6853_s14 = sshll.u32 %s9025_s29, 4  ;;  %s752_s30 = int_to_ptr.vmem [resolvable:$true] %s751_s30 }
 0x1ad   : > { %s8641_s0 = scalar_lea.hbm %s9432_s5, 16  ;;  %s8646_s11 = scalar_lea.hbm %s10488_s12, 32 }
 0x1ae   : > { %p8642_p4 = scmp.ne.s32.totalorder %s9432_s5, %s8641_s0  ;;  %p8647_p8 = scmp.lt.u32.totalorder %s9432_s5, %s10488_s12 }
 0x1af   : > { %p8648_p9 = scmp.lt.u32.totalorder %s8646_s11, %s8641_s0  ;;  %p8650_p11 = scmp.lt.u32.totalorder %s8641_s0, %s9432_s5 }
 0x1b0   : > { %p8644_p13 = pnand %p8642_p4, %p10580_p3 }
 0x1b1   : > { %p8649_p0 = por %p8648_p9, %p8647_p8 }
 0x1b2   : > { %p8645_p5 = pneg %p8644_p13 }
 0x1b3   : > { %p8651_p12 = por %p8650_p11, %p8649_p0 }
 0x1b5   : > { %p8652_p2 = pnand %p8651_p12, %p8645_p5 }
 0x1b7   : > { %8655 = shalt.err (!%p8652_p2)
}
 0x1b8   : > { %s8656_s9 = scalar_lea.vmem %s752_s30, 16  ;;  %s8850_s15 = smov [#allocation23]  }
 0x1b9   : > { %p8657_p1 = scmp.ne.s32.totalorder %s752_s30, %s8656_s9  ;;  %s8661_s26 = sshll.u32 %s8850_s15, 4  ;;  %s8662_s26 = int_to_ptr.vmem [resolvable:$false] %s8661_s26 }
 0x1ba   : > { %s8663_s19 = scalar_lea.vmem %s8662_s26, 32  ;;  %p8664_p4 = scmp.lt.s32.totalorder %s752_s30, %s8662_s26 }
 0x1bb   : > { %p8659_p10 = pnand %p8657_p1, %p10580_p3  ;;  %p8665_p13 = scmp.lt.s32.totalorder %s8663_s19, %s8656_s9 }
 0x1bd   : > { %p8660_p6 = pneg %p8659_p10  ;;  %p8666_p7 = por %p8665_p13, %p8664_p4 }
 0x1bf   : > { %p8667_p8 = pnand %p8666_p7, %p8660_p6 }
 0x1c1   : > { %8670 = shalt.err (!%p8667_p8)
}
 0x1c2   : > { %p10587_p9 = scmp.ne.s32.totalorder %s10561_s2, 0  ;;  %s10588_s22 = scalar_lea.sflag [#allocation22], %s9066_s20 }
 0x1c3   : > { %s7231_s18 = sshll.u32 %s8827_s21, 8  ;;  %s10589_s1 = sld [smem:[#allocation57_spill]] }
 0x1c4   : > { %7895 = dma.hbm_to_vmem [thread:$0]  (!%p10587_p9), %s9432_s5, 16, %s752_s30, %s10588_s22  }
 0x1c5   : > { %s783_s23 = scalar_lea.vmem [#allocation26], %s6853_s14 }
 0x1c6   : > { %s791_s16 = sshll.u32 %s783_s23, 4  ;;  %s792_s16 = int_to_ptr.vmem [resolvable:$true] %s791_s16 }
 0x1c9   : > { %s9459_s0 = scalar_lea.hbm %s10589_s1, %s7231_s18  ;;  %s8676_s30 = scalar_lea.hbm %s10589_s1, 512 }
 0x1ca   : > { %s8671_s11 = scalar_lea.hbm %s9459_s0, 256  ;;  %p8677_p11 = scmp.lt.u32.totalorder %s9459_s0, %s10589_s1 }
 0x1cb   : > { %p8672_p7 = scmp.ne.s32.totalorder %s9459_s0, %s8671_s11  ;;  %p8678_p12 = scmp.lt.u32.totalorder %s8676_s30, %s8671_s11 }
 0x1cc   : > { %p8680_p1 = scmp.lt.u32.totalorder %s8671_s11, %s9459_s0 }
 0x1cd   : > { %p8674_p5 = pnand %p8672_p7, %p10580_p3  ;;  %p8679_p2 = por %p8678_p12, %p8677_p11 }
 0x1cf   : > { %p8675_p0 = pneg %p8674_p5  ;;  %p8681_p10 = por %p8680_p1, %p8679_p2 }
 0x1d1   : > { %p8682_p6 = pnand %p8681_p10, %p8675_p0 }
 0x1d3   : > { %8685 = shalt.err (!%p8682_p6)
}
 0x1d4   : > { %s8686_s14 = scalar_lea.vmem %s792_s16, 256  ;;  %s8851_s9 = smov [#allocation26]  }
 0x1d5   : > { %p8687_p4 = scmp.ne.s32.totalorder %s792_s16, %s8686_s14  ;;  %s8691_s15 = sshll.u32 %s8851_s9, 4  ;;  %s8692_s15 = int_to_ptr.vmem [resolvable:$false] %s8691_s15 }
 0x1d6   : > { %s8693_s26 = scalar_lea.vmem %s8692_s15, 512  ;;  %p8694_p7 = scmp.lt.s32.totalorder %s792_s16, %s8692_s15 }
 0x1d7   : > { %p8689_p13 = pnand %p8687_p4, %p10580_p3  ;;  %p8695_p5 = scmp.lt.s32.totalorder %s8693_s26, %s8686_s14 }
 0x1d9   : > { %p8690_p8 = pneg %p8689_p13  ;;  %p8696_p9 = por %p8695_p5, %p8694_p7 }
 0x1db   : > { %p8697_p11 = pnand %p8696_p9, %p8690_p8 }
 0x1dd   : > { %8700 = shalt.err (!%p8697_p11)
}
 0x1de   : > { %p10590_p12 = scmp.ne.s32.totalorder %s10561_s2, 0  ;;  %s10591_s19 = scalar_lea.sflag [#allocation25], %s9066_s20 }
 0x1df   : > { %s10592_s13 = sld [smem:[#allocation59_spill]]  ;;  %s822_s23 = scalar_lea.vmem [#allocation29], %s9025_s29 }
 0x1e0   : > { %7901 = dma.hbm_to_vmem [thread:$0]  (!%p10590_p12), %s9459_s0, 256, %s792_s16, %s10591_s19  }
 0x1e1   : > { %s829_s11 = sshll.u32 %s822_s23, 4  ;;  %s830_s11 = int_to_ptr.vmem [resolvable:$true] %s829_s11 }
 0x1e5   : > { %s9486_s3 = scalar_lea.hbm %s10592_s13, %s9168_s28  ;;  %s8706_s0 = scalar_lea.hbm %s10592_s13, 32 }
 0x1e6   : > { %s8701_s5 = scalar_lea.hbm %s9486_s3, 16  ;;  %p8707_p1 = scmp.lt.u32.totalorder %s9486_s3, %s10592_s13 }
 0x1e7   : > { %p8702_p9 = scmp.ne.s32.totalorder %s9486_s3, %s8701_s5  ;;  %p8708_p10 = scmp.lt.u32.totalorder %s8706_s0, %s8701_s5 }
 0x1e8   : > { %p8710_p4 = scmp.lt.u32.totalorder %s8701_s5, %s9486_s3 }
 0x1e9   : > { %p8704_p0 = pnand %p8702_p9, %p10580_p3  ;;  %p8709_p6 = por %p8708_p10, %p8707_p1 }
 0x1eb   : > { %p8705_p2 = pneg %p8704_p0  ;;  %p8711_p13 = por %p8710_p4, %p8709_p6 }
 0x1ed   : > { %p8712_p8 = pnand %p8711_p13, %p8705_p2 }
 0x1ef   : > { %8715 = shalt.err (!%p8712_p8)
}
 0x1f0   : > { %s8716_s29 = scalar_lea.vmem %s830_s11, 16  ;;  %s8852_s28 = smov [#allocation29]  }
 0x1f1   : > { %p8717_p7 = scmp.ne.s32.totalorder %s830_s11, %s8716_s29  ;;  %s8721_s25 = sshll.u32 %s8852_s28, 4  ;;  %s8722_s25 = int_to_ptr.vmem [resolvable:$false] %s8721_s25 }
 0x1f2   : > { %s8723_s14 = scalar_lea.vmem %s8722_s25, 32  ;;  %p8724_p9 = scmp.lt.s32.totalorder %s830_s11, %s8722_s25 }
 0x1f3   : > { %p8719_p5 = pnand %p8717_p7, %p10580_p3  ;;  %p8725_p0 = scmp.lt.s32.totalorder %s8723_s14, %s8716_s29 }
 0x1f5   : > { %p8720_p11 = pneg %p8719_p5  ;;  %p8726_p12 = por %p8725_p0, %p8724_p9 }
 0x1f7   : > { %p8727_p1 = pnand %p8726_p12, %p8720_p11 }
 0x1f9   : > { %8730 = shalt.err (!%p8727_p1)
}
 0x1fa   : > { %p10593_p10 = scmp.ne.s32.totalorder %s10561_s2, 0  ;;  %s10594_s9 = scalar_lea.sflag [#allocation28], %s9066_s20 }
 0x1fb   : > { %s10595_s15 = sld [smem:[#allocation47_spill]] }
 0x1fc   : > { %7907 = dma.hbm_to_vmem [thread:$0]  (!%p10593_p10), %s9486_s3, 16, %s830_s11, %s10594_s9  }
 0x201   : > { %p10596_p2 = scmp.ne.s32.totalorder %s10595_s15, 0 }
 0x202   : > { %s10597_s24 = sld [smem:[#allocation43_spill]] (!%p10596_p2) }
 0x203   : > { %838 = sbr.rel (%p10596_p2) target bundleno = 8953 (0x22f9), region = 96 }
 0x208   : > { %p10598_p3 = scmp.eq.s32.totalorder (!%p10596_p2), %s10597_s24, 0 }
 0x20a   : > { %8774 = dma.done.wait (%p10598_p3), [#allocation4], 256   ;;  %p10599_p6 = pmov %p10598_p3 }
 0x20b   : > { %p10600_p4 = pmov %p10598_p3 }
 0x20c   : > { %8776 = vsyncadd (%p10599_p6), [#allocation4], 4294967040 }
 0x20d   : > { %8778 = dma.done.wait (%p10600_p4), [#allocation7], 160   ;;  %p10601_p12 = pmov %p10598_p3 }
 0x20e   : > { %p10602_p13 = pmov %p10598_p3 }
 0x20f   : > { %8780 = vsyncadd (%p10601_p12), [#allocation7], 4294967136 }
 0x210   : > { %8782 = dma.done.wait (%p10602_p13), [#allocation10], 144   ;;  %p10603_p8 = pmov %p10598_p3 }
 0x211   : > { %s10604_s2 = sld [smem:[#allocation41_spill]]  ;;  %s10605_s20 = sld [smem:[#allocation46_spill]] }
 0x212   : > { %8784 = vsyncadd (%p10603_p8), [#allocation10], 4294967152  ;;  %s9523_s26 = sand.u32 1, %s10597_s24  }
 0x213   : > { %s861_s18 = scalar_lea.sflag [#allocation13], %s9523_s26 }
 0x217   : > { %s9526_s19 = sand.u32 1, %s10604_s2   ;;  %p10606_p7 = scmp.ne.s32.totalorder %s10605_s20, 0 }
 0x218   : > { %s7805_s22 = smul.u32 192, %s9526_s19 }
 0x21a   : > { %s9530_s3 = scalar_lea.vmem [#allocation12], %s7805_s22 }
 0x21b   : > { %8786 = dma.done.wait (%p10606_p7), %s861_s18, 3120  }
 0x21c   : > { %8788 = vsyncadd (%p10606_p7), %s861_s18, 4294964176  ;;  %s7806_s23 = smul.u32 3, %s9526_s19  ;;  %s6866_s11 = sshll.u32 %s9526_s19, 6 }
 0x21d   : > { %s879_s21 = scalar_lea.sflag [#allocation16], %s9523_s26  ;;  %s9541_s30 = scalar_lea.vmem [#allocation15], %s6866_s11 }
 0x21e   : > { %s9538_s5 = scalar_lea.vmem [#allocation14], %s7806_s23 }
 0x21f   : > { %8790 = dma.done.wait (%p10606_p7), %s879_s21, 1040  }
 0x220   : > { %8792 = vsyncadd (%p10606_p7), %s879_s21, 4294966256  ;;  %s890_s0 = scalar_lea.vmem [#allocation17], %s9526_s19  ;;  %s896_s16 = scalar_lea.sflag [#allocation19], %s9523_s26 }
 0x221   : > { %s898_s7 = scalar_lea.vmem [#allocation18], %s9526_s19 }
 0x222   : > { %8794 = dma.done.wait (%p10606_p7), %s896_s16, 32  }
 0x223   : > { %8796 = vsyncadd (%p10606_p7), %s896_s16, 4294967264  ;;  %s906_s29 = scalar_lea.vmem [#allocation20], %s9526_s19  ;;  %s912_s28 = scalar_lea.sflag [#allocation22], %s9523_s26 }
 0x224   : > { %s914_s25 = scalar_lea.vmem [#allocation21], %s9526_s19 }
 0x225   : > { %8798 = dma.done.wait (%p10606_p7), %s912_s28, 32  }
 0x226   : > { %8800 = vsyncadd (%p10606_p7), %s912_s28, 4294967264  ;;  %s6867_s14 = sshll.u32 %s9526_s19, 10  ;;  %s922_s9 = scalar_lea.vmem [#allocation23], %s9526_s19 }
 0x227   : > { %s928_s15 = scalar_lea.sflag [#allocation25], %s9523_s26  ;;  %s9564_s2 = scalar_lea.vmem [#allocation24], %s6867_s14 }
 0x228   : > { %8802 = dma.done.wait (%p10606_p7), %s928_s15, 16640  }
 0x229   : > { %8804 = vsyncadd (%p10606_p7), %s928_s15, 4294950656  ;;  %s6868_s22 = sshll.u32 %s9526_s19, 4  ;;  %s946_s23 = scalar_lea.sflag [#allocation28], %s9523_s26 }
 0x22a   : > { %s9571_s18 = scalar_lea.vmem [#allocation26], %s6868_s22  ;;  %s9574_s11 = scalar_lea.vmem [#allocation27], %s6867_s14 }
 0x22b   : > { %8806 = dma.done.wait (%p10606_p7), %s946_s23, 16400  }
 0x22c   : > { %8808 = vsyncadd (%p10606_p7), %s946_s23, 4294950896  ;;  %s957_s21 = scalar_lea.vmem [#allocation29], %s9526_s19  ;;  %p10607_p5 = scmp.ne.s32.totalorder %s10597_s24, 0 }
 0x22d   : > { %v1063_v0 = vld [vmem:[#allocation8] sm:$0xff] (!%p10607_p5)  ;;  %v1061_v1 = vld [vmem:[#allocation3] sm:$0xff] (!%p10607_p5)  ;;  %vm1071_vm0 = vcmask (!%p10607_p5), 64512   ;;  %v1062_v2 = vld [vmem:[#allocation3 + $0x8] sm:$0xff] (!%p10607_p5) }
 0x22e   : > { %1060 = sbr.rel (%p10607_p5) target bundleno = 778 (0x30a), region = 168  ;;  %7516 = vmatprep.subr.mxu0 (!%p10607_p5), %v1063_v0  ;;  %7518 = vmatprep.mubr.msk.f32.mxu0 (!%p10607_p5), %vm1071_vm0, %v1061_v1  ;;  %v6871_v3 = vld [vmem:[#allocation9] ss:$0 sm:$0xff] (!%p10607_p5)  ;;  %v1153_v5 = vld [vmem:[#allocation11] sm:$0xff] (!%p10607_p5) }
 0x22f   : > { %7517 = vmatpush3.msra.mxu0 (!%p10607_p5), %v1063_v0 }
 0x230   : > { %7519 = vmatmul.mubr.msk.f32.vlgmr.msra.gmra.mrb[0].mxu0 (!%p10607_p5), %vm1071_vm0, %v1062_v2 }
 0x303   : > { %v7520_v4 = vpop.f32.mrb[0].mxu0 }
 0x304   : > { %v1150_v6 = vadd.f32 %v7520_v4, %v6871_v3  ;;  %v1144_v7 = vpop.f32.mrb[1].mxu0 }
 0x305   : > { %v1145_v8 = vadd.f32 %v6871_v3, %v1144_v7 }
 0x306   : > { %v1155_v9 = vadd.f32 %v1153_v5, %v1150_v6 }
 0x307   : > { %v1154_v10 = vadd.f32 %v1153_v5, %v1145_v8 }
 0x308   : > { %1157 = vst [vmem:[#allocation2 + $0x8] sm:$0xff] %v1155_v9 }
 0x309   : > { %1156 = vst [vmem:[#allocation2] sm:$0xff] %v1154_v10 }
 0x30a PF: > { %v7981_v13 = vld [vmem:[%s9530_s3 + $0x4] ss:$12 sps:$4 sm:$0xff]   ;;  %v7983_v14 = vld [vmem:[%s9530_s3] ss:$12 sps:$4 sm:$0xff]   ;;  %v8853_v15 = vmov 0.0   ;;  %v8854_v41 = vmov 0   ;;  %v1236_v0 = vlaneseq }
 0x30b   : > { %7521 = vmatprep.subr.bf16.mxu1 %v8853_v15  ;;  %v7984_v16 = vld [vmem:[%s9530_s3 + $0x8] ss:$12 sps:$4 sm:$0xff]   ;;  %1379 = vmatprep.subr.bf16.mxu0 %v7981_v13  ;;  %v7987_v26 = vld [vmem:[%s9530_s3 + $0x18] ss:$12 sps:$4 sm:$0xff]   ;;  %v7988_v27 = vld [vmem:[%s9530_s3 + $0x20] ss:$12 sps:$4 sm:$0xff]  }
 0x30c   : > { %v7985_v17 = vld [vmem:[%s9530_s3 + $0x1c] ss:$12 sps:$4 sm:$0xff]   ;;  %1380 = vmatpush1.bf16.msra.mxu0 %v7983_v14  ;;  %7522 = vmatpush3.bf16.msra.mxu1 %v7984_v16  ;;  %v7989_v28 = vld [vmem:[%s9530_s3 + $0x34] ss:$12 sps:$4 sm:$0xff]   ;;  %v7992_v30 = vld [vmem:[%s9530_s3 + $0x38] ss:$12 sps:$4 sm:$0xff]  }
 0x30d   : > { %1381 = vmatprep.subr.bf16.mxu0 %v7985_v17  ;;  %7523 = vmatprep.subr.bf16.mxu1 %v8853_v15  ;;  %v7991_v29 = vld [vmem:[%s9530_s3 + $0x30] ss:$12 sps:$4 sm:$0xff]   ;;  %v7993_v31 = vld [vmem:[%s9530_s3 + $0x4c] ss:$12 sps:$4 sm:$0xff]   ;;  %v7995_v32 = vld [vmem:[%s9530_s3 + $0x48] ss:$12 sps:$4 sm:$0xff]  }
 0x30e   : > { %v7996_v33 = vld [vmem:[%s9530_s3 + $0x50] ss:$12 sps:$4 sm:$0xff]   ;;  %v7999_v35 = vld [vmem:[%s9530_s3 + $0x60] ss:$12 sps:$4 sm:$0xff]   ;;  %v8000_v36 = vld [vmem:[%s9530_s3 + $0x68] ss:$12 sps:$4 sm:$0xff]   ;;  %1411 = vmatprep.mubr.bf16.mxu0 %v8854_v41 }
 0x30f   : > { %v1159_v12 = vld [vmem:[#allocation2 + $0x8] sm:$0xff]  ;;  %v7997_v34 = vld [vmem:[%s9530_s3 + $0x64] ss:$12 sps:$4 sm:$0xff]   ;;  %v8001_v37 = vld [vmem:[%s9530_s3 + $0x7c] ss:$12 sps:$4 sm:$0xff]   ;;  %vm8855_vm1 = vmmov 0  }
 0x310   : > { %v1158_v11 = vld [vmem:[#allocation2] sm:$0xff]  ;;  %1382 = vmatpush1.bf16.msra.mxu0 %v7987_v26  ;;  %7524 = vmatpush3.bf16.msra.mxu1 %v7988_v27  ;;  %v8003_v38 = vld [vmem:[%s9530_s3 + $0x78] ss:$12 sps:$4 sm:$0xff]   ;;  %v8005_v40 = vld [vmem:[%s9530_s3 + $0x94] ss:$12 sps:$4 sm:$0xff]   ;;  %v9638_v1 = vshrl.u32 %v1236_v0, 7 }
 0x311   : > { %1162 = vadd.xlane.f32.xlu0 %v1158_v11  ;;  %7525 = vmatprep.subr.bf16.mxu1 %v8853_v15  ;;  %v8004_v39 = vld [vmem:[%s9530_s3 + $0x80] ss:$12 sps:$4 sm:$0xff]   ;;  %v8007_v42 = vld [vmem:[%s9530_s3 + $0x90] ss:$12 sps:$4 sm:$0xff]   ;;  %v8008_v43 = vld [vmem:[%s9530_s3 + $0x98] ss:$12 sps:$4 sm:$0xff]  }
 0x312   : > { %1383 = vmatprep.subr.bf16.mxu0 %v7989_v28  ;;  %7537 = vmatprep.mubr.msk.bf16.mxu1 %vm8855_vm1, %v8853_v15  ;;  %v8009_v44 = vld [vmem:[%s9530_s3 + $0xac] ss:$12 sps:$4 sm:$0xff]   ;;  %v8011_v45 = vld [vmem:[%s9530_s3 + $0xa8] ss:$12 sps:$4 sm:$0xff]   ;;  %v8012_v46 = vld [vmem:[%s9530_s3 + $0xb0] ss:$12 sps:$4 sm:$0xff]  }
 0x313   : > { %v6874_v55 = vld [vmem:[%s898_s7] ss:$0 sm:$0xff]  ;;  %v9641_v2 = vsub.s32 0, %v9638_v1  ;;  %v1234_v3 = vld [vmem:[%s9538_s5] sm:$0x7]  ;;  %v9645_v4 = vsub.s32 1, %v9638_v1 }
 0x314   : > { %1384 = vmatpush1.bf16.msra.mxu0 %v7991_v29  ;;  %7526 = vmatpush3.bf16.msra.mxu1 %v7992_v30  ;;  %v6875_v59 = vld [vmem:[%s906_s29] ss:$0 sm:$0xff]  ;;  %v9650_v8 = vsub.s32 2, %v9638_v1  ;;  %vm1530_vm2 = vcmask 130048   ;;  %vm1652_vm3 = vcmask 1043456   ;;  %vm1624_vm4 = vcmask 64512  }
 0x315   : > { %1164 = vadd.xlane.f32.xlu0 %v1159_v12  ;;  %7527 = vmatprep.subr.bf16.mxu1 %v8853_v15  ;;  %v1239_v5 = vrot.slane %v1234_v3, %v9641_v2  ;;  %v1243_v6 = vrot.slane %v1234_v3, %v9645_v4  ;;  %s8857_s24 = smov 112   ;;  %s8858_s20 = smov 96  }
 0x316   : > { %1385 = vmatprep.subr.bf16.mxu0 %v7993_v31  ;;  %s8859_s26 = smov 80   ;;  %s8860_s3 = smov 64  }
 0x317   : > { %s8861_s5 = smov 48   ;;  %s8862_s16 = smov 32  }
 0x318   : > { %1386 = vmatpush1.bf16.msra.mxu0 %v7995_v32  ;;  %7528 = vmatpush3.bf16.msra.mxu1 %v7996_v33  ;;  %s8863_s7 = smov 16  }
 0x319   : > { %7529 = vmatprep.subr.bf16.mxu1 %v8853_v15  ;;  %1387 = vmatprep.subr.bf16.mxu0 %v7997_v34  ;;  %v8856_v34 = vmov 1966171168  }
 0x31c   : > { %1388 = vmatpush1.bf16.msra.mxu0 %v7999_v35  ;;  %7530 = vmatpush3.bf16.msra.mxu1 %v8000_v36  ;;  %v1490_v35 = vunpack.c.l.s4 %v8856_v34 }
 0x31d   : > { %1389 = vmatprep.subr.bf16.mxu0 %v8001_v37  ;;  %7531 = vmatprep.subr.bf16.mxu1 %v8853_v15  ;;  %v6904_v37 = vld.sshfl [vmem:[#allocation6] sm:$0x11 pattern:$0x75316420] }
 0x31e   : > { %v1491_v36 = vunpack.c.0.s8 %v1490_v35 }
 0x320   : > { %1390 = vmatpush1.bf16.msra.mxu0 %v8003_v38  ;;  %7532 = vmatpush3.bf16.msra.mxu1 %v8004_v39  ;;  %v1494_v38 = vsub.s32 %v1491_v36, %v9638_v1  ;;  %v1488_v39 = vcombine.high %v6904_v37, %v6904_v37 }
 0x321   : > { %1391 = vmatprep.subr.bf16.mxu0 %v8005_v40  ;;  %7533 = vmatprep.subr.bf16.mxu1 %v8853_v15 }
 0x322   : > { %v1495_v40 = vrot.slane %v6904_v37, %v1494_v38 }
 0x324   : > { %1392 = vmatpush1.bf16.msra.mxu0 %v8007_v42  ;;  %7534 = vmatpush3.bf16.msra.mxu1 %v8008_v43  ;;  %v1502_v42 = vrot.slane %v1488_v39, %v1494_v38  ;;  %v9689_v43 = vrot.slane %v1495_v40, %v9641_v2 }
 0x325   : > { %1393 = vmatprep.subr.bf16.mxu0 %v8009_v44  ;;  %7535 = vmatprep.subr.bf16.mxu1 %v8853_v15 }
 0x326   : > { %v9692_v44 = vrot.slane %v1502_v42, %v9641_v2 }
 0x328   : > { %1394 = vmatpush1.bf16.msra.mxu0 %v8011_v45  ;;  %7536 = vmatpush3.bf16.msra.mxu1 %v8012_v46 }
 0x329   : > { %7541 = vmatprep.subr.bf16.mxu0 %v8853_v15  ;;  %7547 = vmatprep.subr.bf16.mxu1 %v8853_v15 }
 0x39e   : > { %v1163_v18 = vpop.xlane.xlu0 %1162 }
 0x39f   : > { %v1167_v19 = vmul.f32 0.0078125, %v1163_v18 }
 0x3a1   : > { %v9589_v20 = vsub.f32 %v1158_v11, %v1167_v19 }
 0x3a2   : > { %v1165_v21 = vpop.xlane.xlu0 %1164 }
 0x3a3   : > { %v1168_v22 = vmul.f32 0.0078125, %v1165_v21  ;;  %v1171_v23 = vmul.f32 %v9589_v20, %v9589_v20 }
 0x3a5   : > { %v9593_v24 = vsub.f32 %v1159_v12, %v1168_v22  ;;  %1173 = vadd.xlane.f32.xlu1 %v1171_v23 }
 0x3a7   : > { %v1172_v25 = vmul.f32 %v9593_v24, %v9593_v24 }
 0x3a9   : > { %1175 = vadd.xlane.f32.xlu1 %v1172_v25 }
 0x432   : > { %v1174_v47 = vpop.xlane.xlu1 %1173 }
 0x433   : > { %v1177_v48 = vmul.f32 0.0078125, %v1174_v47 }
 0x435   : > { %v1179_v49 = vadd.f32 1e-05, %v1177_v48 }
 0x436   : > { %v1176_v50 = vpop.xlane.xlu1 %1175 }
 0x437   : > { %8149 = vrsqrt.f32 %v1179_v49  ;;  %v1178_v51 = vmul.f32 0.0078125, %v1176_v50 }
 0x439   : > { %v1180_v52 = vadd.f32 1e-05, %v1178_v51 }
 0x43b   : > { %8151 = vrsqrt.f32 %v1180_v52 }
 0x441   : > { %v8150_v53 = vpop.eup %8149 }
 0x442   : > { %v1183_v54 = vmul.f32 %v8150_v53, %v9589_v20  ;;  %v1247_v20 = vrot.slane %v1234_v3, %v9650_v8 }
 0x444   : > { %v1191_v58 = vmul.f32 %v6874_v55, %v1183_v54 }
 0x445   : > { %v8152_v56 = vpop.eup %8151 }
 0x446   : > { %v1184_v57 = vmul.f32 %v8152_v56, %v9593_v24  ;;  %v1199_v61 = vadd.f32 %v6875_v59, %v1191_v58 }
 0x448   : > { %v1192_v60 = vmul.f32 %v6874_v55, %v1184_v57 }
 0x44a   : > { %v1200_v62 = vadd.f32 %v6875_v59, %v1192_v60 }
 0x44c   : > { %v1201_v63 = vpack.c.bf16 %v1200_v62, %v1199_v61 }
 0x44e   : > { %1412 = vmatmul.mubr.bf16.vlgmr.msra.gmra.mrb[0].mxu0 %v1201_v63  ;;  %7538 = vmatmul.mubr.bf16.vlgmr.msra.gmra.mrb[0].mxu1 %v1201_v63 }
 0x44f   : > { %7543 = vmatprep.mubr.msk.bf16.mxu0 %vm8855_vm1, %v8853_v15  ;;  %7549 = vmatprep.mubr.msk.bf16.mxu1 %vm8855_vm1, %v8853_v15 }
 0x521   : > { %v1413_v7 = vpop.f32.mrb[0].mxu0  ;;  %v1456_v9 = vpop.f32.mrb[0].mxu1 }
 0x522   : > { %v9652_v10 = vadd.f32 %v1413_v7, %v1239_v5  ;;  %v1415_v11 = vpop.f32.mrb[1].mxu0  ;;  %v7539_v12 = vpop.f32.mrb[1].mxu1  ;;  %v1457_v25 = vadd.f32 %v1456_v9, %v1247_v20 }
 0x523   : > { %v1416_v13 = vadd.f32 %v1415_v11, %v1243_v6  ;;  %v1417_v14 = vpop.f32.mrb[2].mxu0  ;;  %v1459_v16 = vpop.f32.mrb[2].mxu1 }
 0x524   : > { %v9654_v17 = vadd.f32 %v1417_v14, %v1239_v5  ;;  %v1419_v18 = vpop.f32.mrb[3].mxu0  ;;  %v7540_v19 = vpop.f32.mrb[3].mxu1  ;;  %v1460_v28 = vadd.f32 %v1459_v16, %v1247_v20  ;;  %v9668_v30 = vpack.c.bf16 %v1457_v25, %v1457_v25 }
 0x525   : > { %v9658_v21 = vpack.c.bf16 %v1416_v13, %v9652_v10  ;;  %v1420_v22 = vadd.f32 %v1419_v18, %v1243_v6  ;;  %v9704_v6 = vpack.c.bf16 %v9652_v10, %v9652_v10 }
 0x526   : > { %v9671_v31 = vpack.c.bf16 %v1460_v28, %v1460_v28  ;;  %v1654_v32 = vsel %vm1652_vm3, %v9668_v30, 0  ;;  %v9710_v7 = vpack.c.bf16 %v9654_v17, %v9654_v17 }
 0x527   : > { %v9661_v23 = vpack.c.bf16 %v1420_v22, %v9654_v17  ;;  %v1529_v24 = vrot.slane %v9658_v21, 4 }
 0x528   : > { %v1700_v33 = vsel %vm1652_vm3, %v9671_v31, 0 }
 0x529   : > { %v1535_v26 = vsel %vm1530_vm2, %v1529_v24, 0  ;;  %v1577_v27 = vrot.slane %v9661_v23, 4 }
 0x52a   : > { %7542 = vmatpush3.bf16.xpose.msra.mxu0 %v1535_v26 }
 0x52b   : > { %v1582_v29 = vsel %vm1530_vm2, %v1577_v27, 0  ;;  %7553 = vmatprep.subr.bf16.mxu0 %v8853_v15 }
 0x52c   : > { %7548 = vmatpush3.bf16.xpose.msra.mxu1 %v1582_v29 }
 0x52d   : > { %7559 = vmatprep.subr.bf16.mxu1 %v8853_v15 }
 0x531   : > { %7544 = vmatmul.mubr.msk.bf16.vlgmr.msra.gmra.mrb[4].mxu0 %vm1530_vm2, %v9658_v21 }
 0x532   : > { %7554 = vmatpush3.bf16.msra.mxu0 %v1654_v32  ;;  %7555 = vmatprep.mubr.msk.bf16.mxu0 %vm8855_vm1, %v8853_v15 }
 0x533   : > { %7550 = vmatmul.mubr.msk.bf16.vlgmr.msra.gmra.mrb[4].mxu1 %vm1530_vm2, %v9661_v23  ;;  %7565 = vmatprep.subr.bf16.mxu0 %v8853_v15 }
 0x534   : > { %7560 = vmatpush3.bf16.msra.mxu1 %v1700_v33  ;;  %7561 = vmatprep.mubr.msk.bf16.mxu1 %vm8855_vm1, %v8853_v15 }
 0x535   : > { %7571 = vmatprep.subr.bf16.mxu1 %v8853_v15 }
 0x604   : > { %v1571_v45 = vpop.f32.mrb[4].mxu0 }
 0x605   : > { %v1572_v46 = vadd.f32 %v1571_v45, %v9689_v43  ;;  %v7545_v47 = vpop.f32.mrb[5].mxu0 }
 0x606   : > { %v1574_v48 = vpop.f32.mrb[6].mxu0  ;;  %v1618_v49 = vpop.f32.mrb[4].mxu1 }
 0x607   : > { %v1619_v50 = vadd.f32 %v1618_v49, %v9692_v44  ;;  %v7546_v51 = vpop.f32.mrb[7].mxu0  ;;  %v7551_v52 = vpop.f32.mrb[5].mxu1  ;;  %v1625_v53 = vsel %vm1624_vm4, %v1572_v46, -inf }
 0x608   : > { %v1621_v54 = vpop.f32.mrb[6].mxu1  ;;  %1626 = vmax.xlane.f32.xlu0 %v1625_v53 }
 0x609   : > { %v7552_v55 = vpop.f32.mrb[7].mxu1  ;;  %v1628_v56 = vsel %vm1624_vm4, %v1619_v50, -inf }
 0x60a   : > { %1629 = vmax.xlane.f32.xlu1 %v1628_v56 }
 0x61b   : > { %1795 = vrot.lane.b32.xlu1 %v9661_v23, %s8857_s24 }
 0x695   : > { %v1627_v57 = vpop.xlane.xlu0 %1626 }
 0x696   : > { %v1631_v58 = vsub.f32 %v1572_v46, %v1627_v57 }
 0x697   : > { %v1630_v59 = vpop.xlane.xlu1 %1629 }
 0x698   : > { %v1633_v60 = vmul.f32 1.442695, %v1631_v58  ;;  %v1632_v61 = vsub.f32 %v1619_v50, %v1630_v59 }
 0x69a   : > { %8153 = vpow2.f32 %v1633_v60  ;;  %v1635_v62 = vmul.f32 1.442695, %v1632_v61 }
 0x69b   : > { %v1796_v9 = vpop.permute.xlu1 %1795 }
 0x69c   : > { %8155 = vpow2.f32 %v1635_v62  ;;  %v1797_v19 = vrot.slane %v1796_v9, 4 }
 0x69e   : > { %v1805_v25 = vsel %vm1530_vm2, %v1797_v19, 0 }
 0x6a4   : > { %v8154_v63 = vpop.eup %8153 }
 0x6a5   : > { %v1637_v0 = vsel %vm1624_vm4, %v8154_v63, 0.0 }
 0x6a6   : > { %v8156_v3 = vpop.eup %8155  ;;  %1638 = vadd.xlane.f32.xlu0 %v1637_v0 }
 0x6a7   : > { %v1640_v5 = vsel %vm1624_vm4, %v8156_v3, 0.0 }
 0x6a8   : > { %1641 = vadd.xlane.f32.xlu1 %v1640_v5 }
 0x6b9   : > { %1747 = vrot.lane.b32.xlu1 %v9704_v6, %s8857_s24 }
 0x6bc   : > { %1743 = vrot.lane.b32.xlu0 %v9658_v21, %s8857_s24 }
 0x6bd   : > { %1799 = vrot.lane.b32.xlu1 %v9710_v7, %s8857_s24 }
 0x733   : > { %v1639_v11 = vpop.xlane.xlu0 %1638 }
 0x734   : > { %8157 = vrcp.f32 %v1639_v11 }
 0x735   : > { %v1642_v12 = vpop.xlane.xlu1 %1641 }
 0x736   : > { %8159 = vrcp.f32 %v1642_v12 }
 0x737   : > { %v1744_v10 = vpop.permute.xlu0 %1743 }
 0x738   : > { %v1745_v16 = vrot.slane %v1744_v10, 4 }
 0x739   : > { %v1748_v26 = vpop.permute.xlu1 %1747 }
 0x73a   : > { %v1753_v22 = vsel %vm1530_vm2, %v1745_v16, 0 }
 0x73d   : > { %v1800_v27 = vpop.permute.xlu1 %1799 }
 0x73e   : > { %v8158_v13 = vpop.eup %8157 }
 0x73f   : > { %v1645_v14 = vmul.f32 %v8158_v13, %v8154_v63 }
 0x740   : > { %v8160_v18 = vpop.eup %8159 }
 0x741   : > { %v1646_v20 = vmul.f32 %v8160_v18, %v8156_v3  ;;  %v1647_v17 = vpack.c.bf16 %v1645_v14, %v1645_v14  ;;  %v8014_v14 = vld [vmem:[%s9541_s30 + $0x8] sm:$0xff]  }
 0x743   : > { %7556 = vmatmul.mubr.msk.bf16.vlgmr.msra.gmra.mrb[8].mxu0 %vm1624_vm4, %v1647_v17  ;;  %v1648_v24 = vpack.c.bf16 %v1646_v20, %v1646_v20  ;;  %v8013_v17 = vld [vmem:[%s9541_s30] sm:$0xff]  }
 0x744   : > { %7566 = vmatpush3.bf16.xpose.msra.mxu0 %v1753_v22  ;;  %7567 = vmatprep.mubr.msk.bf16.mxu0 %vm8855_vm1, %v8853_v15 }
 0x745   : > { %7562 = vmatmul.mubr.msk.bf16.vlgmr.msra.gmra.mrb[8].mxu1 %vm1624_vm4, %v1648_v24  ;;  %7577 = vmatprep.subr.bf16.mxu0 %v8853_v15 }
 0x746   : > { %7572 = vmatpush3.bf16.xpose.msra.mxu1 %v1805_v25  ;;  %7573 = vmatprep.mubr.msk.bf16.mxu1 %vm8855_vm1, %v8853_v15 }
 0x747   : > { %7583 = vmatprep.subr.bf16.mxu1 %v8853_v15 }
 0x74b   : > { %7568 = vmatmul.mubr.msk.bf16.vlgmr.msra.gmra.mrb[12].mxu0 %vm1530_vm2, %v1748_v26 }
 0x74c   : > { %7579 = vmatprep.mubr.msk.bf16.mxu0 %vm8855_vm1, %v8853_v15 }
 0x74d   : > { %7574 = vmatmul.mubr.msk.bf16.vlgmr.msra.gmra.mrb[12].mxu1 %vm1530_vm2, %v1800_v27 }
 0x74e   : > { %7585 = vmatprep.mubr.msk.bf16.mxu1 %vm8855_vm1, %v8853_v15 }
 0x816   : > { %v9732_v28 = vpop.f32.mrb[8].mxu0 }
 0x817   : > { %v7557_v29 = vpop.f32.mrb[9].mxu0 }
 0x818   : > { %v1693_v32 = vpop.f32.mrb[10].mxu0  ;;  %v9734_v33 = vpop.f32.mrb[8].mxu1 }
 0x819   : > { %v1742_v34 = vpack.c.bf16 %v9734_v33, %v9732_v28  ;;  %v7558_v35 = vpop.f32.mrb[11].mxu0  ;;  %v7563_v36 = vpop.f32.mrb[9].mxu1 }
 0x81a   : > { %v1739_v37 = vpop.f32.mrb[10].mxu1 }
 0x81b   : > { %v7564_v38 = vpop.f32.mrb[11].mxu1 }
 0x81e   : > { %v1789_v39 = vpop.f32.mrb[12].mxu0 }
 0x81f   : > { %v1790_v40 = vadd.f32 %v1789_v39, %v9689_v43  ;;  %v7569_v42 = vpop.f32.mrb[13].mxu0 }
 0x820   : > { %v1792_v45 = vpop.f32.mrb[14].mxu0  ;;  %v1841_v46 = vpop.f32.mrb[12].mxu1 }
 0x821   : > { %v1842_v47 = vadd.f32 %v1841_v46, %v9692_v44  ;;  %v7570_v48 = vpop.f32.mrb[15].mxu0  ;;  %v7575_v49 = vpop.f32.mrb[13].mxu1  ;;  %v1847_v50 = vsel %vm1624_vm4, %v1790_v40, -inf }
 0x822   : > { %v1844_v51 = vpop.f32.mrb[14].mxu1  ;;  %1848 = vmax.xlane.f32.xlu0 %v1847_v50 }
 0x823   : > { %v7576_v52 = vpop.f32.mrb[15].mxu1  ;;  %v1850_v53 = vsel %vm1624_vm4, %v1842_v47, -inf }
 0x824   : > { %1851 = vmax.xlane.f32.xlu1 %v1850_v53 }
 0x835   : > { %1919 = vrot.lane.b32.xlu1 %v9671_v31, %s8857_s24 }
 0x839   : > { %2068 = vrot.lane.b32.xlu1 %v9658_v21, %s8858_s20 }
 0x83d   : > { %2119 = vrot.lane.b32.xlu1 %v9661_v23, %s8858_s20 }
 0x841   : > { %2122 = vrot.lane.b32.xlu1 %v9710_v7, %s8858_s20 }
 0x8af   : > { %v1849_v54 = vpop.xlane.xlu0 %1848 }
 0x8b0   : > { %v1853_v55 = vsub.f32 %v1790_v40, %v1849_v54 }
 0x8b1   : > { %v1852_v56 = vpop.xlane.xlu1 %1851 }
 0x8b2   : > { %v1855_v57 = vmul.f32 1.442695, %v1853_v55  ;;  %v1854_v58 = vsub.f32 %v1842_v47, %v1852_v56 }
 0x8b4   : > { %8161 = vpow2.f32 %v1855_v57  ;;  %v1857_v59 = vmul.f32 1.442695, %v1854_v58 }
 0x8b5   : > { %v1920_v60 = vpop.permute.xlu1 %1919 }
 0x8b6   : > { %8163 = vpow2.f32 %v1857_v59  ;;  %v1925_v61 = vsel %vm1652_vm3, %v1920_v60, 0 }
 0x8b7   : > { %7584 = vmatpush3.bf16.msra.mxu1 %v1925_v61 }
 0x8b8   : > { %7595 = vmatprep.subr.bf16.mxu1 %v8853_v15 }
 0x8b9   : > { %v2069_v19 = vpop.permute.xlu1 %2068 }
 0x8ba   : > { %v2070_v28 = vrot.slane %v2069_v19, 4 }
 0x8bc   : > { %v2077_v39 = vsel %vm1530_vm2, %v2070_v28, 0 }
 0x8bd   : > { %v2120_v24 = vpop.permute.xlu1 %2119 }
 0x8be   : > { %v8162_v62 = vpop.eup %8161  ;;  %v2121_v25 = vrot.slane %v2120_v24, 4 }
 0x8bf   : > { %v1859_v63 = vsel %vm1624_vm4, %v8162_v62, 0.0 }
 0x8c0   : > { %v8164_v0 = vpop.eup %8163  ;;  %1860 = vadd.xlane.f32.xlu0 %v1859_v63  ;;  %v2128_v26 = vsel %vm1530_vm2, %v2121_v25, 0 }
 0x8c1   : > { %v1862_v3 = vsel %vm1624_vm4, %v8164_v0, 0.0  ;;  %v2123_v27 = vpop.permute.xlu1 %2122 }
 0x8c4   : > { %1863 = vadd.xlane.f32.xlu0 %v1862_v3 }
 0x8da   : > { %1871 = vrot.lane.b32.xlu0 %v9668_v30, %s8857_s24 }
 0x8de   : > { %2071 = vrot.lane.b32.xlu0 %v9704_v6, %s8858_s20 }
 0x94d   : > { %v1861_v5 = vpop.xlane.xlu0 %1860 }
 0x94e   : > { %8165 = vrcp.f32 %v1861_v5 }
 0x951   : > { %v1864_v9 = vpop.xlane.xlu0 %1863 }
 0x952   : > { %8167 = vrcp.f32 %v1864_v9 }
 0x955   : > { %v1872_v11 = vpop.permute.xlu0 %1871 }
 0x956   : > { %v1877_v12 = vsel %vm1652_vm3, %v1872_v11, 0 }
 0x957   : > { %7578 = vmatpush3.bf16.msra.mxu0 %v1877_v12 }
 0x958   : > { %v8166_v10 = vpop.eup %8165  ;;  %7589 = vmatprep.subr.bf16.mxu0 %v8853_v15 }
 0x959   : > { %v1867_v13 = vmul.f32 %v8166_v10, %v8162_v62  ;;  %v2072_v46 = vpop.permute.xlu0 %2071 }
 0x95b   : > { %v1869_v16 = vpack.c.bf16 %v1867_v13, %v1867_v13 }
 0x95c   : > { %v8168_v18 = vpop.eup %8167 }
 0x95d   : > { %v1868_v20 = vmul.f32 %v8168_v18, %v8164_v0  ;;  %7580 = vmatmul.mubr.msk.bf16.vlgmr.msra.gmra.mrb[16].mxu0 %vm1624_vm4, %v1869_v16 }
 0x95e   : > { %7590 = vmatpush3.bf16.msra.mxu0 %v8014_v14  ;;  %7591 = vmatprep.mubr.msk.bf16.mxu0 %vm8855_vm1, %v8853_v15 }
 0x95f   : > { %v1870_v22 = vpack.c.bf16 %v1868_v20, %v1868_v20  ;;  %7601 = vmatprep.subr.bf16.mxu0 %v8853_v15 }
 0x961   : > { %7586 = vmatmul.mubr.msk.bf16.vlgmr.msra.gmra.mrb[16].mxu1 %vm1624_vm4, %v1870_v22 }
 0x962   : > { %7596 = vmatpush3.bf16.msra.mxu1 %v8013_v17  ;;  %7597 = vmatprep.mubr.msk.bf16.mxu1 %vm8855_vm1, %v8853_v15 }
 0x963   : > { %7607 = vmatprep.subr.bf16.mxu1 %v8853_v15 }
 0x969   : > { %7598 = vmatmul.mubr.msk.bf16.vlgmr.msra.gmra.mrb[20].mxu1 %vm1530_vm2, %v1742_v34 }
 0x96a   : > { %7609 = vmatprep.mubr.msk.bf16.mxu1 %vm8855_vm1, %v8853_v15 }
 0x96b   : > { %7608 = vmatpush3.bf16.xpose.msra.mxu1 %v2128_v26 }
 0x96c   : > { %7619 = vmatprep.subr.bf16.mxu1 %v8853_v15 }
 0x972   : > { %7610 = vmatmul.mubr.msk.bf16.vlgmr.msra.gmra.mrb[24].mxu1 %vm1530_vm2, %v2123_v27 }
 0x973   : > { %7621 = vmatprep.mubr.msk.bf16.mxu1 %vm8855_vm1, %v8853_v15 }
 0xa30   : > { %v1913_v29 = vpop.f32.mrb[16].mxu0 }
 0xa31   : > { %v7581_v32 = vpop.f32.mrb[17].mxu0 }
 0xa32   : > { %v1916_v35 = vpop.f32.mrb[18].mxu0 }
 0xa33   : > { %v7582_v33 = vpop.f32.mrb[19].mxu0 }
 0xa34   : > { %v1961_v34 = vpop.f32.mrb[16].mxu1 }
 0xa35   : > { %v1967_v36 = vpack.c.bf16 %v1961_v34, %v1913_v29  ;;  %v7587_v37 = vpop.f32.mrb[17].mxu1 }
 0xa36   : > { %v1964_v38 = vpop.f32.mrb[18].mxu1 }
 0xa37   : > { %v7588_v40 = vpop.f32.mrb[19].mxu1  ;;  %7592 = vmatmul.mubr.msk.bf16.vlgmr.msra.gmra.mrb[20].mxu0 %vm1530_vm2, %v1967_v36 }
 0xa38   : > { %7602 = vmatpush3.bf16.xpose.msra.mxu0 %v2077_v39  ;;  %7603 = vmatprep.mubr.msk.bf16.mxu0 %vm8855_vm1, %v8853_v15 }
 0xa39   : > { %7613 = vmatprep.subr.bf16.mxu0 %v8853_v15 }
 0xa3c   : > { %v2061_v42 = vpop.f32.mrb[20].mxu1 }
 0xa3d   : > { %v7599_v45 = vpop.f32.mrb[21].mxu1 }
 0xa3e   : > { %v2064_v47 = vpop.f32.mrb[22].mxu1 }
 0xa3f   : > { %v7600_v48 = vpop.f32.mrb[23].mxu1  ;;  %7604 = vmatmul.mubr.msk.bf16.vlgmr.msra.gmra.mrb[24].mxu0 %vm1530_vm2, %v2072_v46 }
 0xa40   : > { %7615 = vmatprep.mubr.msk.bf16.mxu0 %vm8855_vm1, %v8853_v15 }
 0xa45   : > { %v2164_v49 = vpop.f32.mrb[24].mxu1 }
 0xa46   : > { %v2165_v50 = vadd.f32 %v2164_v49, %v9692_v44  ;;  %v7611_v51 = vpop.f32.mrb[25].mxu1 }
 0xa47   : > { %v2167_v52 = vpop.f32.mrb[26].mxu1 }
 0xa48   : > { %v7612_v53 = vpop.f32.mrb[27].mxu1  ;;  %v2173_v54 = vsel %vm1624_vm4, %v2165_v50, -inf }
 0xa49   : > { %2174 = vmax.xlane.f32.xlu1 %v2173_v54 }
 0xa5a   : > { %2242 = vrot.lane.b32.xlu1 %v9671_v31, %s8858_s20 }
 0xa5e   : > { %2343 = vrot.lane.b32.xlu1 %v9658_v21, %s8859_s26 }
 0xa62   : > { %2394 = vrot.lane.b32.xlu1 %v9661_v23, %s8859_s26 }
 0xa66   : > { %2397 = vrot.lane.b32.xlu1 %v9710_v7, %s8859_s26 }
 0xad6   : > { %v2175_v55 = vpop.xlane.xlu1 %2174 }
 0xad7   : > { %v2177_v58 = vsub.f32 %v2165_v50, %v2175_v55 }
 0xad9   : > { %v2180_v59 = vmul.f32 1.442695, %v2177_v58 }
 0xada   : > { %v2243_v56 = vpop.permute.xlu1 %2242 }
 0xadb   : > { %v2248_v57 = vsel %vm1652_vm3, %v2243_v56, 0  ;;  %8169 = vpow2.f32 %v2180_v59 }
 0xadc   : > { %7620 = vmatpush3.bf16.msra.mxu1 %v2248_v57 }
 0xadd   : > { %7631 = vmatprep.subr.bf16.mxu1 %v8853_v15 }
 0xade   : > { %v2344_v22 = vpop.permute.xlu1 %2343 }
 0xadf   : > { %v2345_v27 = vrot.slane %v2344_v22, 4 }
 0xae1   : > { %v2352_v35 = vsel %vm1530_vm2, %v2345_v27, 0 }
 0xae2   : > { %v2395_v52 = vpop.permute.xlu1 %2394 }
 0xae3   : > { %v2396_v55 = vrot.slane %v2395_v52, 4 }
 0xae5   : > { %v8170_v14 = vpop.eup %8169 }
 0xae6   : > { %v2185_v16 = vsel %vm1624_vm4, %v8170_v14, 0.0 }
 0xb0a   : > { %v2011_v60 = vpop.f32.mrb[20].mxu0 }
 0xb0b   : > { %v9801_v61 = vadd.f32 %v2061_v42, %v2011_v60  ;;  %v7593_v62 = vpop.f32.mrb[21].mxu0  ;;  %v2403_v60 = vsel %vm1530_vm2, %v2396_v55, 0 }
 0xb0c   : > { %v2014_v63 = vpop.f32.mrb[22].mxu0 }
 0xb0d   : > { %v9803_v0 = vadd.f32 %v2064_v47, %v2014_v63  ;;  %v7594_v3 = vpop.f32.mrb[23].mxu0  ;;  %v8015_v47 = vld [vmem:[%s9541_s30 + $0x10] sm:$0xff]   ;;  %v2398_v63 = vpop.permute.xlu1 %2397 }
 0xb12   : > { %v2113_v5 = vpop.f32.mrb[24].mxu0 }
 0xb13   : > { %v2114_v9 = vadd.f32 %v2113_v5, %v9689_v43  ;;  %v7605_v11 = vpop.f32.mrb[25].mxu0 }
 0xb14   : > { %v2116_v12 = vpop.f32.mrb[26].mxu0 }
 0xb15   : > { %v7606_v10 = vpop.f32.mrb[27].mxu0  ;;  %v2170_v13 = vsel %vm1624_vm4, %v2114_v9, -inf }
 0xb16   : > { %2171 = vmax.xlane.f32.xlu0 %v2170_v13 }
 0xb1a   : > { %2186 = vadd.xlane.f32.xlu0 %v2185_v16 }
 0xba3   : > { %v2172_v18 = vpop.xlane.xlu0 %2171 }
 0xba4   : > { %v2176_v19 = vsub.f32 %v2114_v9, %v2172_v18 }
 0xba6   : > { %v2178_v20 = vmul.f32 1.442695, %v2176_v19 }
 0xba7   : > { %v2187_v17 = vpop.xlane.xlu0 %2186 }
 0xba8   : > { %8171 = vpow2.f32 %v2178_v20 }
 0xba9   : > { %8173 = vrcp.f32 %v2187_v17 }
 0xbb2   : > { %v8172_v24 = vpop.eup %8171 }
 0xbb3   : > { %v8174_v25 = vpop.eup %8173  ;;  %v2182_v26 = vsel %vm1624_vm4, %v8172_v24, 0.0 }
 0xbb4   : > { %v2191_v29 = vmul.f32 %v8174_v25, %v8170_v14  ;;  %2183 = vadd.xlane.f32.xlu0 %v2182_v26 }
 0xbb6   : > { %v2193_v32 = vpack.c.bf16 %v2191_v29, %v2191_v29 }
 0xbb8   : > { %7622 = vmatmul.mubr.msk.bf16.vlgmr.msra.gmra.mrb[28].mxu1 %vm1624_vm4, %v2193_v32 }
 0xbb9   : > { %7632 = vmatpush3.bf16.xpose.msra.mxu1 %v2352_v35  ;;  %7633 = vmatprep.mubr.msk.bf16.mxu1 %vm8855_vm1, %v8853_v15 }
 0xbba   : > { %7643 = vmatprep.subr.bf16.mxu1 %v8853_v15 }
 0xbca   : > { %2194 = vrot.lane.b32.xlu0 %v9668_v30, %s8858_s20 }
 0xbce   : > { %2346 = vrot.lane.b32.xlu0 %v9704_v6, %s8859_s26 }
 0xc41   : > { %v2184_v28 = vpop.xlane.xlu0 %2183 }
 0xc42   : > { %8175 = vrcp.f32 %v2184_v28 }
 0xc45   : > { %v2195_v33 = vpop.permute.xlu0 %2194 }
 0xc46   : > { %v2200_v34 = vsel %vm1652_vm3, %v2195_v33, 0 }
 0xc47   : > { %7614 = vmatpush3.bf16.msra.mxu0 %v2200_v34 }
 0xc48   : > { %7625 = vmatprep.subr.bf16.mxu0 %v8853_v15 }
 0xc49   : > { %v2347_v36 = vpop.permute.xlu0 %2346 }
 0xc4a   : > { %7634 = vmatmul.mubr.msk.bf16.vlgmr.msra.gmra.mrb[32].mxu1 %vm1530_vm2, %v2347_v36 }
 0xc4b   : > { %7645 = vmatprep.mubr.msk.bf16.mxu1 %vm8855_vm1, %v8853_v15 }
 0xc4c   : > { %v8176_v37 = vpop.eup %8175 }
 0xc4d   : > { %v2190_v38 = vmul.f32 %v8176_v37, %v8172_v24 }
 0xc4f   : > { %v2192_v39 = vpack.c.bf16 %v2190_v38, %v2190_v38 }
 0xc51   : > { %7616 = vmatmul.mubr.msk.bf16.vlgmr.msra.gmra.mrb[28].mxu0 %vm1624_vm4, %v2192_v39 }
 0xc52   : > { %7627 = vmatprep.mubr.msk.bf16.mxu0 %vm8855_vm1, %v8853_v15  ;;  %7626 = vmatpush3.bf16.msra.mxu0 %v8015_v47 }
 0xc53   : > { %7637 = vmatprep.subr.bf16.mxu0 %v8853_v15 }
 0xc8b   : > { %v2284_v40 = vpop.f32.mrb[28].mxu1 }
 0xc8c   : > { %v7623_v42 = vpop.f32.mrb[29].mxu1 }
 0xc8d   : > { %v2287_v45 = vpop.f32.mrb[30].mxu1 }
 0xc8e   : > { %v7624_v46 = vpop.f32.mrb[31].mxu1 }
 0xd1d   : > { %v2388_v48 = vpop.f32.mrb[32].mxu1 }
 0xd1e   : > { %v2389_v49 = vadd.f32 %v2388_v48, %v9689_v43  ;;  %v7635_v50 = vpop.f32.mrb[33].mxu1 }
 0xd1f   : > { %v2391_v51 = vpop.f32.mrb[34].mxu1 }
 0xd20   : > { %v7636_v53 = vpop.f32.mrb[35].mxu1  ;;  %v2445_v54 = vsel %vm1624_vm4, %v2389_v49, -inf  ;;  %v8016_v51 = vld [vmem:[%s9541_s30 + $0x18] sm:$0xff]  }
 0xd21   : > { %2446 = vmax.xlane.f32.xlu0 %v2445_v54 }
 0xd24   : > { %v2236_v56 = vpop.f32.mrb[28].mxu0 }
 0xd25   : > { %v2290_v57 = vpack.c.bf16 %v2284_v40, %v2236_v56  ;;  %v7617_v58 = vpop.f32.mrb[29].mxu0 }
 0xd26   : > { %v2239_v59 = vpop.f32.mrb[30].mxu0 }
 0xd27   : > { %v7618_v62 = vpop.f32.mrb[31].mxu0  ;;  %7628 = vmatmul.mubr.msk.bf16.vlgmr.msra.gmra.mrb[32].mxu0 %vm1530_vm2, %v2290_v57 }
 0xd28   : > { %7638 = vmatpush3.bf16.xpose.msra.mxu0 %v2403_v60  ;;  %7639 = vmatprep.mubr.msk.bf16.mxu0 %vm8855_vm1, %v8853_v15 }
 0xd29   : > { %7649 = vmatprep.subr.bf16.mxu0 %v8853_v15 }
 0xd2f   : > { %7640 = vmatmul.mubr.msk.bf16.vlgmr.msra.gmra.mrb[36].mxu0 %vm1530_vm2, %v2398_v63 }
 0xd30   : > { %7651 = vmatprep.mubr.msk.bf16.mxu0 %vm8855_vm1, %v8853_v15 }
 0xdae   : > { %v2447_v3 = vpop.xlane.xlu0 %2446 }
 0xdaf   : > { %v2451_v5 = vsub.f32 %v2389_v49, %v2447_v3 }
 0xdb1   : > { %v2453_v9 = vmul.f32 1.442695, %v2451_v5 }
 0xdb3   : > { %8177 = vpow2.f32 %v2453_v9 }
 0xdbd   : > { %v8178_v11 = vpop.eup %8177 }
 0xdbe   : > { %v2457_v12 = vsel %vm1624_vm4, %v8178_v11, 0.0 }
 0xdbf   : > { %2458 = vadd.xlane.f32.xlu0 %v2457_v12 }
 0xdfa   : > { %v2334_v10 = vpop.f32.mrb[32].mxu0 }
 0xdfb   : > { %v9840_v13 = vadd.f32 %v2334_v10, %v9801_v61  ;;  %v7629_v14 = vpop.f32.mrb[33].mxu0 }
 0xdfc   : > { %v2337_v16 = vpop.f32.mrb[34].mxu0 }
 0xdfd   : > { %v9843_v18 = vadd.f32 %v2337_v16, %v9803_v0  ;;  %v7630_v19 = vpop.f32.mrb[35].mxu0 }
 0xe02   : > { %v2439_v20 = vpop.f32.mrb[36].mxu0 }
 0xe03   : > { %v2440_v17 = vadd.f32 %v2439_v20, %v9692_v44  ;;  %v7641_v22 = vpop.f32.mrb[37].mxu0 }
 0xe04   : > { %v2442_v24 = vpop.f32.mrb[38].mxu0 }
 0xe05   : > { %v7642_v25 = vpop.f32.mrb[39].mxu0  ;;  %v2448_v26 = vsel %vm1624_vm4, %v2440_v17, -inf }
 0xe06   : > { %2449 = vmax.xlane.f32.xlu1 %v2448_v26 }
 0xe17   : > { %2517 = vrot.lane.b32.xlu1 %v9671_v31, %s8859_s26 }
 0xe1b   : > { %2618 = vrot.lane.b32.xlu1 %v9658_v21, %s8860_s3 }
 0xe1f   : > { %2669 = vrot.lane.b32.xlu1 %v9661_v23, %s8860_s3 }
 0xe23   : > { %2672 = vrot.lane.b32.xlu1 %v9710_v7, %s8860_s3 }
 0xe4c   : > { %v2459_v33 = vpop.xlane.xlu0 %2458 }
 0xe93   : > { %v2450_v61 = vpop.xlane.xlu1 %2449 }
 0xe94   : > { %v2452_v0 = vsub.f32 %v2440_v17, %v2450_v61 }
 0xe96   : > { %v2455_v27 = vmul.f32 1.442695, %v2452_v0 }
 0xe97   : > { %v2518_v29 = vpop.permute.xlu1 %2517 }
 0xe98   : > { %8179 = vpow2.f32 %v2455_v27  ;;  %v2523_v32 = vsel %vm1652_vm3, %v2518_v29, 0 }
 0xe99   : > { %7650 = vmatpush3.bf16.msra.mxu0 %v2523_v32  ;;  %8181 = vrcp.f32 %v2459_v33 }
 0xe9a   : > { %7661 = vmatprep.subr.bf16.mxu0 %v8853_v15 }
 0xe9b   : > { %v2619_v42 = vpop.permute.xlu1 %2618 }
 0xe9c   : > { %v2620_v46 = vrot.slane %v2619_v42, 4 }
 0xe9e   : > { %v2627_v49 = vsel %vm1530_vm2, %v2620_v46, 0 }
 0xe9f   : > { %v2670_v55 = vpop.permute.xlu1 %2669 }
 0xea0   : > { %v2671_v57 = vrot.slane %v2670_v55, 4 }
 0xea2   : > { %v8180_v35 = vpop.eup %8179  ;;  %v2678_v63 = vsel %vm1530_vm2, %v2671_v57, 0 }
 0xea3   : > { %v2460_v28 = vsel %vm1624_vm4, %v8180_v35, 0.0  ;;  %v8182_v34 = vpop.eup %8181  ;;  %v2673_v12 = vpop.permute.xlu1 %2672 }
 0xea4   : > { %2461 = vadd.xlane.f32.xlu0 %v2460_v28  ;;  %v2465_v37 = vmul.f32 %v8182_v34, %v8178_v11 }
 0xea6   : > { %v2467_v40 = vpack.c.bf16 %v2465_v37, %v2465_v37 }
 0xeba   : > { %2469 = vrot.lane.b32.xlu0 %v9668_v30, %s8859_s26 }
 0xebe   : > { %2621 = vrot.lane.b32.xlu0 %v9704_v6, %s8860_s3 }
 0xf31   : > { %v2462_v36 = vpop.xlane.xlu0 %2461 }
 0xf32   : > { %8183 = vrcp.f32 %v2462_v36 }
 0xf35   : > { %v2470_v38 = vpop.permute.xlu0 %2469 }
 0xf36   : > { %v2475_v39 = vsel %vm1652_vm3, %v2470_v38, 0 }
 0xf37   : > { %7644 = vmatpush3.bf16.msra.mxu1 %v2475_v39 }
 0xf38   : > { %7655 = vmatprep.subr.bf16.mxu1 %v8853_v15 }
 0xf39   : > { %v2622_v50 = vpop.permute.xlu0 %2621 }
 0xf3a   : > { %7646 = vmatmul.mubr.msk.bf16.vlgmr.msra.gmra.mrb[36].mxu1 %vm1624_vm4, %v2467_v40 }
 0xf3b   : > { %7657 = vmatprep.mubr.msk.bf16.mxu1 %vm8855_vm1, %v8853_v15  ;;  %7656 = vmatpush3.bf16.msra.mxu1 %v8016_v51 }
 0xf3c   : > { %v8184_v45 = vpop.eup %8183  ;;  %7667 = vmatprep.subr.bf16.mxu1 %v8853_v15 }
 0xf3d   : > { %v2466_v47 = vmul.f32 %v8184_v45, %v8180_v35 }
 0xf3f   : > { %v2468_v48 = vpack.c.bf16 %v2466_v47, %v2466_v47 }
 0xf41   : > { %7652 = vmatmul.mubr.msk.bf16.vlgmr.msra.gmra.mrb[40].mxu0 %vm1624_vm4, %v2468_v48 }
 0xf42   : > { %7662 = vmatpush3.bf16.xpose.msra.mxu0 %v2627_v49  ;;  %7663 = vmatprep.mubr.msk.bf16.mxu0 %vm8855_vm1, %v8853_v15 }
 0xf43   : > { %7673 = vmatprep.subr.bf16.mxu0 %v8853_v15 }
 0xf49   : > { %7664 = vmatmul.mubr.msk.bf16.vlgmr.msra.gmra.mrb[44].mxu0 %vm1530_vm2, %v2622_v50 }
 0xf4a   : > { %7675 = vmatprep.mubr.msk.bf16.mxu0 %vm8855_vm1, %v8853_v15 }
0x100d   : > { %v2511_v52 = vpop.f32.mrb[36].mxu1 }
0x100e   : > { %v7647_v53 = vpop.f32.mrb[37].mxu1 }
0x100f   : > { %v2514_v54 = vpop.f32.mrb[38].mxu1 }
0x1010   : > { %v7648_v56 = vpop.f32.mrb[39].mxu1 }
0x1014   : > { %v2559_v58 = vpop.f32.mrb[40].mxu0 }
0x1015   : > { %v2565_v59 = vpack.c.bf16 %v2559_v58, %v2511_v52  ;;  %v7653_v60 = vpop.f32.mrb[41].mxu0 }
0x1016   : > { %v2562_v62 = vpop.f32.mrb[42].mxu0 }
0x1017   : > { %v7654_v3 = vpop.f32.mrb[43].mxu0  ;;  %7658 = vmatmul.mubr.msk.bf16.vlgmr.msra.gmra.mrb[40].mxu1 %vm1530_vm2, %v2565_v59  ;;  %v8017_v59 = vld [vmem:[%s9541_s30 + $0x20] sm:$0xff]  }
0x1018   : > { %7668 = vmatpush3.bf16.xpose.msra.mxu1 %v2678_v63  ;;  %7669 = vmatprep.mubr.msk.bf16.mxu1 %vm8855_vm1, %v8853_v15 }
0x1019   : > { %7679 = vmatprep.subr.bf16.mxu1 %v8853_v15 }
0x101c   : > { %v2663_v5 = vpop.f32.mrb[44].mxu0 }
0x101d   : > { %v2664_v9 = vadd.f32 %v2663_v5, %v9689_v43  ;;  %v7665_v11 = vpop.f32.mrb[45].mxu0 }
0x101e   : > { %v2666_v10 = vpop.f32.mrb[46].mxu0 }
0x101f   : > { %v7666_v14 = vpop.f32.mrb[47].mxu0  ;;  %7670 = vmatmul.mubr.msk.bf16.vlgmr.msra.gmra.mrb[44].mxu1 %vm1530_vm2, %v2673_v12  ;;  %v2720_v16 = vsel %vm1624_vm4, %v2664_v9, -inf }
0x1020   : > { %2721 = vmax.xlane.f32.xlu0 %v2720_v16  ;;  %7681 = vmatprep.mubr.msk.bf16.mxu1 %vm8855_vm1, %v8853_v15 }
0x10ad   : > { %v2722_v19 = vpop.xlane.xlu0 %2721 }
0x10ae   : > { %v2726_v20 = vsub.f32 %v2664_v9, %v2722_v19 }
0x10b0   : > { %v2728_v17 = vmul.f32 1.442695, %v2726_v20 }
0x10b2   : > { %8185 = vpow2.f32 %v2728_v17 }
0x10bc   : > { %v8186_v22 = vpop.eup %8185 }
0x10bd   : > { %v2732_v24 = vsel %vm1624_vm4, %v8186_v22, 0.0 }
0x10be   : > { %2733 = vadd.xlane.f32.xlu0 %v2732_v24 }
0x10ea   : > { %v2609_v25 = vpop.f32.mrb[40].mxu1 }
0x10eb   : > { %v9889_v26 = vadd.f32 %v2609_v25, %v9840_v13  ;;  %v7659_v61 = vpop.f32.mrb[41].mxu1 }
0x10ec   : > { %v2612_v0 = vpop.f32.mrb[42].mxu1 }
0x10ed   : > { %v9892_v27 = vadd.f32 %v2612_v0, %v9843_v18  ;;  %v7660_v29 = vpop.f32.mrb[43].mxu1 }
0x10f2   : > { %v2714_v32 = vpop.f32.mrb[44].mxu1 }
0x10f3   : > { %v2715_v35 = vadd.f32 %v2714_v32, %v9692_v44  ;;  %v7671_v28 = vpop.f32.mrb[45].mxu1 }
0x10f4   : > { %v2717_v33 = vpop.f32.mrb[46].mxu1 }
0x10f5   : > { %v7672_v34 = vpop.f32.mrb[47].mxu1  ;;  %v2723_v36 = vsel %vm1624_vm4, %v2715_v35, -inf }
0x10f6   : > { %2724 = vmax.xlane.f32.xlu1 %v2723_v36 }
0x1107   : > { %2792 = vrot.lane.b32.xlu1 %v9671_v31, %s8860_s3 }
0x110b   : > { %2893 = vrot.lane.b32.xlu1 %v9658_v21, %s8861_s5 }
0x110f   : > { %2944 = vrot.lane.b32.xlu1 %v9661_v23, %s8861_s5 }
0x1113   : > { %2947 = vrot.lane.b32.xlu1 %v9710_v7, %s8861_s5 }
0x114b   : > { %v2734_v45 = vpop.xlane.xlu0 %2733 }
0x1183   : > { %v2725_v13 = vpop.xlane.xlu1 %2724 }
0x1184   : > { %v2727_v18 = vsub.f32 %v2715_v35, %v2725_v13 }
0x1186   : > { %v2730_v37 = vmul.f32 1.442695, %v2727_v18 }
0x1187   : > { %v2793_v38 = vpop.permute.xlu1 %2792 }
0x1188   : > { %8187 = vpow2.f32 %v2730_v37  ;;  %v2798_v39 = vsel %vm1652_vm3, %v2793_v38, 0 }
0x1189   : > { %7680 = vmatpush3.bf16.msra.mxu1 %v2798_v39  ;;  %8189 = vrcp.f32 %v2734_v45 }
0x118a   : > { %7691 = vmatprep.subr.bf16.mxu1 %v8853_v15 }
0x118b   : > { %v2894_v52 = vpop.permute.xlu1 %2893 }
0x118c   : > { %v2895_v54 = vrot.slane %v2894_v52, 4 }
0x118e   : > { %v2902_v57 = vsel %vm1530_vm2, %v2895_v54, 0 }
0x118f   : > { %v2945_v3 = vpop.permute.xlu1 %2944 }
0x1190   : > { %v2946_v9 = vrot.slane %v2945_v3, 4 }
0x1192   : > { %v8188_v40 = vpop.eup %8187  ;;  %v2953_v16 = vsel %vm1530_vm2, %v2946_v9, 0 }
0x1193   : > { %v2735_v42 = vsel %vm1624_vm4, %v8188_v40, 0.0  ;;  %v8190_v46 = vpop.eup %8189  ;;  %v2948_v24 = vpop.permute.xlu1 %2947 }
0x1194   : > { %2736 = vadd.xlane.f32.xlu0 %v2735_v42  ;;  %v2740_v48 = vmul.f32 %v8190_v46, %v8186_v22 }
0x1196   : > { %v2742_v51 = vpack.c.bf16 %v2740_v48, %v2740_v48 }
0x11aa   : > { %2744 = vrot.lane.b32.xlu0 %v9668_v30, %s8860_s3 }
0x11ae   : > { %2896 = vrot.lane.b32.xlu0 %v9704_v6, %s8861_s5 }
0x1221   : > { %v2737_v47 = vpop.xlane.xlu0 %2736 }
0x1222   : > { %8191 = vrcp.f32 %v2737_v47 }
0x1225   : > { %v2745_v49 = vpop.permute.xlu0 %2744 }
0x1226   : > { %v2750_v50 = vsel %vm1652_vm3, %v2745_v49, 0 }
0x1227   : > { %7674 = vmatpush3.bf16.msra.mxu0 %v2750_v50 }
0x1228   : > { %7685 = vmatprep.subr.bf16.mxu0 %v8853_v15 }
0x1229   : > { %v2897_v58 = vpop.permute.xlu0 %2896 }
0x122a   : > { %7676 = vmatmul.mubr.msk.bf16.vlgmr.msra.gmra.mrb[48].mxu0 %vm1624_vm4, %v2742_v51 }
0x122b   : > { %7687 = vmatprep.mubr.msk.bf16.mxu0 %vm8855_vm1, %v8853_v15  ;;  %7686 = vmatpush3.bf16.msra.mxu0 %v8017_v59 }
0x122c   : > { %v8192_v53 = vpop.eup %8191  ;;  %7697 = vmatprep.subr.bf16.mxu0 %v8853_v15 }
0x122d   : > { %v2741_v55 = vmul.f32 %v8192_v53, %v8188_v40 }
0x122f   : > { %v2743_v56 = vpack.c.bf16 %v2741_v55, %v2741_v55 }
0x1231   : > { %7682 = vmatmul.mubr.msk.bf16.vlgmr.msra.gmra.mrb[48].mxu1 %vm1624_vm4, %v2743_v56 }
0x1232   : > { %7692 = vmatpush3.bf16.xpose.msra.mxu1 %v2902_v57  ;;  %7693 = vmatprep.mubr.msk.bf16.mxu1 %vm8855_vm1, %v8853_v15 }
0x1233   : > { %7703 = vmatprep.subr.bf16.mxu1 %v8853_v15 }
0x1239   : > { %7694 = vmatmul.mubr.msk.bf16.vlgmr.msra.gmra.mrb[52].mxu1 %vm1530_vm2, %v2897_v58 }
0x123a   : > { %7705 = vmatprep.mubr.msk.bf16.mxu1 %vm8855_vm1, %v8853_v15 }
0x12fd   : > { %v2786_v60 = vpop.f32.mrb[48].mxu0 }
0x12fe   : > { %v7677_v62 = vpop.f32.mrb[49].mxu0 }
0x12ff   : > { %v2789_v63 = vpop.f32.mrb[50].mxu0 }
0x1300   : > { %v7678_v5 = vpop.f32.mrb[51].mxu0 }
0x1304   : > { %v2834_v11 = vpop.f32.mrb[48].mxu1 }
0x1305   : > { %v2840_v12 = vpack.c.bf16 %v2834_v11, %v2786_v60  ;;  %v7683_v10 = vpop.f32.mrb[49].mxu1 }
0x1306   : > { %v2837_v14 = vpop.f32.mrb[50].mxu1 }
0x1307   : > { %v7684_v19 = vpop.f32.mrb[51].mxu1  ;;  %7688 = vmatmul.mubr.msk.bf16.vlgmr.msra.gmra.mrb[52].mxu0 %vm1530_vm2, %v2840_v12  ;;  %v8018_v12 = vld [vmem:[%s9541_s30 + $0x28] sm:$0xff]  }
0x1308   : > { %7698 = vmatpush3.bf16.xpose.msra.mxu0 %v2953_v16  ;;  %7699 = vmatprep.mubr.msk.bf16.mxu0 %vm8855_vm1, %v8853_v15 }
0x1309   : > { %7709 = vmatprep.subr.bf16.mxu0 %v8853_v15 }
0x130c   : > { %v2938_v20 = vpop.f32.mrb[52].mxu1 }
0x130d   : > { %v2939_v17 = vadd.f32 %v2938_v20, %v9689_v43  ;;  %v7695_v22 = vpop.f32.mrb[53].mxu1 }
0x130e   : > { %v2941_v25 = vpop.f32.mrb[54].mxu1 }
0x130f   : > { %v7696_v61 = vpop.f32.mrb[55].mxu1  ;;  %7700 = vmatmul.mubr.msk.bf16.vlgmr.msra.gmra.mrb[56].mxu0 %vm1530_vm2, %v2948_v24  ;;  %v2995_v0 = vsel %vm1624_vm4, %v2939_v17, -inf }
0x1310   : > { %2996 = vmax.xlane.f32.xlu0 %v2995_v0  ;;  %7711 = vmatprep.mubr.msk.bf16.mxu0 %vm8855_vm1, %v8853_v15 }
0x139d   : > { %v2997_v29 = vpop.xlane.xlu0 %2996 }
0x139e   : > { %v3001_v32 = vsub.f32 %v2939_v17, %v2997_v29 }
0x13a0   : > { %v3003_v35 = vmul.f32 1.442695, %v3001_v32 }
0x13a2   : > { %8193 = vpow2.f32 %v3003_v35 }
0x13ac   : > { %v8194_v28 = vpop.eup %8193 }
0x13ad   : > { %v3007_v33 = vsel %vm1624_vm4, %v8194_v28, 0.0 }
0x13ae   : > { %3008 = vadd.xlane.f32.xlu0 %v3007_v33 }
0x13da   : > { %v2884_v34 = vpop.f32.mrb[52].mxu0 }
0x13db   : > { %v9938_v36 = vadd.f32 %v2884_v34, %v9889_v26  ;;  %v7689_v13 = vpop.f32.mrb[53].mxu0 }
0x13dc   : > { %v2887_v18 = vpop.f32.mrb[54].mxu0 }
0x13dd   : > { %v9941_v37 = vadd.f32 %v2887_v18, %v9892_v27  ;;  %v7690_v38 = vpop.f32.mrb[55].mxu0 }
0x13e2   : > { %v2989_v39 = vpop.f32.mrb[56].mxu0 }
0x13e3   : > { %v2990_v40 = vadd.f32 %v2989_v39, %v9692_v44  ;;  %v7701_v42 = vpop.f32.mrb[57].mxu0 }
0x13e4   : > { %v2992_v45 = vpop.f32.mrb[58].mxu0 }
0x13e5   : > { %v7702_v46 = vpop.f32.mrb[59].mxu0  ;;  %v2998_v47 = vsel %vm1624_vm4, %v2990_v40, -inf }
0x13e6   : > { %2999 = vmax.xlane.f32.xlu1 %v2998_v47 }
0x13f7   : > { %3067 = vrot.lane.b32.xlu1 %v9671_v31, %s8861_s5 }
0x13fb   : > { %3168 = vrot.lane.b32.xlu1 %v9658_v21, %s8862_s16 }
0x13ff   : > { %3219 = vrot.lane.b32.xlu1 %v9661_v23, %s8862_s16 }
0x1403   : > { %3222 = vrot.lane.b32.xlu1 %v9710_v7, %s8862_s16 }
0x143b   : > { %v3009_v53 = vpop.xlane.xlu0 %3008 }
0x1473   : > { %v3000_v26 = vpop.xlane.xlu1 %2999 }
0x1474   : > { %v3002_v27 = vsub.f32 %v2990_v40, %v3000_v26 }
0x1476   : > { %v3005_v48 = vmul.f32 1.442695, %v3002_v27 }
0x1477   : > { %v3068_v49 = vpop.permute.xlu1 %3067 }
0x1478   : > { %8195 = vpow2.f32 %v3005_v48  ;;  %v3073_v50 = vsel %vm1652_vm3, %v3068_v49, 0 }
0x1479   : > { %7710 = vmatpush3.bf16.msra.mxu0 %v3073_v50  ;;  %8197 = vrcp.f32 %v3009_v53 }
0x147a   : > { %7721 = vmatprep.subr.bf16.mxu0 %v8853_v15 }
0x147b   : > { %v3169_v60 = vpop.permute.xlu1 %3168 }
0x147c   : > { %v3170_v63 = vrot.slane %v3169_v60, 4 }
0x147e   : > { %v3177_v9 = vsel %vm1530_vm2, %v3170_v63, 0 }
0x147f   : > { %v3220_v19 = vpop.permute.xlu1 %3219 }
0x1480   : > { %v3221_v17 = vrot.slane %v3220_v19, 4  ;;  %v8019_v19 = vld [vmem:[%s9541_s30 + $0x30] sm:$0xff]  }
0x1482   : > { %v8196_v51 = vpop.eup %8195  ;;  %v3228_v0 = vsel %vm1530_vm2, %v3221_v17, 0 }
0x1483   : > { %v3010_v52 = vsel %vm1624_vm4, %v8196_v51, 0.0  ;;  %v8198_v54 = vpop.eup %8197  ;;  %v3223_v33 = vpop.permute.xlu1 %3222 }
0x1484   : > { %3011 = vadd.xlane.f32.xlu0 %v3010_v52  ;;  %v3015_v56 = vmul.f32 %v8198_v54, %v8194_v28 }
0x1486   : > { %v3017_v59 = vpack.c.bf16 %v3015_v56, %v3015_v56 }
0x149a   : > { %3019 = vrot.lane.b32.xlu0 %v9668_v30, %s8861_s5 }
0x149e   : > { %3171 = vrot.lane.b32.xlu0 %v9704_v6, %s8862_s16 }
0x1511   : > { %v3012_v55 = vpop.xlane.xlu0 %3011 }
0x1512   : > { %8199 = vrcp.f32 %v3012_v55 }
0x1515   : > { %v3020_v57 = vpop.permute.xlu0 %3019 }
0x1516   : > { %v3025_v58 = vsel %vm1652_vm3, %v3020_v57, 0 }
0x1517   : > { %7704 = vmatpush3.bf16.msra.mxu1 %v3025_v58 }
0x1518   : > { %7715 = vmatprep.subr.bf16.mxu1 %v8853_v15 }
0x1519   : > { %v3172_v11 = vpop.permute.xlu0 %3171 }
0x151a   : > { %7706 = vmatmul.mubr.msk.bf16.vlgmr.msra.gmra.mrb[56].mxu1 %vm1624_vm4, %v3017_v59 }
0x151b   : > { %7717 = vmatprep.mubr.msk.bf16.mxu1 %vm8855_vm1, %v8853_v15  ;;  %7716 = vmatpush3.bf16.msra.mxu1 %v8018_v12 }
0x151c   : > { %v8200_v62 = vpop.eup %8199  ;;  %7727 = vmatprep.subr.bf16.mxu1 %v8853_v15 }
0x151d   : > { %v3016_v3 = vmul.f32 %v8200_v62, %v8196_v51 }
0x151f   : > { %v3018_v5 = vpack.c.bf16 %v3016_v3, %v3016_v3 }
0x1521   : > { %7712 = vmatmul.mubr.msk.bf16.vlgmr.msra.gmra.mrb[60].mxu0 %vm1624_vm4, %v3018_v5 }
0x1522   : > { %7722 = vmatpush3.bf16.xpose.msra.mxu0 %v3177_v9  ;;  %7723 = vmatprep.mubr.msk.bf16.mxu0 %vm8855_vm1, %v8853_v15 }
0x1523   : > { %7733 = vmatprep.subr.bf16.mxu0 %v8853_v15 }
0x1529   : > { %7724 = vmatmul.mubr.msk.bf16.vlgmr.msra.gmra.mrb[64].mxu0 %vm1530_vm2, %v3172_v11 }
0x152a   : > { %7735 = vmatprep.mubr.msk.bf16.mxu0 %vm8855_vm1, %v8853_v15 }
0x15ed   : > { %v3061_v10 = vpop.f32.mrb[56].mxu1 }
0x15ee   : > { %v7707_v14 = vpop.f32.mrb[57].mxu1 }
0x15ef   : > { %v3064_v16 = vpop.f32.mrb[58].mxu1 }
0x15f0   : > { %v7708_v20 = vpop.f32.mrb[59].mxu1 }
0x15f4   : > { %v3109_v22 = vpop.f32.mrb[60].mxu0 }
0x15f5   : > { %v3115_v24 = vpack.c.bf16 %v3109_v22, %v3061_v10  ;;  %v7713_v25 = vpop.f32.mrb[61].mxu0 }
0x15f6   : > { %v3112_v61 = vpop.f32.mrb[62].mxu0 }
0x15f7   : > { %v7714_v29 = vpop.f32.mrb[63].mxu0  ;;  %7718 = vmatmul.mubr.msk.bf16.vlgmr.msra.gmra.mrb[60].mxu1 %vm1530_vm2, %v3115_v24 }
0x15f8   : > { %7728 = vmatpush3.bf16.xpose.msra.mxu1 %v3228_v0  ;;  %7729 = vmatprep.mubr.msk.bf16.mxu1 %vm8855_vm1, %v8853_v15 }
0x15f9   : > { %7739 = vmatprep.subr.bf16.mxu1 %v8853_v15 }
0x15fc   : > { %v3213_v32 = vpop.f32.mrb[64].mxu0 }
0x15fd   : > { %v3214_v35 = vadd.f32 %v3213_v32, %v9689_v43  ;;  %v7725_v28 = vpop.f32.mrb[65].mxu0 }
0x15fe   : > { %v3216_v34 = vpop.f32.mrb[66].mxu0 }
0x15ff   : > { %v7726_v13 = vpop.f32.mrb[67].mxu0  ;;  %7730 = vmatmul.mubr.msk.bf16.vlgmr.msra.gmra.mrb[64].mxu1 %vm1530_vm2, %v3223_v33  ;;  %v3270_v18 = vsel %vm1624_vm4, %v3214_v35, -inf }
0x1600   : > { %3271 = vmax.xlane.f32.xlu0 %v3270_v18  ;;  %7741 = vmatprep.mubr.msk.bf16.mxu1 %vm8855_vm1, %v8853_v15 }
0x168d   : > { %v3272_v38 = vpop.xlane.xlu0 %3271 }
0x168e   : > { %v3276_v39 = vsub.f32 %v3214_v35, %v3272_v38 }
0x1690   : > { %v3278_v40 = vmul.f32 1.442695, %v3276_v39 }
0x1692   : > { %8201 = vpow2.f32 %v3278_v40 }
0x169c   : > { %v8202_v42 = vpop.eup %8201 }
0x169d   : > { %v3282_v45 = vsel %vm1624_vm4, %v8202_v42, 0.0 }
0x169e   : > { %3283 = vadd.xlane.f32.xlu0 %v3282_v45 }
0x16ca   : > { %v3159_v46 = vpop.f32.mrb[60].mxu1 }
0x16cb   : > { %v9987_v47 = vadd.f32 %v3159_v46, %v9938_v36  ;;  %v7719_v26 = vpop.f32.mrb[61].mxu1 }
0x16cc   : > { %v3162_v27 = vpop.f32.mrb[62].mxu1 }
0x16cd   : > { %v9990_v48 = vadd.f32 %v3162_v27, %v9941_v37  ;;  %v7720_v49 = vpop.f32.mrb[63].mxu1 }
0x16d2   : > { %v3264_v50 = vpop.f32.mrb[64].mxu1 }
0x16d3   : > { %v3265_v51 = vadd.f32 %v3264_v50, %v9692_v44  ;;  %v7731_v52 = vpop.f32.mrb[65].mxu1 }
0x16d4   : > { %v3267_v53 = vpop.f32.mrb[66].mxu1 }
0x16d5   : > { %v7732_v54 = vpop.f32.mrb[67].mxu1  ;;  %v3273_v55 = vsel %vm1624_vm4, %v3265_v51, -inf }
0x16d6   : > { %3274 = vmax.xlane.f32.xlu1 %v3273_v55 }
0x16e7   : > { %3342 = vrot.lane.b32.xlu1 %v9671_v31, %s8862_s16 }
0x16eb   : > { %3443 = vrot.lane.b32.xlu1 %v9658_v21, %s8863_s7 }
0x16ef   : > { %3494 = vrot.lane.b32.xlu1 %v9661_v23, %s8863_s7 }
0x16f3   : > { %3497 = vrot.lane.b32.xlu1 %v9710_v7, %s8863_s7 }
0x172b   : > { %v3284_v21 = vpop.xlane.xlu0 %3283 }
0x1763   : > { %v3275_v36 = vpop.xlane.xlu1 %3274 }
0x1764   : > { %v3277_v37 = vsub.f32 %v3265_v51, %v3275_v36 }
0x1766   : > { %v3280_v56 = vmul.f32 1.442695, %v3277_v37 }
0x1767   : > { %v3343_v57 = vpop.permute.xlu1 %3342 }
0x1768   : > { %8203 = vpow2.f32 %v3280_v56  ;;  %v3348_v58 = vsel %vm1652_vm3, %v3343_v57, 0 }
0x1769   : > { %7740 = vmatpush3.bf16.msra.mxu1 %v3348_v58  ;;  %8205 = vrcp.f32 %v3284_v21 }
0x176a   : > { %7751 = vmatprep.subr.bf16.mxu1 %v8853_v15 }
0x176b   : > { %v3444_v9 = vpop.permute.xlu1 %3443 }
0x176c   : > { %v3445_v11 = vrot.slane %v3444_v9, 4 }
0x176e   : > { %v3452_v14 = vsel %vm1530_vm2, %v3445_v11, 0 }
0x176f   : > { %v3495_v24 = vpop.permute.xlu1 %3494 }
0x1770   : > { %v3496_v61 = vrot.slane %v3495_v24, 4 }
0x1772   : > { %v8204_v59 = vpop.eup %8203  ;;  %v3503_v28 = vsel %vm1530_vm2, %v3496_v61, 0 }
0x1773   : > { %v3285_v60 = vsel %vm1624_vm4, %v8204_v59, 0.0  ;;  %v8206_v23 = vpop.eup %8205  ;;  %v3498_v38 = vpop.permute.xlu1 %3497 }
0x1774   : > { %3286 = vadd.xlane.f32.xlu0 %v3285_v60  ;;  %v3290_v62 = vmul.f32 %v8206_v23, %v8202_v42 }
0x1776   : > { %v3292_v5 = vpack.c.bf16 %v3290_v62, %v3290_v62 }
0x178a   : > { %3294 = vrot.lane.b32.xlu0 %v9668_v30, %s8862_s16 }
0x178e   : > { %3446 = vrot.lane.b32.xlu0 %v9704_v6, %s8863_s7 }
0x1801   : > { %v3287_v7 = vpop.xlane.xlu0 %3286 }
0x1802   : > { %8207 = vrcp.f32 %v3287_v7 }
0x1805   : > { %v3295_v63 = vpop.permute.xlu0 %3294 }
0x1806   : > { %v3300_v3 = vsel %vm1652_vm3, %v3295_v63, 0 }
0x1807   : > { %7734 = vmatpush3.bf16.msra.mxu0 %v3300_v3 }
0x1808   : > { %7745 = vmatprep.subr.bf16.mxu0 %v8853_v15 }
0x1809   : > { %v3447_v16 = vpop.permute.xlu0 %3446 }
0x180a   : > { %7736 = vmatmul.mubr.msk.bf16.vlgmr.msra.gmra.mrb[68].mxu0 %vm1624_vm4, %v3292_v5 }
0x180b   : > { %7747 = vmatprep.mubr.msk.bf16.mxu0 %vm8855_vm1, %v8853_v15  ;;  %7746 = vmatpush3.bf16.msra.mxu0 %v8019_v19 }
0x180c   : > { %v8208_v6 = vpop.eup %8207  ;;  %7757 = vmatprep.subr.bf16.mxu0 %v8853_v15 }
0x180d   : > { %v3291_v12 = vmul.f32 %v8208_v6, %v8204_v59 }
0x180f   : > { %v3293_v10 = vpack.c.bf16 %v3291_v12, %v3291_v12  ;;  %v8020_v12 = vld [vmem:[%s9541_s30 + $0x38] sm:$0xff]   ;;  %s10608_s30 = sld [smem:[#allocation43_spill]] }
0x1811   : > { %7742 = vmatmul.mubr.msk.bf16.vlgmr.msra.gmra.mrb[68].mxu1 %vm1624_vm4, %v3293_v10 }
0x1812   : > { %7752 = vmatpush3.bf16.xpose.msra.mxu1 %v3452_v14  ;;  %7753 = vmatprep.mubr.msk.bf16.mxu1 %vm8855_vm1, %v8853_v15 }
0x1813   : > { %7763 = vmatprep.subr.bf16.mxu1 %v8853_v15 }
0x1815   : > { %p7215_p11 = scmp.ne.s32.totalorder %s10608_s30, 1 }
0x1816   : > { %s10609_s28 = sld [smem:[#allocation60_spill]] (!%p7215_p11)  ;;  %vm8865_vm5 = vmmov (!%p7215_p11), 0   ;;  %s10610_s16 = sld [smem:[#allocation61_spill]] (!%p7215_p11) }
0x1819   : > { %7754 = vmatmul.mubr.msk.bf16.vlgmr.msra.gmra.mrb[72].mxu1 %vm1530_vm2, %v3447_v16 }
0x181a   : > { %7765 = vmatprep.mubr.msk.bf16.mxu1 %vm8855_vm1, %v8853_v15 }
0x18dd   : > { %v3336_v20 = vpop.f32.mrb[68].mxu0 }
0x18de   : > { %v7737_v17 = vpop.f32.mrb[69].mxu0 }
0x18df   : > { %v3339_v22 = vpop.f32.mrb[70].mxu0 }
0x18e0   : > { %v7738_v25 = vpop.f32.mrb[71].mxu0 }
0x18e4   : > { %v3384_v0 = vpop.f32.mrb[68].mxu1 }
0x18e5   : > { %v3390_v29 = vpack.c.bf16 %v3384_v0, %v3336_v20  ;;  %v7743_v32 = vpop.f32.mrb[69].mxu1 }
0x18e6   : > { %v3387_v35 = vpop.f32.mrb[70].mxu1  ;;  %v6955_v32 = vld [vmem:[%s890_s0] ss:$0 sm:$0xff] }
0x18e7   : > { %v7744_v33 = vpop.f32.mrb[71].mxu1  ;;  %7748 = vmatmul.mubr.msk.bf16.vlgmr.msra.gmra.mrb[72].mxu0 %vm1530_vm2, %v3390_v29  ;;  %v8221_v35 = vld [vmem:[#allocation2] sm:$0xff] }
0x18e8   : > { %7758 = vmatpush3.bf16.xpose.msra.mxu0 %v3503_v28  ;;  %7759 = vmatprep.mubr.msk.bf16.mxu0 %vm8855_vm1, %v8853_v15 }
0x18e9   : > { %7769 = vmatprep.subr.bf16.mxu0 %v8853_v15 }
0x18ec   : > { %v3488_v34 = vpop.f32.mrb[72].mxu1 }
0x18ed   : > { %v3489_v13 = vadd.f32 %v3488_v34, %v9689_v43  ;;  %v7755_v18 = vpop.f32.mrb[73].mxu1 }
0x18ee   : > { %v3491_v39 = vpop.f32.mrb[74].mxu1 }
0x18ef   : > { %v7756_v40 = vpop.f32.mrb[75].mxu1  ;;  %7760 = vmatmul.mubr.msk.bf16.vlgmr.msra.gmra.mrb[76].mxu0 %vm1530_vm2, %v3498_v38  ;;  %v3545_v42 = vsel %vm1624_vm4, %v3489_v13, -inf }
0x18f0   : > { %3546 = vmax.xlane.f32.xlu0 %v3545_v42  ;;  %7771 = vmatprep.mubr.msk.bf16.mxu0 %vm8855_vm1, %v8853_v15  ;;  %v3770_v40 = vld [vmem:[%s9564_s2] sm:$0xff] }
0x18f1   : > { %v3772_v42 = vld [vmem:[%s9564_s2 + $0x40] sm:$0xff] }
0x197d   : > { %v3547_v45 = vpop.xlane.xlu0 %3546 }
0x197e   : > { %v3551_v46 = vsub.f32 %v3489_v13, %v3547_v45  ;;  %v8222_v13 = vld [vmem:[#allocation2 + $0x8] sm:$0xff] }
0x197f   : > { %v3771_v45 = vld [vmem:[%s9564_s2 + $0x8] sm:$0xff] }
0x1980   : > { %v3553_v26 = vmul.f32 1.442695, %v3551_v46  ;;  %v6958_v46 = vcombine.low %v3770_v40, %v3772_v42 }
0x1982   : > { %8209 = vpow2.f32 %v3553_v26  ;;  %v6959_v26 = vcombine.high %v3770_v40, %v3772_v42  ;;  %v3796_v40 = vld [vmem:[%s9564_s2 + $0x340] sm:$0xff]  ;;  %v3795_v42 = vld [vmem:[%s9564_s2 + $0x308] sm:$0xff] }
0x198c   : > { %v8210_v27 = vpop.eup %8209 }
0x198d   : > { %v3557_v49 = vsel %vm1624_vm4, %v8210_v27, 0.0 }
0x198e   : > { %3558 = vadd.xlane.f32.xlu0 %v3557_v49  ;;  %v3774_v49 = vld [vmem:[%s9564_s2 + $0x80] sm:$0xff] }
0x19ba   : > { %v3434_v43 = vpop.f32.mrb[72].mxu0 }
0x19bb   : > { %v3441_v50 = vadd.f32 %v3434_v43, %v9987_v47  ;;  %v7749_v51 = vpop.f32.mrb[73].mxu0  ;;  %v3776_v43 = vld [vmem:[%s9564_s2 + $0xc0] sm:$0xff] }
0x19bc   : > { %v3437_v52 = vpop.f32.mrb[74].mxu0 }
0x19bd   : > { %v3442_v53 = vadd.f32 %v3437_v52, %v9990_v48  ;;  %v7750_v54 = vpop.f32.mrb[75].mxu0  ;;  %v6963_v52 = vcombine.high %v3774_v49, %v3776_v43 }
0x19be   : > { %v3777_v54 = vld [vmem:[%s9564_s2 + $0xc8] sm:$0xff] }
0x19c2   : > { %v3539_v55 = vpop.f32.mrb[76].mxu0 }
0x19c3   : > { %v3540_v36 = vadd.f32 %v3539_v55, %v9692_v44  ;;  %v7761_v37 = vpop.f32.mrb[77].mxu0 }
0x19c4   : > { %v3542_v56 = vpop.f32.mrb[78].mxu0 }
0x19c5   : > { %v7762_v57 = vpop.f32.mrb[79].mxu0  ;;  %v3548_v58 = vsel %vm1624_vm4, %v3540_v36, -inf }
0x19c6   : > { %3549 = vmax.xlane.f32.xlu1 %v3548_v58 }
0x19d7   : > { %3617 = vrot.lane.b32.xlu1 %v9671_v31, %s8863_s7 }
0x1a1b   : > { %v3559_v7 = vpop.xlane.xlu0 %3558 }
0x1a53   : > { %v3550_v59 = vpop.xlane.xlu1 %3549 }
0x1a54   : > { %v3552_v60 = vsub.f32 %v3540_v36, %v3550_v59  ;;  %v6962_v36 = vcombine.low %v3774_v49, %v3776_v43  ;;  %v3798_v43 = vld [vmem:[%s9564_s2 + $0x380] sm:$0xff] }
0x1a56   : > { %v3555_v47 = vmul.f32 1.442695, %v3552_v60 }
0x1a57   : > { %v3618_v21 = vpop.permute.xlu1 %3617 }
0x1a58   : > { %8211 = vpow2.f32 %v3555_v47  ;;  %v3623_v48 = vsel %vm1652_vm3, %v3618_v21, 0 }
0x1a59   : > { %7770 = vmatpush3.bf16.msra.mxu0 %v3623_v48  ;;  %8213 = vrcp.f32 %v3559_v7  ;;  %v3779_v7 = vld [vmem:[%s9564_s2 + $0x108] sm:$0xff] }
0x1a5a   : > { %3984 = vmatprep.subr.bf16.mxu0 %v6959_v26 }
0x1a62   : > { %v8212_v23 = vpop.eup %8211 }
0x1a63   : > { %v3560_v44 = vsel %vm1624_vm4, %v8212_v23, 0.0  ;;  %v8214_v62 = vpop.eup %8213 }
0x1a64   : > { %3561 = vadd.xlane.f32.xlu0 %v3560_v44  ;;  %v3565_v63 = vmul.f32 %v8214_v62, %v8210_v27  ;;  %v3773_v27 = vld [vmem:[%s9564_s2 + $0x48] sm:$0xff]  ;;  %v3780_v44 = vld [vmem:[%s9564_s2 + $0x140] sm:$0xff] }
0x1a65   : > { %v6961_v51 = vcombine.high %v3771_v45, %v3773_v27 }
0x1a66   : > { %v3567_v9 = vpack.c.bf16 %v3565_v63, %v3565_v63 }
0x1a7a   : > { %3569 = vrot.lane.b32.xlu0 %v9668_v30, %s8863_s7 }
0x1af1   : > { %v3562_v31 = vpop.xlane.xlu0 %3561 }
0x1af2   : > { %8215 = vrcp.f32 %v3562_v31  ;;  %v3781_v31 = vld [vmem:[%s9564_s2 + $0x148] sm:$0xff] }
0x1af5   : > { %v3570_v3 = vpop.permute.xlu0 %3569 }
0x1af6   : > { %v3575_v5 = vsel %vm1652_vm3, %v3570_v3, 0  ;;  %v6968_v3 = vcombine.low %v3779_v7, %v3781_v31 }
0x1af7   : > { %7764 = vmatpush3.bf16.msra.mxu1 %v3575_v5  ;;  %v6969_v5 = vcombine.high %v3779_v7, %v3781_v31 }
0x1af8   : > { %7775 = vmatprep.subr.bf16.mxu1 %v8853_v15 }
0x1afa   : > { %7766 = vmatmul.mubr.msk.bf16.vlgmr.msra.gmra.mrb[76].mxu1 %vm1624_vm4, %v3567_v9  ;;  %v3782_v9 = vld [vmem:[%s9564_s2 + $0x180] sm:$0xff] }
0x1afb   : > { %7777 = vmatprep.mubr.msk.bf16.mxu1 %vm8855_vm1, %v8853_v15  ;;  %7776 = vmatpush3.bf16.msra.mxu1 %v8020_v12  ;;  %v3785_v12 = vld [vmem:[%s9564_s2 + $0x1c8] sm:$0xff] }
0x1afc   : > { %v8216_v30 = vpop.eup %8215  ;;  %4027 = vmatprep.subr.bf16.mxu1 %v6961_v51  ;;  %v3799_v51 = vld [vmem:[%s9564_s2 + $0x388] sm:$0xff] }
0x1afd   : > { %v3566_v6 = vmul.f32 %v8216_v30, %v8212_v23  ;;  %v3778_v23 = vld [vmem:[%s9564_s2 + $0x100] sm:$0xff] }
0x1afe   : > { %v6967_v62 = vcombine.high %v3778_v23, %v3780_v44  ;;  %v6966_v63 = vcombine.low %v3778_v23, %v3780_v44  ;;  %v3784_v30 = vld [vmem:[%s9564_s2 + $0x1c0] sm:$0xff] }
0x1aff   : > { %v3568_v11 = vpack.c.bf16 %v3566_v6, %v3566_v6  ;;  %v3783_v6 = vld [vmem:[%s9564_s2 + $0x188] sm:$0xff] }
0x1b01   : > { %7772 = vmatmul.mubr.msk.bf16.vlgmr.msra.gmra.mrb[80].mxu0 %vm1624_vm4, %v3568_v11  ;;  %v6971_v11 = vcombine.high %v3782_v9, %v3784_v30 }
0x1b02   : > { %4016 = vmatprep.mubr.bf16.mxu0 %v8854_v41  ;;  %3985 = vmatpush1.bf16.msra.mxu0 %v6958_v46  ;;  %v3797_v46 = vld [vmem:[%s9564_s2 + $0x348] sm:$0xff] }
0x1b03   : > { %3986 = vmatprep.subr.bf16.mxu0 %v6963_v52  ;;  %v6985_v49 = vcombine.high %v3795_v42, %v3797_v46 }
0x1b06   : > { %3987 = vmatpush1.bf16.msra.mxu0 %v6962_v36 }
0x1b07   : > { %3988 = vmatprep.subr.bf16.mxu0 %v6967_v62 }
0x1b0a   : > { %3989 = vmatpush1.bf16.msra.mxu0 %v6966_v63 }
0x1b0b   : > { %3990 = vmatprep.subr.bf16.mxu0 %v6971_v11 }
0x1bcd   : > { %v3611_v10 = vpop.f32.mrb[76].mxu1 }
0x1bce   : > { %v7767_v14 = vpop.f32.mrb[77].mxu1 }
0x1bcf   : > { %v3614_v16 = vpop.f32.mrb[78].mxu1  ;;  %v6972_v14 = vcombine.low %v3783_v6, %v3785_v12 }
0x1bd0   : > { %v7768_v19 = vpop.f32.mrb[79].mxu1  ;;  %v6973_v16 = vcombine.high %v3783_v6, %v3785_v12 }
0x1bd1   : > { %v3786_v19 = vld [vmem:[%s9564_s2 + $0x200] sm:$0xff] }
0x1bd4   : > { %v3659_v20 = vpop.f32.mrb[80].mxu0 }
0x1bd5   : > { %v3665_v17 = vpack.c.bf16 %v3659_v20, %v3611_v10  ;;  %v7773_v22 = vpop.f32.mrb[81].mxu0  ;;  %v6970_v10 = vcombine.low %v3782_v9, %v3784_v30  ;;  %v3788_v20 = vld [vmem:[%s9564_s2 + $0x240] sm:$0xff]  ;;  %v6956_v9 = vld [vmem:[%s914_s25] ss:$0 sm:$0xff] }
0x1bd6   : > { %v3662_v24 = vpop.f32.mrb[82].mxu0  ;;  %v6975_v22 = vcombine.high %v3786_v19, %v3788_v20 }
0x1bd7   : > { %v7774_v25 = vpop.f32.mrb[83].mxu0  ;;  %7778 = vmatmul.mubr.msk.bf16.vlgmr.msra.gmra.mrb[80].mxu1 %vm1530_vm2, %v3665_v17  ;;  %3991 = vmatpush1.bf16.msra.mxu0 %v6970_v10  ;;  %v3787_v17 = vld [vmem:[%s9564_s2 + $0x208] sm:$0xff]  ;;  %v6957_v10 = vld [vmem:[%s922_s9] ss:$0 sm:$0xff] }
0x1bd8   : > { %4059 = vmatprep.mubr.bf16.mxu1 %v8854_v41  ;;  %v3789_v24 = vld [vmem:[%s9564_s2 + $0x248] sm:$0xff]  ;;  %v6974_v25 = vcombine.low %v3786_v19, %v3788_v20  ;;  %3992 = vmatprep.subr.bf16.mxu0 %v6975_v22  ;;  %v4152_v19 = vld [vmem:[%s9564_s2 + $0xd0] sm:$0xff]  ;;  %v4151_v20 = vld [vmem:[%s9564_s2 + $0x98] sm:$0xff] }
0x1bdb   : > { %3993 = vmatpush1.bf16.msra.mxu0 %v6974_v25 }
0x1caa   : > { %v3709_v15 = vpop.f32.mrb[80].mxu1 }
0x1cab   : > { %v3716_v61 = vadd.f32 %v3709_v15, %v3441_v50  ;;  %v7779_v0 = vpop.f32.mrb[81].mxu1  ;;  %v6960_v50 = vcombine.low %v3771_v45, %v3773_v27  ;;  %v6976_v15 = vcombine.low %v3787_v17, %v3789_v24  ;;  %v6984_v27 = vcombine.low %v3795_v42, %v3797_v46 }
0x1cac   : > { %v3712_v29 = vpop.f32.mrb[82].mxu1  ;;  %v3790_v0 = vld [vmem:[%s9564_s2 + $0x280] sm:$0xff] }
0x1cad   : > { %v3718_v28 = vadd.f32 %v8221_v35, %v3716_v61  ;;  %v3717_v33 = vadd.f32 %v3712_v29, %v3442_v53  ;;  %v7780_v34 = vpop.f32.mrb[83].mxu1  ;;  %v3775_v53 = vld [vmem:[%s9564_s2 + $0x88] sm:$0xff]  ;;  %4028 = vmatpush1.bf16.msra.mxu1 %v6960_v50  ;;  %v6977_v61 = vcombine.high %v3787_v17, %v3789_v24  ;;  %v3792_v29 = vld [vmem:[%s9564_s2 + $0x2c0] sm:$0xff]  ;;  %v4153_v17 = vld [vmem:[%s9564_s2 + $0xd8] sm:$0xff] }
0x1cae   : > { %v6965_v55 = vcombine.high %v3775_v53, %v3777_v54  ;;  %v6964_v37 = vcombine.low %v3775_v53, %v3777_v54  ;;  %v6979_v35 = vcombine.high %v3790_v0, %v3792_v29  ;;  %v3800_v50 = vld [vmem:[%s9564_s2 + $0x3c0] sm:$0xff]  ;;  %v3801_v53 = vld [vmem:[%s9564_s2 + $0x3c8] sm:$0xff] }
0x1caf   : > { %v3719_v18 = vadd.f32 %v8222_v13, %v3717_v33  ;;  %v10057_v38 = vadd.f32 %v6955_v32, %v3718_v28  ;;  %v3793_v28 = vld [vmem:[%s9564_s2 + $0x2c8] sm:$0xff]  ;;  %v6978_v33 = vcombine.low %v3790_v0, %v3792_v29  ;;  %v6987_v52 = vcombine.high %v3798_v43, %v3800_v50  ;;  %v4156_v0 = vld [vmem:[%s9564_s2 + $0x150] sm:$0xff]  ;;  %v4157_v29 = vld [vmem:[%s9564_s2 + $0x158] sm:$0xff] }
0x1cb0   : > { %4029 = vmatprep.subr.bf16.mxu1 %v6965_v55  ;;  %3994 = vmatprep.subr.bf16.mxu0 %v6979_v35  ;;  %v6986_v54 = vcombine.low %v3798_v43, %v3800_v50  ;;  %v6988_v55 = vcombine.low %v3799_v51, %v3801_v53  ;;  %v6989_v36 = vcombine.high %v3799_v51, %v3801_v53  ;;  %v4163_v43 = vld [vmem:[%s9564_s2 + $0x218] sm:$0xff] }
0x1cb1   : > { %3731 = vadd.xlane.f32.xlu1 %v10057_v38  ;;  %v10060_v39 = vadd.f32 %v6955_v32, %v3719_v18  ;;  %4030 = vmatpush1.bf16.msra.mxu1 %v6964_v37  ;;  %v3791_v32 = vld [vmem:[%s9564_s2 + $0x288] sm:$0xff]  ;;  %v3794_v18 = vld [vmem:[%s9564_s2 + $0x300] sm:$0xff]  ;;  %v4146_v37 = vld [vmem:[%s9564_s2 + $0x10] sm:$0xff]  ;;  %v6996_v35 = vcombine.low %v4151_v20, %v4153_v17 }
0x1cb2   : > { %4031 = vmatprep.subr.bf16.mxu1 %v6969_v5  ;;  %v6980_v34 = vcombine.low %v3791_v32, %v3793_v28  ;;  %v6981_v13 = vcombine.high %v3791_v32, %v3793_v28  ;;  %3995 = vmatpush1.bf16.msra.mxu0 %v6978_v33  ;;  %v6983_v45 = vcombine.high %v3794_v18, %v3796_v40  ;;  %v4165_v50 = vld [vmem:[%s9564_s2 + $0x258] sm:$0xff] }
0x1cb3   : > { %3733 = vadd.xlane.f32.xlu0 %v10060_v39  ;;  %v6982_v26 = vcombine.low %v3794_v18, %v3796_v40  ;;  %v4159_v18 = vld [vmem:[%s9564_s2 + $0x198] sm:$0xff] }
0x1cb4   : > { %3996 = vmatprep.subr.bf16.mxu0 %v6983_v45  ;;  %v4161_v40 = vld [vmem:[%s9564_s2 + $0x1d8] sm:$0xff] }
0x1cb5   : > { %4032 = vmatpush1.bf16.msra.mxu1 %v6968_v3 }
0x1cb6   : > { %4033 = vmatprep.subr.bf16.mxu1 %v6973_v16  ;;  %3997 = vmatpush1.bf16.msra.mxu0 %v6982_v26  ;;  %v4150_v16 = vld [vmem:[%s9564_s2 + $0x90] sm:$0xff]  ;;  %v7005_v26 = vcombine.high %v4159_v18, %v4161_v40 }
0x1cb7   : > { %3998 = vmatprep.subr.bf16.mxu0 %v6987_v52  ;;  %v6994_v32 = vcombine.low %v4150_v16, %v4152_v19  ;;  %v7004_v52 = vcombine.low %v4159_v18, %v4161_v40  ;;  %v8037_v18 = vld [vmem:[%s9574_s11 + $0x160] sm:$0xff]  }
0x1cb8   : > { %v8038_v40 = vld [vmem:[%s9574_s11 + $0x1e0] sm:$0xff]  }
0x1cb9   : > { %4034 = vmatpush1.bf16.msra.mxu1 %v6972_v14 }
0x1cba   : > { %4035 = vmatprep.subr.bf16.mxu1 %v6977_v61  ;;  %3999 = vmatpush1.bf16.msra.mxu0 %v6986_v54  ;;  %v4154_v61 = vld [vmem:[%s9564_s2 + $0x110] sm:$0xff]  ;;  %v7009_v54 = vcombine.high %v4163_v43, %v4165_v50 }
0x1cbb   : > { %v6999_v28 = vcombine.high %v4154_v61, %v4156_v0  ;;  %v6998_v42 = vcombine.low %v4154_v61, %v4156_v0  ;;  %v8027_v61 = vld [vmem:[%s9574_s11 + $0x108] sm:$0xff]  }
0x1cbc   : > { %v8028_v0 = vld [vmem:[%s9574_s11 + $0x188] sm:$0xff]  }
0x1cbd   : > { %4036 = vmatpush1.bf16.msra.mxu1 %v6976_v15  ;;  %v6995_v15 = vcombine.high %v4150_v16, %v4152_v19 }
0x1cbe   : > { %4037 = vmatprep.subr.bf16.mxu1 %v6981_v13  ;;  %v4160_v13 = vld [vmem:[%s9564_s2 + $0x1d0] sm:$0xff] }
0x1cc1   : > { %4038 = vmatpush1.bf16.msra.mxu1 %v6980_v34  ;;  %v4158_v34 = vld [vmem:[%s9564_s2 + $0x190] sm:$0xff] }
0x1cc2   : > { %4039 = vmatprep.subr.bf16.mxu1 %v6985_v49  ;;  %v7003_v46 = vcombine.high %v4158_v34, %v4160_v13  ;;  %v4164_v49 = vld [vmem:[%s9564_s2 + $0x250] sm:$0xff]  ;;  %v7002_v51 = vcombine.low %v4158_v34, %v4160_v13  ;;  %v8035_v34 = vld [vmem:[%s9574_s11 + $0x118] sm:$0xff]  }
0x1cc3   : > { %v8036_v13 = vld [vmem:[%s9574_s11 + $0x198] sm:$0xff]  }
0x1cc5   : > { %4040 = vmatpush1.bf16.msra.mxu1 %v6984_v27  ;;  %v4162_v27 = vld [vmem:[%s9564_s2 + $0x210] sm:$0xff] }
0x1cc6   : > { %4041 = vmatprep.subr.bf16.mxu1 %v6989_v36  ;;  %v7007_v53 = vcombine.high %v4162_v27, %v4164_v49  ;;  %v4168_v36 = vld [vmem:[%s9564_s2 + $0x2d0] sm:$0xff] }
0x1cc9   : > { %4042 = vmatpush1.bf16.msra.mxu1 %v6988_v55  ;;  %v4166_v55 = vld [vmem:[%s9564_s2 + $0x290] sm:$0xff] }
0x1d3e   : > { %v3732_v56 = vpop.xlane.xlu1 %3731 }
0x1d3f   : > { %v3735_v57 = vmul.f32 0.0078125, %v3732_v56  ;;  %v4148_v56 = vld [vmem:[%s9564_s2 + $0x50] sm:$0xff] }
0x1d40   : > { %v3734_v58 = vpop.xlane.xlu0 %3733 }
0x1d41   : > { %v10072_v59 = vsub.f32 %v10057_v38, %v3735_v57  ;;  %v3736_v60 = vmul.f32 0.0078125, %v3734_v58  ;;  %v4147_v57 = vld [vmem:[%s9564_s2 + $0x18] sm:$0xff]  ;;  %v6990_v58 = vcombine.low %v4146_v37, %v4148_v56 }
0x1d43   : > { %v10075_v47 = vsub.f32 %v10060_v39, %v3736_v60  ;;  %v3739_v21 = vmul.f32 %v10072_v59, %v10072_v59  ;;  %v6991_v60 = vcombine.high %v4146_v37, %v4148_v56  ;;  %v4167_v37 = vld [vmem:[%s9564_s2 + $0x298] sm:$0xff] }
0x1d44   : > { %v4169_v56 = vld [vmem:[%s9564_s2 + $0x2d8] sm:$0xff] }
0x1d45   : > { %3741 = vadd.xlane.f32.xlu0 %v3739_v21  ;;  %v3740_v48 = vmul.f32 %v10075_v47, %v10075_v47  ;;  %v4149_v21 = vld [vmem:[%s9564_s2 + $0x58] sm:$0xff]  ;;  %4360 = vmatprep.subr.bf16.mxu0 %v6991_v60  ;;  %v7011_v60 = vcombine.high %v4166_v55, %v4168_v36 }
0x1d46   : > { %v6993_v23 = vcombine.high %v4147_v57, %v4149_v21 }
0x1d47   : > { %3743 = vadd.xlane.f32.xlu1 %v3740_v48  ;;  %v6992_v48 = vcombine.low %v4147_v57, %v4149_v21  ;;  %v7006_v57 = vcombine.low %v4162_v27, %v4164_v49  ;;  %v7013_v21 = vcombine.high %v4167_v37, %v4169_v56  ;;  %v8043_v27 = vld [vmem:[%s9574_s11 + $0x128] sm:$0xff]  }
0x1d48   : > { %4403 = vmatprep.subr.bf16.mxu1 %v6993_v23  ;;  %v4172_v23 = vld [vmem:[%s9564_s2 + $0x350] sm:$0xff]  ;;  %v8044_v49 = vld [vmem:[%s9574_s11 + $0x1a8] sm:$0xff]  }
0x1dd2   : > { %v3742_v44 = vpop.xlane.xlu0 %3741 }
0x1dd3   : > { %v3745_v7 = vmul.f32 0.0078125, %v3742_v44  ;;  %v4171_v44 = vld [vmem:[%s9564_s2 + $0x318] sm:$0xff] }
0x1dd4   : > { %v3744_v62 = vpop.xlane.xlu1 %3743 }
0x1dd5   : > { %v3747_v31 = vadd.f32 1e-05, %v3745_v7  ;;  %v3746_v63 = vmul.f32 0.0078125, %v3744_v62  ;;  %v4173_v7 = vld [vmem:[%s9564_s2 + $0x358] sm:$0xff]  ;;  %v7010_v62 = vcombine.low %v4166_v55, %v4168_v36 }
0x1dd6   : > { %v8051_v55 = vld [vmem:[%s9574_s11 + $0x138] sm:$0xff]  }
0x1dd7   : > { %8217 = vrsqrt.f32 %v3747_v31  ;;  %v3748_v3 = vadd.f32 1e-05, %v3746_v63  ;;  %v7012_v31 = vcombine.low %v4167_v37, %v4169_v56  ;;  %v8052_v36 = vld [vmem:[%s9574_s11 + $0x1b8] sm:$0xff]   ;;  %v8053_v37 = vld [vmem:[%s9574_s11 + $0x40] sm:$0xff]  }
0x1dd8   : > { %v8054_v56 = vld [vmem:[%s9574_s11 + $0xc0] sm:$0xff]  }
0x1dd9   : > { %8219 = vrsqrt.f32 %v3748_v3  ;;  %v7017_v3 = vcombine.high %v4171_v44, %v4173_v7 }
0x1de1   : > { %v8218_v5 = vpop.eup %8217 }
0x1de2   : > { %v3751_v30 = vmul.f32 %v8218_v5, %v10072_v59  ;;  %v6997_v59 = vcombine.high %v4151_v20, %v4153_v17  ;;  %v4174_v5 = vld [vmem:[%s9564_s2 + $0x390] sm:$0xff]  ;;  %v8021_v20 = vld [vmem:[%s9574_s11 + $0x140] sm:$0xff]  }
0x1de3   : > { %v8220_v6 = vpop.eup %8219  ;;  %v8022_v17 = vld [vmem:[%s9574_s11 + $0x1c0] sm:$0xff]  }
0x1de4   : > { %v3759_v11 = vmul.f32 %v6956_v9, %v3751_v30  ;;  %v3752_v12 = vmul.f32 %v8220_v6, %v10075_v47  ;;  %v4155_v47 = vld [vmem:[%s9564_s2 + $0x118] sm:$0xff] }
0x1de5   : > { %v7001_v33 = vcombine.high %v4155_v47, %v4157_v29  ;;  %v7000_v45 = vcombine.low %v4155_v47, %v4157_v29  ;;  %v4175_v30 = vld [vmem:[%s9564_s2 + $0x398] sm:$0xff]  ;;  %v8029_v47 = vld [vmem:[%s9574_s11 + $0x150] sm:$0xff]  }
0x1de6   : > { %v3760_v14 = vmul.f32 %v6956_v9, %v3752_v12  ;;  %v3767_v22 = vadd.f32 %v6957_v10, %v3759_v11  ;;  %v4176_v9 = vld [vmem:[%s9564_s2 + $0x3d0] sm:$0xff]  ;;  %v4177_v6 = vld [vmem:[%s9564_s2 + $0x3d8] sm:$0xff]  ;;  %v7016_v12 = vcombine.low %v4171_v44, %v4173_v7 }
0x1de7   : > { %v7018_v16 = vcombine.low %v4174_v5, %v4176_v9  ;;  %v7020_v19 = vcombine.low %v4175_v30, %v4177_v6  ;;  %v8030_v29 = vld [vmem:[%s9574_s11 + $0x1d0] sm:$0xff]  }
0x1de8   : > { %v3768_v24 = vadd.f32 %v6957_v10, %v3760_v14  ;;  %v7019_v10 = vcombine.high %v4174_v5, %v4176_v9  ;;  %v7021_v14 = vcombine.high %v4175_v30, %v4177_v6 }
0x1dea   : > { %v10119_v25 = vpack.c.bf16 %v3768_v24, %v3767_v22  ;;  %v8023_v22 = vld [vmem:[%s9574_s11 + $0x100] sm:$0xff]  }
0x1deb   : > { %v8024_v24 = vld [vmem:[%s9574_s11 + $0x180] sm:$0xff]  }
0x1dec   : > { %4017 = vmatmul.mubr.bf16.vlgmr.msra.gmra.mrb[84].mxu0 %v10119_v25  ;;  %4060 = vmatmul.mubr.bf16.vlgmr.msra.gmra.mrb[84].mxu1 %v10119_v25 }
0x1ded   : > { %4361 = vmatpush1.bf16.msra.mxu0 %v6990_v58  ;;  %4404 = vmatpush1.bf16.msra.mxu1 %v6992_v48  ;;  %v7008_v58 = vcombine.low %v4163_v43, %v4165_v50  ;;  %v4170_v48 = vld [vmem:[%s9564_s2 + $0x310] sm:$0xff] }
0x1dee   : > { %4362 = vmatprep.subr.bf16.mxu0 %v6995_v15  ;;  %4405 = vmatprep.subr.bf16.mxu1 %v6997_v59  ;;  %v7015_v63 = vcombine.high %v4170_v48, %v4172_v23  ;;  %v7014_v11 = vcombine.low %v4170_v48, %v4172_v23  ;;  %v8025_v15 = vld [vmem:[%s9574_s11 + $0x148] sm:$0xff]   ;;  %v8045_v43 = vld [vmem:[%s9574_s11 + $0x170] sm:$0xff]  }
0x1def   : > { %4392 = vmatprep.mubr.bf16.mxu0 %v8854_v41  ;;  %4435 = vmatprep.mubr.bf16.mxu1 %v8854_v41  ;;  %v8026_v59 = vld [vmem:[%s9574_s11 + $0x1c8] sm:$0xff]   ;;  %v8046_v50 = vld [vmem:[%s9574_s11 + $0x1f0] sm:$0xff]  }
0x1df1   : > { %4363 = vmatpush1.bf16.msra.mxu0 %v6994_v32  ;;  %4406 = vmatpush1.bf16.msra.mxu1 %v6996_v35  ;;  %v8031_v32 = vld [vmem:[%s9574_s11 + $0x110] sm:$0xff]  }
0x1df2   : > { %4364 = vmatprep.subr.bf16.mxu0 %v6999_v28  ;;  %4407 = vmatprep.subr.bf16.mxu1 %v7001_v33  ;;  %v8032_v35 = vld [vmem:[%s9574_s11 + $0x190] sm:$0xff]   ;;  %v8033_v28 = vld [vmem:[%s9574_s11 + $0x158] sm:$0xff]  }
0x1df3   : > { %v8034_v33 = vld [vmem:[%s9574_s11 + $0x1d8] sm:$0xff]  }
0x1df5   : > { %4365 = vmatpush1.bf16.msra.mxu0 %v6998_v42  ;;  %4408 = vmatpush1.bf16.msra.mxu1 %v7000_v45  ;;  %v8039_v42 = vld [vmem:[%s9574_s11 + $0x120] sm:$0xff]  }
0x1df6   : > { %4366 = vmatprep.subr.bf16.mxu0 %v7003_v46  ;;  %4409 = vmatprep.subr.bf16.mxu1 %v7005_v26  ;;  %v8040_v45 = vld [vmem:[%s9574_s11 + $0x1a0] sm:$0xff]   ;;  %v8041_v46 = vld [vmem:[%s9574_s11 + $0x168] sm:$0xff]  }
0x1df7   : > { %v8042_v26 = vld [vmem:[%s9574_s11 + $0x1e8] sm:$0xff]  }
0x1df9   : > { %4367 = vmatpush1.bf16.msra.mxu0 %v7002_v51  ;;  %4410 = vmatpush1.bf16.msra.mxu1 %v7004_v52  ;;  %v8047_v51 = vld [vmem:[%s9574_s11 + $0x130] sm:$0xff]  }
0x1dfa   : > { %4368 = vmatprep.subr.bf16.mxu0 %v7007_v53  ;;  %4411 = vmatprep.subr.bf16.mxu1 %v7009_v54  ;;  %v8048_v52 = vld [vmem:[%s9574_s11 + $0x1b0] sm:$0xff]   ;;  %v8049_v53 = vld [vmem:[%s9574_s11 + $0x178] sm:$0xff]  }
0x1dfb   : > { %v8050_v54 = vld [vmem:[%s9574_s11 + $0x1f8] sm:$0xff]  }
0x1dfd   : > { %4369 = vmatpush1.bf16.msra.mxu0 %v7006_v57  ;;  %4412 = vmatpush1.bf16.msra.mxu1 %v7008_v58  ;;  %v3802_v57 = vld [vmem:[%s9571_s18] sm:$0xf]  ;;  %v10187_v58 = vsub.s32 3, %v9638_v1 }
0x1dfe   : > { %4370 = vmatprep.subr.bf16.mxu0 %v7011_v60  ;;  %4413 = vmatprep.subr.bf16.mxu1 %v7013_v21  ;;  %v3807_v60 = vrot.slane %v3802_v57, %v9641_v2  ;;  %v3815_v21 = vrot.slane %v3802_v57, %v9650_v8  ;;  %v3811_v48 = vrot.slane %v3802_v57, %v9645_v4 }
0x1dff   : > { %v3819_v23 = vrot.slane %v3802_v57, %v10187_v58 }
0x1e01   : > { %4371 = vmatpush1.bf16.msra.mxu0 %v7010_v62  ;;  %4414 = vmatpush1.bf16.msra.mxu1 %v7012_v31 }
0x1e02   : > { %4372 = vmatprep.subr.bf16.mxu0 %v7015_v63  ;;  %4415 = vmatprep.subr.bf16.mxu1 %v7017_v3 }
0x1e05   : > { %4373 = vmatpush1.bf16.msra.mxu0 %v7014_v11  ;;  %4416 = vmatpush1.bf16.msra.mxu1 %v7016_v12 }
0x1e06   : > { %4374 = vmatprep.subr.bf16.mxu0 %v7019_v10  ;;  %4417 = vmatprep.subr.bf16.mxu1 %v7021_v14 }
0x1e09   : > { %4375 = vmatpush1.bf16.msra.mxu0 %v7018_v16  ;;  %4418 = vmatpush1.bf16.msra.mxu1 %v7020_v19 }
0x1e0a   : > { %7331 = vmatprep.subr.bf16.mxu0 %v8021_v20  ;;  %7353 = vmatprep.subr.bf16.mxu1 %v8022_v17 }
0x1e0c   : > { %4393 = vmatmul.mubr.bf16.vlgmr.msra.gmra.mrb[88].mxu0 %v10119_v25  ;;  %4436 = vmatmul.mubr.bf16.vlgmr.msra.gmra.mrb[88].mxu1 %v10119_v25 }
0x1e0d   : > { %7332 = vmatpush3.bf16.msra.mxu0 %v8023_v22  ;;  %7354 = vmatpush3.bf16.msra.mxu1 %v8024_v24 }
0x1e0e   : > { %7333 = vmatprep.subr.bf16.mxu0 %v8025_v15  ;;  %7355 = vmatprep.subr.bf16.mxu1 %v8026_v59 }
0x1e11   : > { %7334 = vmatpush3.bf16.msra.mxu0 %v8027_v61  ;;  %7356 = vmatpush3.bf16.msra.mxu1 %v8028_v0 }
0x1e12   : > { %7335 = vmatprep.subr.bf16.mxu0 %v8029_v47  ;;  %7357 = vmatprep.subr.bf16.mxu1 %v8030_v29 }
0x1e15   : > { %7336 = vmatpush3.bf16.msra.mxu0 %v8031_v32  ;;  %7358 = vmatpush3.bf16.msra.mxu1 %v8032_v35  ;;  %v4178_v35 = vld [vmem:[%s9571_s18 + $0x4] sm:$0xf] }
0x1e16   : > { %7337 = vmatprep.subr.bf16.mxu0 %v8033_v28  ;;  %7359 = vmatprep.subr.bf16.mxu1 %v8034_v33  ;;  %v4183_v28 = vrot.slane %v4178_v35, %v9641_v2  ;;  %v4191_v33 = vrot.slane %v4178_v35, %v9650_v8 }
0x1e19   : > { %7338 = vmatpush3.bf16.msra.mxu0 %v8035_v34  ;;  %7360 = vmatpush3.bf16.msra.mxu1 %v8036_v13  ;;  %v4187_v34 = vrot.slane %v4178_v35, %v9645_v4  ;;  %v4195_v13 = vrot.slane %v4178_v35, %v10187_v58  ;;  %v8076_v35 = vld [vmem:[%s9574_s11 + $0xa8] sm:$0xff]  }
0x1e1a   : > { %7339 = vmatprep.subr.bf16.mxu0 %v8037_v18  ;;  %7361 = vmatprep.subr.bf16.mxu1 %v8038_v40 }
0x1e1d   : > { %7340 = vmatpush3.bf16.msra.mxu0 %v8039_v42  ;;  %7362 = vmatpush3.bf16.msra.mxu1 %v8040_v45 }
0x1e1e   : > { %7341 = vmatprep.subr.bf16.mxu0 %v8041_v46  ;;  %7363 = vmatprep.subr.bf16.mxu1 %v8042_v26 }
0x1e21   : > { %7342 = vmatpush3.bf16.msra.mxu0 %v8043_v27  ;;  %7364 = vmatpush3.bf16.msra.mxu1 %v8044_v49 }
0x1e22   : > { %7343 = vmatprep.subr.bf16.mxu0 %v8045_v43  ;;  %7365 = vmatprep.subr.bf16.mxu1 %v8046_v50 }
0x1e25   : > { %7344 = vmatpush3.bf16.msra.mxu0 %v8047_v51  ;;  %7366 = vmatpush3.bf16.msra.mxu1 %v8048_v52 }
0x1e26   : > { %7345 = vmatprep.subr.bf16.mxu0 %v8049_v53  ;;  %7367 = vmatprep.subr.bf16.mxu1 %v8050_v54 }
0x1e29   : > { %7346 = vmatpush3.bf16.msra.mxu0 %v8051_v55  ;;  %7368 = vmatpush3.bf16.msra.mxu1 %v8052_v36 }
0x1e2a   : > { %7375 = vmatprep.subr.bf16.mxu0 %v8053_v37  ;;  %7397 = vmatprep.subr.bf16.mxu1 %v8054_v56 }
0x1ebf   : > { %v4018_v44 = vpop.f32.mrb[84].mxu0  ;;  %v4061_v7 = vpop.f32.mrb[84].mxu1 }
0x1ec0   : > { %v4019_v62 = vadd.f32 %v4018_v44, %v3807_v60  ;;  %v4062_v31 = vadd.f32 %v4061_v7, %v3815_v21  ;;  %v4020_v63 = vpop.f32.mrb[85].mxu0  ;;  %v4063_v3 = vpop.f32.mrb[85].mxu1 }
0x1ec1   : > { %v4021_v5 = vadd.f32 %v4020_v63, %v3811_v48  ;;  %v4064_v9 = vadd.f32 %v4063_v3, %v3819_v23  ;;  %v4022_v30 = vpop.f32.mrb[86].mxu0  ;;  %v4065_v6 = vpop.f32.mrb[86].mxu1  ;;  %v8055_v3 = vld [vmem:[%s9574_s11] sm:$0xff]  }
0x1ec2   : > { %v4023_v1 = vadd.f32 %v4022_v30, %v3807_v60  ;;  %v4066_v11 = vadd.f32 %v4065_v6, %v3815_v21  ;;  %v4024_v12 = vpop.f32.mrb[87].mxu0  ;;  %v4067_v10 = vpop.f32.mrb[87].mxu1  ;;  %v4070_v19 = vmax.f32 %v4019_v62, 0.0  ;;  %v4072_v20 = vmax.f32 %v4062_v31, 0.0  ;;  %v8058_v30 = vld [vmem:[%s9574_s11 + $0xc8] sm:$0xff]  }
0x1ec3   : > { %v4025_v14 = vadd.f32 %v4024_v12, %v3811_v48  ;;  %v4068_v16 = vadd.f32 %v4067_v10, %v3819_v23  ;;  %v4071_v24 = vmax.f32 %v4021_v5, 0.0  ;;  %v4073_v15 = vmax.f32 %v4064_v9, 0.0  ;;  %v8056_v5 = vld [vmem:[%s9574_s11 + $0x80] sm:$0xff]   ;;  %v8057_v9 = vld [vmem:[%s9574_s11 + $0x48] sm:$0xff]   ;;  %v8062_v12 = vld [vmem:[%s9574_s11 + $0xd0] sm:$0xff]  }
0x1ec4   : > { %v4074_v17 = vmax.f32 %v4023_v1, 0.0  ;;  %v4076_v22 = vmax.f32 %v4066_v11, 0.0  ;;  %v8059_v6 = vld [vmem:[%s9574_s11 + $0x8] sm:$0xff]   ;;  %v8061_v11 = vld [vmem:[%s9574_s11 + $0x50] sm:$0xff]  }
0x1ec5   : > { %v4075_v59 = vmax.f32 %v4025_v14, 0.0  ;;  %v4077_v61 = vmax.f32 %v4068_v16, 0.0  ;;  %v8060_v1 = vld [vmem:[%s9574_s11 + $0x88] sm:$0xff]   ;;  %v8063_v10 = vld [vmem:[%s9574_s11 + $0x10] sm:$0xff]   ;;  %v8065_v16 = vld [vmem:[%s9574_s11 + $0x58] sm:$0xff]  }
0x1ec6   : > { %v10193_v0 = vpack.c.bf16 %v4074_v17, %v4070_v19  ;;  %v10195_v47 = vpack.c.bf16 %v4076_v22, %v4072_v20  ;;  %v8064_v14 = vld [vmem:[%s9574_s11 + $0x90] sm:$0xff]   ;;  %v8066_v19 = vld [vmem:[%s9574_s11 + $0xd8] sm:$0xff]   ;;  %v8069_v22 = vld [vmem:[%s9574_s11 + $0x60] sm:$0xff]  }
0x1ec7   : > { %v4079_v29 = vpack.c.bf16 %v4075_v59, %v4071_v24  ;;  %v4081_v32 = vpack.c.bf16 %v4077_v61, %v4073_v15  ;;  %v8067_v20 = vld [vmem:[%s9574_s11 + $0x18] sm:$0xff]   ;;  %v8070_v24 = vld [vmem:[%s9574_s11 + $0xe0] sm:$0xff]   ;;  %v8073_v61 = vld [vmem:[%s9574_s11 + $0x68] sm:$0xff]  }
0x1ec8   : > { %v8068_v17 = vld [vmem:[%s9574_s11 + $0x98] sm:$0xff]   ;;  %v8071_v15 = vld [vmem:[%s9574_s11 + $0x20] sm:$0xff]  }
0x1ec9   : > { %v8072_v59 = vld [vmem:[%s9574_s11 + $0xa0] sm:$0xff]  }
0x1edf   : > { %v4394_v18 = vpop.f32.mrb[88].mxu0  ;;  %v4437_v40 = vpop.f32.mrb[88].mxu1 }
0x1ee0   : > { %v4395_v42 = vadd.f32 %v4394_v18, %v4183_v28  ;;  %v4438_v45 = vadd.f32 %v4437_v40, %v4191_v33  ;;  %v4396_v46 = vpop.f32.mrb[89].mxu0  ;;  %v4439_v26 = vpop.f32.mrb[89].mxu1  ;;  %v8081_v18 = vld [vmem:[%s9574_s11 + $0x78] sm:$0xff]  }
0x1ee1   : > { %v4397_v27 = vadd.f32 %v4396_v46, %v4187_v34  ;;  %v4440_v49 = vadd.f32 %v4439_v26, %v4195_v13  ;;  %v4398_v43 = vpop.f32.mrb[90].mxu0  ;;  %v4441_v50 = vpop.f32.mrb[90].mxu1  ;;  %v8082_v40 = vld [vmem:[%s9574_s11 + $0xf8] sm:$0xff]   ;;  %v5071_v46 = vld [vmem:[%s9564_s2 + $0x28] sm:$0xff] }
0x1ee2   : > { %v4399_v51 = vadd.f32 %v4398_v43, %v4183_v28  ;;  %v4442_v52 = vadd.f32 %v4441_v50, %v4191_v33  ;;  %v4400_v53 = vpop.f32.mrb[91].mxu0  ;;  %v4443_v54 = vpop.f32.mrb[91].mxu1  ;;  %v4446_v37 = vmax.f32 %v4395_v42, 0.0  ;;  %v4448_v56 = vmax.f32 %v4438_v45, 0.0  ;;  %v8077_v28 = vld [vmem:[%s9574_s11 + $0x70] sm:$0xff]   ;;  %v5070_v42 = vld [vmem:[%s9564_s2 + $0x20] sm:$0xff] }
0x1ee3   : > { %v4401_v55 = vadd.f32 %v4400_v53, %v4187_v34  ;;  %v4444_v36 = vadd.f32 %v4443_v54, %v4195_v13  ;;  %v4447_v21 = vmax.f32 %v4397_v27, 0.0  ;;  %v4449_v48 = vmax.f32 %v4440_v49, 0.0  ;;  %v8078_v33 = vld [vmem:[%s9574_s11 + $0xf0] sm:$0xff]   ;;  %v5072_v45 = vld [vmem:[%s9564_s2 + $0x60] sm:$0xff]  ;;  %v5073_v26 = vld [vmem:[%s9564_s2 + $0x68] sm:$0xff] }
0x1ee4   : > { %v4450_v57 = vmax.f32 %v4399_v51, 0.0  ;;  %v4452_v60 = vmax.f32 %v4442_v52, 0.0  ;;  %v8079_v34 = vld [vmem:[%s9574_s11 + $0x30] sm:$0xff]   ;;  %v8083_v27 = vld [vmem:[%s9574_s11 + $0x38] sm:$0xff]   ;;  %v7087_v43 = vcombine.high %v5070_v42, %v5072_v45  ;;  %v7089_v50 = vcombine.high %v5071_v46, %v5073_v26  ;;  %v5074_v51 = vld [vmem:[%s9564_s2 + $0xa0] sm:$0xff] }
0x1ee5   : > { %v4451_v23 = vmax.f32 %v4401_v55, 0.0  ;;  %v4453_v44 = vmax.f32 %v4444_v36, 0.0  ;;  %v8080_v13 = vld [vmem:[%s9574_s11 + $0xb0] sm:$0xff]   ;;  %v8084_v49 = vld [vmem:[%s9574_s11 + $0xb8] sm:$0xff]   ;;  %v5076_v52 = vld [vmem:[%s9564_s2 + $0xe0] sm:$0xff]  ;;  %v7086_v55 = vcombine.low %v5070_v42, %v5072_v45  ;;  %v7088_v36 = vcombine.low %v5071_v46, %v5073_v26 }
0x1ee6   : > { %v4454_v7 = vpack.c.bf16 %v4450_v57, %v4446_v37  ;;  %v4456_v62 = vpack.c.bf16 %v4452_v60, %v4448_v56  ;;  %v5075_v53 = vld [vmem:[%s9564_s2 + $0xa8] sm:$0xff]  ;;  %v7091_v37 = vcombine.high %v5074_v51, %v5076_v52  ;;  %v5078_v57 = vld [vmem:[%s9564_s2 + $0x120] sm:$0xff] }
0x1ee7   : > { %v4455_v31 = vpack.c.bf16 %v4451_v23, %v4447_v21  ;;  %v4457_v63 = vpack.c.bf16 %v4453_v44, %v4449_v48  ;;  %v5077_v54 = vld [vmem:[%s9564_s2 + $0xe8] sm:$0xff]  ;;  %v5080_v60 = vld [vmem:[%s9564_s2 + $0x160] sm:$0xff]  ;;  %v7090_v23 = vcombine.low %v5074_v51, %v5076_v52 }
0x1ee8   : > { %v7093_v56 = vcombine.high %v5075_v53, %v5077_v54  ;;  %v5079_v21 = vld [vmem:[%s9564_s2 + $0x128] sm:$0xff]  ;;  %v7092_v44 = vcombine.low %v5075_v53, %v5077_v54  ;;  %v5098_v42 = vld [vmem:[%s9564_s2 + $0x3a0] sm:$0xff] }
0x1ee9   : > { %4746 = vmatprep.mubr.bf16.mxu0 %v4455_v31  ;;  %4787 = vmatprep.mubr.bf16.mxu1 %v4457_v63  ;;  %v5081_v48 = vld [vmem:[%s9564_s2 + $0x168] sm:$0xff]  ;;  %v5082_v31 = vld [vmem:[%s9564_s2 + $0x1a0] sm:$0xff] }
0x1eea   : > { %4747 = vmatmul.mubr.bf16.vlgmr.msra.gmra.mrb[92].mxu0 %v4454_v7  ;;  %4788 = vmatmul.mubr.bf16.vlgmr.msra.gmra.mrb[92].mxu1 %v4456_v62  ;;  %v7095_v7 = vcombine.high %v5078_v57, %v5080_v60  ;;  %v7097_v62 = vcombine.high %v5079_v21, %v5081_v48  ;;  %v5084_v63 = vld [vmem:[%s9564_s2 + $0x1e0] sm:$0xff]  ;;  %v5099_v46 = vld [vmem:[%s9564_s2 + $0x3a8] sm:$0xff] }
0x1eeb   : > { %7376 = vmatpush3.bf16.msra.mxu0 %v8055_v3  ;;  %7398 = vmatpush3.bf16.msra.mxu1 %v8056_v5  ;;  %v5083_v3 = vld [vmem:[%s9564_s2 + $0x1a8] sm:$0xff]  ;;  %v5100_v45 = vld [vmem:[%s9564_s2 + $0x3e0] sm:$0xff] }
0x1eec   : > { %5020 = vmatprep.mubr.bf16.mxu0 %v4079_v29  ;;  %5061 = vmatprep.mubr.bf16.mxu1 %v4081_v32  ;;  %v8074_v29 = vld [vmem:[%s9574_s11 + $0xe8] sm:$0xff]   ;;  %v7114_v51 = vcombine.low %v5098_v42, %v5100_v45  ;;  %v8085_v53 = vld [vmem:[%s9574_s11 + $0x240] sm:$0xff]  }
0x1eed   : > { %7377 = vmatprep.subr.bf16.mxu0 %v8057_v9  ;;  %7399 = vmatprep.subr.bf16.mxu1 %v8058_v30  ;;  %v8075_v32 = vld [vmem:[%s9574_s11 + $0x28] sm:$0xff]   ;;  %v7099_v9 = vcombine.high %v5082_v31, %v5084_v63  ;;  %v8086_v54 = vld [vmem:[%s9574_s11 + $0x2c0] sm:$0xff]  }
0x1eee   : > { %v5085_v5 = vld [vmem:[%s9564_s2 + $0x1e8] sm:$0xff] }
0x1eef   : > { %7378 = vmatpush3.bf16.msra.mxu0 %v8059_v6  ;;  %7400 = vmatpush3.bf16.msra.mxu1 %v8060_v1  ;;  %v7101_v30 = vcombine.high %v5083_v3, %v5085_v5  ;;  %v5086_v6 = vld [vmem:[%s9564_s2 + $0x220] sm:$0xff]  ;;  %v5101_v26 = vld [vmem:[%s9564_s2 + $0x3e8] sm:$0xff] }
0x1ef0   : > { %7379 = vmatprep.subr.bf16.mxu0 %v8061_v11  ;;  %7401 = vmatprep.subr.bf16.mxu1 %v8062_v12  ;;  %v5088_v1 = vld [vmem:[%s9564_s2 + $0x260] sm:$0xff]  ;;  %v5087_v11 = vld [vmem:[%s9564_s2 + $0x228] sm:$0xff]  ;;  %v7116_v52 = vcombine.low %v5099_v46, %v5101_v26 }
0x1ef1   : > { %v5089_v12 = vld [vmem:[%s9564_s2 + $0x268] sm:$0xff] }
0x1ef3   : > { %7380 = vmatpush3.bf16.msra.mxu0 %v8063_v10  ;;  %7402 = vmatpush3.bf16.msra.mxu1 %v8064_v14  ;;  %v7098_v10 = vcombine.low %v5082_v31, %v5084_v63  ;;  %v7100_v14 = vcombine.low %v5083_v3, %v5085_v5  ;;  %v8099_v31 = vld [vmem:[%s9574_s11 + $0x218] sm:$0xff]   ;;  %v8101_v3 = vld [vmem:[%s9574_s11 + $0x260] sm:$0xff]  }
0x1ef4   : > { %7381 = vmatprep.subr.bf16.mxu0 %v8065_v16  ;;  %7403 = vmatprep.subr.bf16.mxu1 %v8066_v19  ;;  %v7103_v16 = vcombine.high %v5086_v6, %v5088_v1  ;;  %v7105_v19 = vcombine.high %v5087_v11, %v5089_v12  ;;  %v8100_v63 = vld [vmem:[%s9574_s11 + $0x298] sm:$0xff]   ;;  %v8102_v5 = vld [vmem:[%s9574_s11 + $0x2e0] sm:$0xff]  }
0x1ef7   : > { %7382 = vmatpush3.bf16.msra.mxu0 %v8067_v20  ;;  %7404 = vmatpush3.bf16.msra.mxu1 %v8068_v17  ;;  %v5090_v20 = vld [vmem:[%s9564_s2 + $0x2a0] sm:$0xff] }
0x1ef8   : > { %7383 = vmatprep.subr.bf16.mxu0 %v8069_v22  ;;  %7405 = vmatprep.subr.bf16.mxu1 %v8070_v24  ;;  %v5092_v17 = vld [vmem:[%s9564_s2 + $0x2e0] sm:$0xff]  ;;  %v5091_v22 = vld [vmem:[%s9564_s2 + $0x2a8] sm:$0xff] }
0x1ef9   : > { %v5093_v24 = vld [vmem:[%s9564_s2 + $0x2e8] sm:$0xff] }
0x1efb   : > { %7384 = vmatpush3.bf16.msra.mxu0 %v8071_v15  ;;  %7406 = vmatpush3.bf16.msra.mxu1 %v8072_v59  ;;  %v7102_v15 = vcombine.low %v5086_v6, %v5088_v1  ;;  %v7104_v59 = vcombine.low %v5087_v11, %v5089_v12  ;;  %v8107_v6 = vld [vmem:[%s9574_s11 + $0x228] sm:$0xff]   ;;  %v8109_v11 = vld [vmem:[%s9574_s11 + $0x270] sm:$0xff]  }
0x1efc   : > { %7385 = vmatprep.subr.bf16.mxu0 %v8073_v61  ;;  %7407 = vmatprep.subr.bf16.mxu1 %v8074_v29  ;;  %v7107_v61 = vcombine.high %v5090_v20, %v5092_v17  ;;  %v7109_v29 = vcombine.high %v5091_v22, %v5093_v24  ;;  %v8108_v1 = vld [vmem:[%s9574_s11 + $0x2a8] sm:$0xff]   ;;  %v8110_v12 = vld [vmem:[%s9574_s11 + $0x2f0] sm:$0xff]  }
0x1eff   : > { %7386 = vmatpush3.bf16.msra.mxu0 %v8075_v32  ;;  %7408 = vmatpush3.bf16.msra.mxu1 %v8076_v35  ;;  %v5094_v32 = vld [vmem:[%s9564_s2 + $0x320] sm:$0xff] }
0x1f00   : > { %7387 = vmatprep.subr.bf16.mxu0 %v8077_v28  ;;  %7409 = vmatprep.subr.bf16.mxu1 %v8078_v33  ;;  %v5096_v35 = vld [vmem:[%s9564_s2 + $0x360] sm:$0xff]  ;;  %v5095_v28 = vld [vmem:[%s9564_s2 + $0x328] sm:$0xff] }
0x1f01   : > { %v5097_v33 = vld [vmem:[%s9564_s2 + $0x368] sm:$0xff] }
0x1f03   : > { %7388 = vmatpush3.bf16.msra.mxu0 %v8079_v34  ;;  %7410 = vmatpush3.bf16.msra.mxu1 %v8080_v13  ;;  %v7106_v34 = vcombine.low %v5090_v20, %v5092_v17  ;;  %v7108_v13 = vcombine.low %v5091_v22, %v5093_v24  ;;  %v8115_v20 = vld [vmem:[%s9574_s11 + $0x238] sm:$0xff]   ;;  %v10303_v22 = vld [vmem:[%s9564_s2 + $0x30] sm:$0xff] }
0x1f04   : > { %7389 = vmatprep.subr.bf16.mxu0 %v8081_v18  ;;  %7411 = vmatprep.subr.bf16.mxu1 %v8082_v40  ;;  %v7111_v18 = vcombine.high %v5094_v32, %v5096_v35  ;;  %v7113_v40 = vcombine.high %v5095_v28, %v5097_v33  ;;  %v8116_v17 = vld [vmem:[%s9574_s11 + $0x2b8] sm:$0xff]   ;;  %v10306_v24 = vld [vmem:[%s9564_s2 + $0x70] sm:$0xff] }
0x1f07   : > { %7390 = vmatpush3.bf16.msra.mxu0 %v8083_v27  ;;  %7412 = vmatpush3.bf16.msra.mxu1 %v8084_v49  ;;  %v7110_v27 = vcombine.low %v5094_v32, %v5096_v35  ;;  %v7112_v49 = vcombine.low %v5095_v28, %v5097_v33 }
0x1f08   : > { %5284 = vmatprep.subr.bf16.mxu0 %v7087_v43  ;;  %5327 = vmatprep.subr.bf16.mxu1 %v7089_v50  ;;  %v7115_v43 = vcombine.high %v5098_v42, %v5100_v45  ;;  %v7117_v50 = vcombine.high %v5099_v46, %v5101_v26 }
0x1f0a   : > { %5021 = vmatmul.mubr.bf16.vlgmr.msra.gmra.mrb[96].mxu0 %v10193_v0  ;;  %5062 = vmatmul.mubr.bf16.vlgmr.msra.gmra.mrb[96].mxu1 %v10195_v47  ;;  %v7094_v0 = vcombine.low %v5078_v57, %v5080_v60  ;;  %v7096_v47 = vcombine.low %v5079_v21, %v5081_v48  ;;  %v8091_v57 = vld [vmem:[%s9574_s11 + $0x208] sm:$0xff]   ;;  %v8093_v21 = vld [vmem:[%s9574_s11 + $0x250] sm:$0xff]  }
0x1f0b   : > { %5285 = vmatpush1.bf16.msra.mxu0 %v7086_v55  ;;  %5328 = vmatpush1.bf16.msra.mxu1 %v7088_v36  ;;  %v8087_v55 = vld [vmem:[%s9574_s11 + $0x200] sm:$0xff]   ;;  %v8092_v60 = vld [vmem:[%s9574_s11 + $0x288] sm:$0xff]   ;;  %v8094_v48 = vld [vmem:[%s9574_s11 + $0x2d0] sm:$0xff]  }
0x1f0c   : > { %5286 = vmatprep.subr.bf16.mxu0 %v7091_v37  ;;  %5329 = vmatprep.subr.bf16.mxu1 %v7093_v56  ;;  %v8088_v36 = vld [vmem:[%s9574_s11 + $0x280] sm:$0xff]   ;;  %v8089_v37 = vld [vmem:[%s9574_s11 + $0x248] sm:$0xff]  }
0x1f0d   : > { %5316 = vmatprep.mubr.bf16.mxu0 %v8854_v41  ;;  %5359 = vmatprep.mubr.bf16.mxu1 %v8854_v41  ;;  %v8090_v56 = vld [vmem:[%s9574_s11 + $0x2c8] sm:$0xff]  }
0x1f0f   : > { %5287 = vmatpush1.bf16.msra.mxu0 %v7090_v23  ;;  %5330 = vmatpush1.bf16.msra.mxu1 %v7092_v44  ;;  %v8095_v23 = vld [vmem:[%s9574_s11 + $0x210] sm:$0xff]  }
0x1f10   : > { %5288 = vmatprep.subr.bf16.mxu0 %v7095_v7  ;;  %5331 = vmatprep.subr.bf16.mxu1 %v7097_v62  ;;  %v8096_v44 = vld [vmem:[%s9574_s11 + $0x290] sm:$0xff]   ;;  %v8097_v7 = vld [vmem:[%s9574_s11 + $0x258] sm:$0xff]  }
0x1f11   : > { %v8098_v62 = vld [vmem:[%s9574_s11 + $0x2d8] sm:$0xff]  }
0x1f13   : > { %5289 = vmatpush1.bf16.msra.mxu0 %v7094_v0  ;;  %5332 = vmatpush1.bf16.msra.mxu1 %v7096_v47  ;;  %v8103_v0 = vld [vmem:[%s9574_s11 + $0x220] sm:$0xff]  }
0x1f14   : > { %5290 = vmatprep.subr.bf16.mxu0 %v7099_v9  ;;  %5333 = vmatprep.subr.bf16.mxu1 %v7101_v30  ;;  %v8104_v47 = vld [vmem:[%s9574_s11 + $0x2a0] sm:$0xff]   ;;  %v8105_v9 = vld [vmem:[%s9574_s11 + $0x268] sm:$0xff]  }
0x1f15   : > { %v8106_v30 = vld [vmem:[%s9574_s11 + $0x2e8] sm:$0xff]  }
0x1f17   : > { %5291 = vmatpush1.bf16.msra.mxu0 %v7098_v10  ;;  %5334 = vmatpush1.bf16.msra.mxu1 %v7100_v14  ;;  %v8111_v10 = vld [vmem:[%s9574_s11 + $0x230] sm:$0xff]  }
0x1f18   : > { %5292 = vmatprep.subr.bf16.mxu0 %v7103_v16  ;;  %5335 = vmatprep.subr.bf16.mxu1 %v7105_v19  ;;  %v8112_v14 = vld [vmem:[%s9574_s11 + $0x2b0] sm:$0xff]   ;;  %v8113_v16 = vld [vmem:[%s9574_s11 + $0x278] sm:$0xff]  }
0x1f19   : > { %v8114_v19 = vld [vmem:[%s9574_s11 + $0x2f8] sm:$0xff]  }
0x1f1b   : > { %5293 = vmatpush1.bf16.msra.mxu0 %v7102_v15  ;;  %5336 = vmatpush1.bf16.msra.mxu1 %v7104_v59  ;;  %v10309_v15 = vld [vmem:[%s9564_s2 + $0x38] sm:$0xff]  ;;  %v7151_v59 = vcombine.high %v10303_v22, %v10306_v24 }
0x1f1c   : > { %5294 = vmatprep.subr.bf16.mxu0 %v7107_v61  ;;  %5337 = vmatprep.subr.bf16.mxu1 %v7109_v29  ;;  %v10314_v61 = vld [vmem:[%s9564_s2 + $0x78] sm:$0xff]  ;;  %v7150_v29 = vcombine.low %v10303_v22, %v10306_v24 }
0x1f1d   : > { %v7152_v32 = vcombine.low %v10309_v15, %v10314_v61  ;;  %v7153_v35 = vcombine.high %v10309_v15, %v10314_v61 }
0x1f1f   : > { %5295 = vmatpush1.bf16.msra.mxu0 %v7106_v34  ;;  %5338 = vmatpush1.bf16.msra.mxu1 %v7108_v13 }
0x1f20   : > { %5296 = vmatprep.subr.bf16.mxu0 %v7111_v18  ;;  %5339 = vmatprep.subr.bf16.mxu1 %v7113_v40 }
0x1f23   : > { %5297 = vmatpush1.bf16.msra.mxu0 %v7110_v27  ;;  %5340 = vmatpush1.bf16.msra.mxu1 %v7112_v49 }
0x1f24   : > { %5298 = vmatprep.subr.bf16.mxu0 %v7115_v43  ;;  %5341 = vmatprep.subr.bf16.mxu1 %v7117_v50 }
0x1f27   : > { %5299 = vmatpush1.bf16.msra.mxu0 %v7114_v51  ;;  %5342 = vmatpush1.bf16.msra.mxu1 %v7116_v52 }
0x1f28   : > { %7419 = vmatprep.subr.bf16.mxu0 %v8085_v53  ;;  %7441 = vmatprep.subr.bf16.mxu1 %v8086_v54 }
0x1f2a   : > { %5317 = vmatmul.mubr.bf16.vlgmr.msra.gmra.mrb[100].mxu0 %v10119_v25  ;;  %5360 = vmatmul.mubr.bf16.vlgmr.msra.gmra.mrb[100].mxu1 %v10119_v25 }
0x1f2b   : > { %7420 = vmatpush3.bf16.msra.mxu0 %v8087_v55  ;;  %7442 = vmatpush3.bf16.msra.mxu1 %v8088_v36 }
0x1f2c   : > { %7421 = vmatprep.subr.bf16.mxu0 %v8089_v37  ;;  %7443 = vmatprep.subr.bf16.mxu1 %v8090_v56 }
0x1f2f   : > { %7422 = vmatpush3.bf16.msra.mxu0 %v8091_v57  ;;  %7444 = vmatpush3.bf16.msra.mxu1 %v8092_v60 }
0x1f30   : > { %7423 = vmatprep.subr.bf16.mxu0 %v8093_v21  ;;  %7445 = vmatprep.subr.bf16.mxu1 %v8094_v48 }
0x1f33   : > { %7424 = vmatpush3.bf16.msra.mxu0 %v8095_v23  ;;  %7446 = vmatpush3.bf16.msra.mxu1 %v8096_v44 }
0x1f34   : > { %7425 = vmatprep.subr.bf16.mxu0 %v8097_v7  ;;  %7447 = vmatprep.subr.bf16.mxu1 %v8098_v62 }
0x1f37   : > { %7426 = vmatpush3.bf16.msra.mxu0 %v8099_v31  ;;  %7448 = vmatpush3.bf16.msra.mxu1 %v8100_v63  ;;  %v5102_v31 = vld [vmem:[%s9571_s18 + $0x8] sm:$0xf] }
0x1f38   : > { %7427 = vmatprep.subr.bf16.mxu0 %v8101_v3  ;;  %7449 = vmatprep.subr.bf16.mxu1 %v8102_v5  ;;  %v5107_v63 = vrot.slane %v5102_v31, %v9641_v2  ;;  %v5115_v3 = vrot.slane %v5102_v31, %v9650_v8  ;;  %v5111_v5 = vrot.slane %v5102_v31, %v9645_v4 }
0x1f3b   : > { %7428 = vmatpush3.bf16.msra.mxu0 %v8103_v0  ;;  %7450 = vmatpush3.bf16.msra.mxu1 %v8104_v47  ;;  %v5119_v0 = vrot.slane %v5102_v31, %v10187_v58  ;;  %v5736_v31 = vld [vmem:[%s9564_s2 + $0x1f0] sm:$0xff] }
0x1f3c   : > { %7429 = vmatprep.subr.bf16.mxu0 %v8105_v9  ;;  %7451 = vmatprep.subr.bf16.mxu1 %v8106_v30 }
0x1f3f   : > { %7430 = vmatpush3.bf16.msra.mxu0 %v8107_v6  ;;  %7452 = vmatpush3.bf16.msra.mxu1 %v8108_v1 }
0x1f40   : > { %7431 = vmatprep.subr.bf16.mxu0 %v8109_v11  ;;  %7453 = vmatprep.subr.bf16.mxu1 %v8110_v12 }
0x1f43   : > { %7432 = vmatpush3.bf16.msra.mxu0 %v8111_v10  ;;  %7454 = vmatpush3.bf16.msra.mxu1 %v8112_v14 }
0x1f44   : > { %7433 = vmatprep.subr.bf16.mxu0 %v8113_v16  ;;  %7455 = vmatprep.subr.bf16.mxu1 %v8114_v19 }
0x1f47   : > { %7434 = vmatpush3.bf16.msra.mxu0 %v8115_v20  ;;  %7456 = vmatpush3.bf16.msra.mxu1 %v8116_v17 }
0x1f48   : > { %5936 = vmatprep.subr.bf16.mxu0 %v7151_v59  ;;  %5979 = vmatprep.subr.bf16.mxu1 %v7153_v35 }
0x1fbd   : > { %v7347_v28 = vpop.f32.mrb[92].mxu0  ;;  %v7369_v33 = vpop.f32.mrb[92].mxu1 }
0x1fbe   : > { %v7348_v34 = vpop.f32.mrb[93].mxu0  ;;  %v7370_v13 = vpop.f32.mrb[93].mxu1 }
0x1fbf   : > { %v7349_v18 = vadd.f32 %v7348_v34, %v7347_v28  ;;  %v7371_v40 = vadd.f32 %v7370_v13, %v7369_v33  ;;  %v7350_v42 = vpop.f32.mrb[94].mxu0  ;;  %v7372_v45 = vpop.f32.mrb[94].mxu1 }
0x1fc0   : > { %v7351_v46 = vpop.f32.mrb[95].mxu0  ;;  %v7373_v26 = vpop.f32.mrb[95].mxu1 }
0x1fc1   : > { %v4790_v27 = vadd.f32 %v7371_v40, %v7349_v18  ;;  %v7352_v49 = vadd.f32 %v7351_v46, %v7350_v42  ;;  %v7374_v43 = vadd.f32 %v7373_v26, %v7372_v45  ;;  %v5726_v40 = vld [vmem:[%s9564_s2 + $0xb0] sm:$0xff] }
0x1fc2   : > { %v5728_v42 = vld [vmem:[%s9564_s2 + $0xf0] sm:$0xff] }
0x1fc3   : > { %v4793_v50 = vadd.f32 %v7374_v43, %v7352_v49  ;;  %v5727_v49 = vld [vmem:[%s9564_s2 + $0xb8] sm:$0xff] }
0x1fc4   : > { %v5729_v43 = vld [vmem:[%s9564_s2 + $0xf8] sm:$0xff] }
0x1fdd   : > { %v7391_v51 = vpop.f32.mrb[96].mxu0  ;;  %v7413_v52 = vpop.f32.mrb[96].mxu1 }
0x1fde   : > { %v7392_v53 = vpop.f32.mrb[97].mxu0  ;;  %v7414_v54 = vpop.f32.mrb[97].mxu1 }
0x1fdf   : > { %v7393_v55 = vadd.f32 %v7392_v53, %v7391_v51  ;;  %v7415_v36 = vadd.f32 %v7414_v54, %v7413_v52  ;;  %v7394_v37 = vpop.f32.mrb[98].mxu0  ;;  %v7416_v56 = vpop.f32.mrb[98].mxu1  ;;  %v7155_v54 = vcombine.high %v5726_v40, %v5728_v42 }
0x1fe0   : > { %v7395_v57 = vpop.f32.mrb[99].mxu0  ;;  %v7417_v60 = vpop.f32.mrb[99].mxu1 }
0x1fe1   : > { %v5023_v21 = vadd.f32 %v7393_v55, %v4790_v27  ;;  %v7396_v48 = vadd.f32 %v7395_v57, %v7394_v37  ;;  %v7418_v23 = vadd.f32 %v7417_v60, %v7416_v56  ;;  %v7157_v55 = vcombine.high %v5727_v49, %v5729_v43  ;;  %v5732_v37 = vld [vmem:[%s9564_s2 + $0x170] sm:$0xff]  ;;  %v5731_v56 = vld [vmem:[%s9564_s2 + $0x138] sm:$0xff] }
0x1fe2   : > { %v5733_v57 = vld [vmem:[%s9564_s2 + $0x178] sm:$0xff]  ;;  %v7154_v60 = vcombine.low %v5726_v40, %v5728_v42  ;;  %v5752_v40 = vld [vmem:[%s9564_s2 + $0x3f0] sm:$0xff] }
0x1fe3   : > { %v10322_v44 = vadd.f32 %v7415_v36, %v5023_v21  ;;  %v5026_v7 = vadd.f32 %v7396_v48, %v4793_v50  ;;  %v5730_v36 = vld [vmem:[%s9564_s2 + $0x130] sm:$0xff]  ;;  %v7156_v21 = vcombine.low %v5727_v49, %v5729_v43  ;;  %v7160_v24 = vcombine.low %v5731_v56, %v5733_v57  ;;  %v5751_v42 = vld [vmem:[%s9564_s2 + $0x3b8] sm:$0xff] }
0x1fe4   : > { %v7159_v48 = vcombine.high %v5730_v36, %v5732_v37  ;;  %v7158_v22 = vcombine.low %v5730_v36, %v5732_v37  ;;  %v8122_v36 = vld [vmem:[%s9574_s11 + $0x3c8] sm:$0xff]  }
0x1fe5   : > { %v10324_v62 = vadd.f32 %v7418_v23, %v5026_v7  ;;  %v7161_v23 = vcombine.high %v5731_v56, %v5733_v57  ;;  %v5734_v7 = vld [vmem:[%s9564_s2 + $0x1b0] sm:$0xff]  ;;  %v8123_v37 = vld [vmem:[%s9574_s11 + $0x308] sm:$0xff]  }
0x1fe6   : > { %v7163_v15 = vcombine.high %v5734_v7, %v5736_v31  ;;  %v8124_v56 = vld [vmem:[%s9574_s11 + $0x388] sm:$0xff]   ;;  %v8126_v57 = vld [vmem:[%s9574_s11 + $0x3d0] sm:$0xff]  }
0x1ffd   : > { %v5318_v47 = vpop.f32.mrb[100].mxu0  ;;  %v5361_v9 = vpop.f32.mrb[100].mxu1 }
0x1ffe   : > { %v5319_v30 = vadd.f32 %v5318_v47, %v5107_v63  ;;  %v5362_v6 = vadd.f32 %v5361_v9, %v5115_v3  ;;  %v5320_v1 = vpop.f32.mrb[101].mxu0  ;;  %v5363_v11 = vpop.f32.mrb[101].mxu1  ;;  %v7162_v47 = vcombine.low %v5734_v7, %v5736_v31  ;;  %v8131_v7 = vld [vmem:[%s9574_s11 + $0x318] sm:$0xff]  }
0x1fff   : > { %v5321_v12 = vadd.f32 %v5320_v1, %v5111_v5  ;;  %v5364_v10 = vadd.f32 %v5363_v11, %v5119_v0  ;;  %v5322_v14 = vpop.f32.mrb[102].mxu0  ;;  %v5365_v16 = vpop.f32.mrb[102].mxu1  ;;  %v5744_v1 = vld [vmem:[%s9564_s2 + $0x2f0] sm:$0xff]  ;;  %v5743_v11 = vld [vmem:[%s9564_s2 + $0x2b8] sm:$0xff] }
0x2000   : > { %v5323_v19 = vadd.f32 %v5322_v14, %v5107_v63  ;;  %v5366_v20 = vadd.f32 %v5365_v16, %v5115_v3  ;;  %v5324_v17 = vpop.f32.mrb[103].mxu0  ;;  %v5367_v59 = vpop.f32.mrb[103].mxu1  ;;  %v5370_v33 = vmax.f32 %v5319_v30, 0.0  ;;  %v5372_v34 = vmax.f32 %v5362_v6, 0.0  ;;  %v5735_v63 = vld [vmem:[%s9564_s2 + $0x1b8] sm:$0xff]  ;;  %v5742_v6 = vld [vmem:[%s9564_s2 + $0x2b0] sm:$0xff] }
0x2001   : > { %v5325_v35 = vadd.f32 %v5324_v17, %v5111_v5  ;;  %v5368_v28 = vadd.f32 %v5367_v59, %v5119_v0  ;;  %v5371_v45 = vmax.f32 %v5321_v12, 0.0  ;;  %v5373_v46 = vmax.f32 %v5364_v10, 0.0  ;;  %v5737_v3 = vld [vmem:[%s9564_s2 + $0x1f8] sm:$0xff]  ;;  %v5748_v17 = vld [vmem:[%s9564_s2 + $0x370] sm:$0xff] }
0x2002   : > { %v5374_v13 = vmax.f32 %v5323_v19, 0.0  ;;  %v5376_v18 = vmax.f32 %v5366_v20, 0.0  ;;  %v7165_v61 = vcombine.high %v5735_v63, %v5737_v3  ;;  %v5739_v5 = vld [vmem:[%s9564_s2 + $0x238] sm:$0xff]  ;;  %v7171_v16 = vcombine.high %v5742_v6, %v5744_v1  ;;  %v5746_v20 = vld [vmem:[%s9564_s2 + $0x330] sm:$0xff] }
0x2003   : > { %v5375_v26 = vmax.f32 %v5325_v35, 0.0  ;;  %v5377_v27 = vmax.f32 %v5368_v28, 0.0  ;;  %v5741_v0 = vld [vmem:[%s9564_s2 + $0x278] sm:$0xff]  ;;  %v7170_v28 = vcombine.low %v5742_v6, %v5744_v1 }
0x2004   : > { %v5378_v50 = vpack.c.bf16 %v5374_v13, %v5370_v33  ;;  %v5380_v51 = vpack.c.bf16 %v5376_v18, %v5372_v34  ;;  %v7169_v30 = vcombine.high %v5739_v5, %v5741_v0  ;;  %v5745_v12 = vld [vmem:[%s9564_s2 + $0x2f8] sm:$0xff]  ;;  %v7168_v14 = vcombine.low %v5739_v5, %v5741_v0  ;;  %v5750_v18 = vld [vmem:[%s9564_s2 + $0x3b0] sm:$0xff] }
0x2005   : > { %v5379_v52 = vpack.c.bf16 %v5375_v26, %v5371_v45  ;;  %v5381_v53 = vpack.c.bf16 %v5377_v27, %v5373_v46  ;;  %v7173_v19 = vcombine.high %v5743_v11, %v5745_v12  ;;  %v5747_v59 = vld [vmem:[%s9564_s2 + $0x338] sm:$0xff]  ;;  %v7172_v33 = vcombine.low %v5743_v11, %v5745_v12  ;;  %v8141_v5 = vld [vmem:[%s9574_s11 + $0x370] sm:$0xff]  }
0x2006   : > { %v5749_v35 = vld [vmem:[%s9564_s2 + $0x378] sm:$0xff]  ;;  %v7175_v34 = vcombine.high %v5746_v20, %v5748_v17  ;;  %v7174_v46 = vcombine.low %v5746_v20, %v5748_v17  ;;  %v7179_v27 = vcombine.high %v5750_v18, %v5752_v40  ;;  %v7178_v43 = vcombine.low %v5750_v18, %v5752_v40  ;;  %v8142_v0 = vld [vmem:[%s9574_s11 + $0x3f0] sm:$0xff]  }
0x2007   : > { %5670 = vmatprep.mubr.bf16.mxu0 %v5379_v52  ;;  %5711 = vmatprep.mubr.bf16.mxu1 %v5381_v53  ;;  %v7177_v13 = vcombine.high %v5747_v59, %v5749_v35  ;;  %v5753_v45 = vld [vmem:[%s9564_s2 + $0x3f8] sm:$0xff]  ;;  %v7176_v26 = vcombine.low %v5747_v59, %v5749_v35  ;;  %v8118_v52 = vld [vmem:[%s9574_s11 + $0x3c0] sm:$0xff]  }
0x2008   : > { %5671 = vmatmul.mubr.bf16.vlgmr.msra.gmra.mrb[104].mxu0 %v5378_v50  ;;  %5712 = vmatmul.mubr.bf16.vlgmr.msra.gmra.mrb[104].mxu1 %v5380_v51  ;;  %v7181_v49 = vcombine.high %v5751_v42, %v5753_v45  ;;  %v7180_v50 = vcombine.low %v5751_v42, %v5753_v45  ;;  %v8117_v51 = vld [vmem:[%s9574_s11 + $0x340] sm:$0xff]   ;;  %v8132_v31 = vld [vmem:[%s9574_s11 + $0x398] sm:$0xff]  }
0x2009   : > { %5937 = vmatpush1.bf16.msra.mxu0 %v7150_v29  ;;  %5980 = vmatpush1.bf16.msra.mxu1 %v7152_v32  ;;  %v5738_v29 = vld [vmem:[%s9564_s2 + $0x230] sm:$0xff]  ;;  %v8119_v53 = vld [vmem:[%s9574_s11 + $0x300] sm:$0xff]   ;;  %v8147_v6 = vld [vmem:[%s9574_s11 + $0x338] sm:$0xff]  }
0x200a   : > { %5938 = vmatprep.subr.bf16.mxu0 %v7155_v54  ;;  %5981 = vmatprep.subr.bf16.mxu1 %v7157_v55  ;;  %v5740_v32 = vld [vmem:[%s9564_s2 + $0x270] sm:$0xff]  ;;  %v8120_v54 = vld [vmem:[%s9574_s11 + $0x380] sm:$0xff]   ;;  %v8121_v55 = vld [vmem:[%s9574_s11 + $0x348] sm:$0xff]  }
0x200b   : > { %5968 = vmatprep.mubr.bf16.mxu0 %v8854_v41  ;;  %6011 = vmatprep.mubr.bf16.mxu1 %v8854_v41  ;;  %v7164_v41 = vcombine.low %v5735_v63, %v5737_v3  ;;  %v7167_v9 = vcombine.high %v5738_v29, %v5740_v32  ;;  %v7166_v10 = vcombine.low %v5738_v29, %v5740_v32  ;;  %v8133_v63 = vld [vmem:[%s9574_s11 + $0x360] sm:$0xff]   ;;  %v8139_v29 = vld [vmem:[%s9574_s11 + $0x328] sm:$0xff]   ;;  %v8148_v1 = vld [vmem:[%s9574_s11 + $0x3b8] sm:$0xff]  }
0x200c   : > { %v8134_v3 = vld [vmem:[%s9574_s11 + $0x3e0] sm:$0xff]   ;;  %v8140_v32 = vld [vmem:[%s9574_s11 + $0x3a8] sm:$0xff]  }
0x200d   : > { %5939 = vmatpush1.bf16.msra.mxu0 %v7154_v60  ;;  %5982 = vmatpush1.bf16.msra.mxu1 %v7156_v21  ;;  %v8127_v60 = vld [vmem:[%s9574_s11 + $0x310] sm:$0xff]   ;;  %v5754_v42 = vld [vmem:[%s9571_s18 + $0xc] sm:$0xf] }
0x200e   : > { %5940 = vmatprep.subr.bf16.mxu0 %v7159_v48  ;;  %5983 = vmatprep.subr.bf16.mxu1 %v7161_v23  ;;  %v8128_v21 = vld [vmem:[%s9574_s11 + $0x390] sm:$0xff]   ;;  %v8129_v48 = vld [vmem:[%s9574_s11 + $0x358] sm:$0xff]   ;;  %v5759_v45 = vrot.slane %v5754_v42, %v9641_v2 }
0x200f   : > { %v8130_v23 = vld [vmem:[%s9574_s11 + $0x3d8] sm:$0xff]  }
0x2011   : > { %5941 = vmatpush1.bf16.msra.mxu0 %v7158_v22  ;;  %5984 = vmatpush1.bf16.msra.mxu1 %v7160_v24  ;;  %v8135_v22 = vld [vmem:[%s9574_s11 + $0x320] sm:$0xff]  }
0x2012   : > { %5942 = vmatprep.subr.bf16.mxu0 %v7163_v15  ;;  %5985 = vmatprep.subr.bf16.mxu1 %v7165_v61  ;;  %v8136_v24 = vld [vmem:[%s9574_s11 + $0x3a0] sm:$0xff]   ;;  %v8137_v15 = vld [vmem:[%s9574_s11 + $0x368] sm:$0xff]  }
0x2013   : > { %v8138_v61 = vld [vmem:[%s9574_s11 + $0x3e8] sm:$0xff]  }
0x2015   : > { %5943 = vmatpush1.bf16.msra.mxu0 %v7162_v47  ;;  %5986 = vmatpush1.bf16.msra.mxu1 %v7164_v41  ;;  %v8143_v47 = vld [vmem:[%s9574_s11 + $0x330] sm:$0xff]  }
0x2016   : > { %5944 = vmatprep.subr.bf16.mxu0 %v7167_v9  ;;  %5987 = vmatprep.subr.bf16.mxu1 %v7169_v30  ;;  %v8144_v41 = vld [vmem:[%s9574_s11 + $0x3b0] sm:$0xff]   ;;  %v8145_v9 = vld [vmem:[%s9574_s11 + $0x378] sm:$0xff]  }
0x2017   : > { %v8146_v30 = vld [vmem:[%s9574_s11 + $0x3f8] sm:$0xff]  }
0x2019   : > { %5945 = vmatpush1.bf16.msra.mxu0 %v7166_v10  ;;  %5988 = vmatpush1.bf16.msra.mxu1 %v7168_v14 }
0x201a   : > { %5946 = vmatprep.subr.bf16.mxu0 %v7171_v16  ;;  %5989 = vmatprep.subr.bf16.mxu1 %v7173_v19 }
0x201d   : > { %5947 = vmatpush1.bf16.msra.mxu0 %v7170_v28  ;;  %5990 = vmatpush1.bf16.msra.mxu1 %v7172_v33 }
0x201e   : > { %5948 = vmatprep.subr.bf16.mxu0 %v7175_v34  ;;  %5991 = vmatprep.subr.bf16.mxu1 %v7177_v13 }
0x2021   : > { %5949 = vmatpush1.bf16.msra.mxu0 %v7174_v46  ;;  %5992 = vmatpush1.bf16.msra.mxu1 %v7176_v26  ;;  %v5767_v46 = vrot.slane %v5754_v42, %v9650_v8  ;;  %v5763_v26 = vrot.slane %v5754_v42, %v9645_v4 }
0x2022   : > { %5950 = vmatprep.subr.bf16.mxu0 %v7179_v27  ;;  %5993 = vmatprep.subr.bf16.mxu1 %v7181_v49  ;;  %v5771_v27 = vrot.slane %v5754_v42, %v10187_v58  ;;  %v7216_v42 = vld [vmem:[%s10610_s16] ss:$0 sm:$0xff] (!%p7215_p11) }
0x2025   : > { %5951 = vmatpush1.bf16.msra.mxu0 %v7178_v43  ;;  %5994 = vmatpush1.bf16.msra.mxu1 %v7180_v50 }
0x2026   : > { %7463 = vmatprep.subr.bf16.mxu0 %v8117_v51  ;;  %7485 = vmatprep.subr.bf16.mxu1 %v8118_v52 }
0x2028   : > { %5969 = vmatmul.mubr.bf16.vlgmr.msra.gmra.mrb[108].mxu0 %v10119_v25  ;;  %6012 = vmatmul.mubr.bf16.vlgmr.msra.gmra.mrb[108].mxu1 %v10119_v25  ;;  %v8125_v25 = vld [vmem:[%s9574_s11 + $0x350] sm:$0xff]  }
0x2029   : > { %7464 = vmatpush3.bf16.msra.mxu0 %v8119_v53  ;;  %7486 = vmatpush3.bf16.msra.mxu1 %v8120_v54 }
0x202a   : > { %7465 = vmatprep.subr.bf16.mxu0 %v8121_v55  ;;  %7487 = vmatprep.subr.bf16.mxu1 %v8122_v36 }
0x202d   : > { %7466 = vmatpush3.bf16.msra.mxu0 %v8123_v37  ;;  %7488 = vmatpush3.bf16.msra.mxu1 %v8124_v56 }
0x202e   : > { %7467 = vmatprep.subr.bf16.mxu0 %v8125_v25  ;;  %7489 = vmatprep.subr.bf16.mxu1 %v8126_v57 }
0x2031   : > { %7468 = vmatpush3.bf16.msra.mxu0 %v8127_v60  ;;  %7490 = vmatpush3.bf16.msra.mxu1 %v8128_v21 }
0x2032   : > { %7469 = vmatprep.subr.bf16.mxu0 %v8129_v48  ;;  %7491 = vmatprep.subr.bf16.mxu1 %v8130_v23 }
0x2035   : > { %7470 = vmatpush3.bf16.msra.mxu0 %v8131_v7  ;;  %7492 = vmatpush3.bf16.msra.mxu1 %v8132_v31 }
0x2036   : > { %7471 = vmatprep.subr.bf16.mxu0 %v8133_v63  ;;  %7493 = vmatprep.subr.bf16.mxu1 %v8134_v3 }
0x2039   : > { %7472 = vmatpush3.bf16.msra.mxu0 %v8135_v22  ;;  %7494 = vmatpush3.bf16.msra.mxu1 %v8136_v24 }
0x203a   : > { %7473 = vmatprep.subr.bf16.mxu0 %v8137_v15  ;;  %7495 = vmatprep.subr.bf16.mxu1 %v8138_v61 }
0x203d   : > { %7474 = vmatpush3.bf16.msra.mxu0 %v8139_v29  ;;  %7496 = vmatpush3.bf16.msra.mxu1 %v8140_v32 }
0x203e   : > { %7475 = vmatprep.subr.bf16.mxu0 %v8141_v5  ;;  %7497 = vmatprep.subr.bf16.mxu1 %v8142_v0 }
0x2041   : > { %7476 = vmatpush3.bf16.msra.mxu0 %v8143_v47  ;;  %7498 = vmatpush3.bf16.msra.mxu1 %v8144_v41 }
0x2042   : > { %7477 = vmatprep.subr.bf16.mxu0 %v8145_v9  ;;  %7499 = vmatprep.subr.bf16.mxu1 %v8146_v30 }
0x2045   : > { %7478 = vmatpush3.bf16.msra.mxu0 %v8147_v6  ;;  %7500 = vmatpush3.bf16.msra.mxu1 %v8148_v1 }
0x20db   : > { %v7435_v11 = vpop.f32.mrb[104].mxu0  ;;  %v7457_v12 = vpop.f32.mrb[104].mxu1 }
0x20dc   : > { %v7436_v10 = vpop.f32.mrb[105].mxu0  ;;  %v7458_v14 = vpop.f32.mrb[105].mxu1 }
0x20dd   : > { %v7437_v16 = vadd.f32 %v7436_v10, %v7435_v11  ;;  %v7459_v19 = vadd.f32 %v7458_v14, %v7457_v12  ;;  %v7438_v20 = vpop.f32.mrb[106].mxu0  ;;  %v7460_v17 = vpop.f32.mrb[106].mxu1  ;;  %v7214_v10 = vld [vmem:[%s957_s21] ss:$0 sm:$0xff] }
0x20de   : > { %v7439_v59 = vpop.f32.mrb[107].mxu0  ;;  %v7461_v35 = vpop.f32.mrb[107].mxu1 }
0x20df   : > { %v5714_v28 = vadd.f32 %v7459_v19, %v7437_v16  ;;  %v7440_v33 = vadd.f32 %v7439_v59, %v7438_v20  ;;  %v7462_v34 = vadd.f32 %v7461_v35, %v7460_v17  ;;  %v8223_v59 = vld [vmem:[%s10609_s28] sm:$0xff] (!%p7215_p11)   ;;  %v8864_v35 = vmov (!%p7215_p11), 0.0  }
0x20e0   : > { %7781 = vmatprep.subr.bf16.mxu0 (!%p7215_p11), %v8864_v35 }
0x20e1   : > { %v5720_v13 = vadd.f32 %v5714_v28, %v10322_v44  ;;  %v5717_v18 = vadd.f32 %v7462_v34, %v7440_v33  ;;  %v8226_v28 = vld [vmem:[%s10609_s28 + $0x18] sm:$0xff] (!%p7215_p11)   ;;  %v8227_v33 = vld [vmem:[%s10609_s28 + $0x20] sm:$0xff] (!%p7215_p11)   ;;  %v8228_v34 = vld [vmem:[%s10609_s28 + $0x28] sm:$0xff] (!%p7215_p11)  }
0x20e3   : > { %v5721_v40 = vadd.f32 %v5717_v18, %v10324_v62  ;;  %v8230_v18 = vld [vmem:[%s10609_s28 + $0x38] sm:$0xff] (!%p7215_p11)  }
0x20fb   : > { %v5970_v49 = vpop.f32.mrb[108].mxu0  ;;  %v6013_v43 = vpop.f32.mrb[108].mxu1 }
0x20fc   : > { %v5971_v50 = vadd.f32 %v5970_v49, %v5759_v45  ;;  %v6014_v51 = vadd.f32 %v6013_v43, %v5767_v46  ;;  %v5972_v52 = vpop.f32.mrb[109].mxu0  ;;  %v6015_v53 = vpop.f32.mrb[109].mxu1 }
0x20fd   : > { %v5973_v54 = vadd.f32 %v5972_v52, %v5763_v26  ;;  %v6016_v44 = vadd.f32 %v6015_v53, %v5771_v27  ;;  %v5974_v55 = vpop.f32.mrb[110].mxu0  ;;  %v6017_v36 = vpop.f32.mrb[110].mxu1 }
0x20fe   : > { %v5975_v62 = vadd.f32 %v5974_v55, %v5759_v45  ;;  %v6018_v37 = vadd.f32 %v6017_v36, %v5767_v46  ;;  %v5976_v56 = vpop.f32.mrb[111].mxu0  ;;  %v6019_v2 = vpop.f32.mrb[111].mxu1  ;;  %v6022_v57 = vmax.f32 %v5971_v50, 0.0  ;;  %v6024_v4 = vmax.f32 %v6014_v51, 0.0 }
0x20ff   : > { %v5977_v25 = vadd.f32 %v5976_v56, %v5763_v26  ;;  %v6020_v8 = vadd.f32 %v6019_v2, %v5771_v27  ;;  %v6023_v21 = vmax.f32 %v5973_v54, 0.0  ;;  %v6025_v48 = vmax.f32 %v6016_v44, 0.0 }
0x2100   : > { %v6026_v60 = vmax.f32 %v5975_v62, 0.0  ;;  %v6028_v58 = vmax.f32 %v6018_v37, 0.0 }
0x2101   : > { %v6027_v23 = vmax.f32 %v5977_v25, 0.0  ;;  %v6029_v7 = vmax.f32 %v6020_v8, 0.0 }
0x2102   : > { %v6030_v31 = vpack.c.bf16 %v6026_v60, %v6022_v57  ;;  %v6032_v63 = vpack.c.bf16 %v6028_v58, %v6024_v4 }
0x2103   : > { %v6031_v3 = vpack.c.bf16 %v6027_v23, %v6023_v21  ;;  %v6033_v22 = vpack.c.bf16 %v6029_v7, %v6025_v48 }
0x2105   : > { %6322 = vmatprep.mubr.bf16.mxu0 %v6031_v3  ;;  %6363 = vmatprep.mubr.bf16.mxu1 %v6033_v22 }
0x2106   : > { %6323 = vmatmul.mubr.bf16.vlgmr.msra.gmra.mrb[112].mxu0 %v6030_v31  ;;  %6364 = vmatmul.mubr.bf16.vlgmr.msra.gmra.mrb[112].mxu1 %v6032_v63 }
0x2107   : > { %7782 = vmatpush3.bf16.msra.mxu0 (!%p7215_p11), %v8223_v59  ;;  %7797 = vmatprep.mubr.msk.bf16.mxu0 (!%p7215_p11), %vm8865_vm5, %v8864_v35 }
0x2108   : > { %7783 = vmatprep.subr.bf16.mxu0 (!%p7215_p11), %v8864_v35 }
0x21d9   : > { %v7479_v24 = vpop.f32.mrb[112].mxu0  ;;  %v7501_v15 = vpop.f32.mrb[112].mxu1 }
0x21da   : > { %v7480_v61 = vpop.f32.mrb[113].mxu0  ;;  %v7502_v29 = vpop.f32.mrb[113].mxu1 }
0x21db   : > { %v7481_v32 = vadd.f32 %v7480_v61, %v7479_v24  ;;  %v7503_v5 = vadd.f32 %v7502_v29, %v7501_v15  ;;  %v7482_v0 = vpop.f32.mrb[114].mxu0  ;;  %v7504_v47 = vpop.f32.mrb[114].mxu1 }
0x21dc   : > { %v7483_v41 = vpop.f32.mrb[115].mxu0  ;;  %v7505_v9 = vpop.f32.mrb[115].mxu1 }
0x21dd   : > { %v6366_v30 = vadd.f32 %v7503_v5, %v7481_v32  ;;  %v7484_v6 = vadd.f32 %v7483_v41, %v7482_v0  ;;  %v7506_v1 = vadd.f32 %v7505_v9, %v7504_v47 }
0x21df   : > { %v6372_v11 = vadd.f32 %v6366_v30, %v5720_v13  ;;  %v6369_v12 = vadd.f32 %v7506_v1, %v7484_v6  ;;  %v8229_v13 = vld [vmem:[%s10609_s28 + $0x30] sm:$0xff] (!%p7215_p11)  }
0x21e1   : > { %v6374_v14 = vadd.f32 %v6372_v11, %v10057_v38  ;;  %v6373_v16 = vadd.f32 %v6369_v12, %v5721_v40  ;;  %6390 = sbr.rel (%p7215_p11) target bundleno = 8918 (0x22d6), region = 172  ;;  %v8224_v38 = vld [vmem:[%s10609_s28 + $0x8] sm:$0xff] (!%p7215_p11)  }
0x21e2   : > { %7784 = vmatpush3.bf16.msra.mxu0 (!%p7215_p11), %v8224_v38 }
0x21e3   : > { %v6383_v19 = vadd.f32 %v7214_v10, %v6374_v14  ;;  %v6375_v20 = vadd.f32 %v6373_v16, %v10060_v39  ;;  %v8225_v39 = vld [vmem:[%s10609_s28 + $0x10] sm:$0xff] (!%p7215_p11)   ;;  %7785 = vmatprep.subr.bf16.mxu0 (!%p7215_p11), %v8864_v35 }
0x21e5   : > { %6385 = vst [vmem:[#allocation2] sm:$0xff] %v6383_v19  ;;  %v6384_v17 = vadd.f32 %v7214_v10, %v6375_v20 }
0x21e6   : > { %7786 = vmatpush3.bf16.msra.mxu0 (!%p7215_p11), %v8225_v39 }
0x21e7   : > { %6386 = vst [vmem:[#allocation2 + $0x8] sm:$0xff] %v6384_v17  ;;  %7787 = vmatprep.subr.bf16.mxu0 (!%p7215_p11), %v8864_v35  ;;  %v6391_v40 = vpack.c.bf16 (!%p7215_p11), %v6384_v17, %v6383_v19 }
0x21ea   : > { %7788 = vmatpush3.bf16.msra.mxu0 %v8226_v28 }
0x21eb   : > { %7789 = vmatprep.subr.bf16.mxu0 %v8864_v35 }
0x21ee   : > { %7790 = vmatpush3.bf16.msra.mxu0 %v8227_v33 }
0x21ef   : > { %7791 = vmatprep.subr.bf16.mxu0 %v8864_v35 }
0x21f2   : > { %7792 = vmatpush3.bf16.msra.mxu0 %v8228_v34 }
0x21f3   : > { %7793 = vmatprep.subr.bf16.mxu0 %v8864_v35 }
0x21f6   : > { %7794 = vmatpush3.bf16.msra.mxu0 %v8229_v13 }
0x21f7   : > { %7795 = vmatprep.subr.bf16.mxu0 %v8864_v35 }
0x21fa   : > { %7796 = vmatpush3.bf16.msra.mxu0 %v8230_v18 }
0x21fd   : > { %7798 = vmatmul.mubr.bf16.vlgmr.msra.gmra.mrb[0].mxu0 %v6391_v40 }
0x22d0   : > { %v6497_v45 = vpop.f32.mrb[0].mxu0 }
0x22d1   : > { %v6498_v46 = vadd.f32 %v7216_v42, %v6497_v45  ;;  %v7799_v26 = vpop.f32.mrb[1].mxu0 }
0x22d2   : > { %v6500_v27 = vpop.f32.mrb[2].mxu0 }
0x22d3   : > { %6504 = vst [vmem:[#allocation30] sm:$0xff] %v6498_v46  ;;  %v6501_v49 = vadd.f32 %v7216_v42, %v6500_v27  ;;  %v7800_v43 = vpop.f32.mrb[3].mxu0 }
0x22d5   : > { %6505 = vst [vmem:[#allocation30 + $0x8] sm:$0xff] %v6501_v49 }
0x22d6 PF: > { %s10611_s7 = sld [smem:[#allocation43_spill]]  ;;  %s8866_s30 = smov [#allocation30]  }
0x22d7   : > { %s6512_s0 = sshll.u32 %s8866_s30, 4  ;;  %s6513_s0 = int_to_ptr.vmem [resolvable:$true] %s6512_s0 }
0x22d8   : > { %s8731_s29 = scalar_lea.vmem %s6513_s0, 256  ;;  %p8738_p2 = scmp.lt.s32.totalorder %s6513_s0, %s6513_s0 }
0x22d9   : > { %p8732_p0 = scmp.ne.s32.totalorder %s6513_s0, %s8731_s29  ;;  %p8739_p3 = scmp.lt.s32.totalorder %s8731_s29, %s8731_s29 }
0x22db   : > { %p8740_p6 = por %p8739_p3, %p8738_p2 }
0x22dc   : > { %p7919_p9 = scmp.eq.s32.totalorder %s10611_s7, 1 }
0x22de   : > { %p8733_p1 = pnand %p8732_p0, %p7919_p9 }
0x22e0   : > { %p8734_p10 = pneg %p8733_p1 }
0x22e2   : > { %p8741_p4 = pnand %p8740_p6, %p8734_p10 }
0x22e4   : > { %8744 = shalt.err (!%p8741_p4)
}
0x22e5   : > { %s10612_s14 = sld [smem:[#allocation62_spill]] }
0x22eb   : > { %s8745_s9 = scalar_lea.hbm %s10612_s14, 256 }
0x22ec   : > { %p8746_p12 = scmp.ne.s32.totalorder %s10612_s14, %s8745_s9  ;;  %p8751_p7 = scmp.lt.u32.totalorder %s8745_s9, %s10612_s14 }
0x22ee   : > { %p8747_p13 = pnand %p8746_p12, %p7919_p9 }
0x22f0   : > { %p8748_p8 = pneg %p8747_p13 }
0x22f2   : > { %p8753_p5 = pnand %p8751_p7, %p8748_p8 }
0x22f4   : > { %8756 = shalt.err (!%p8753_p5)
}
0x22f5   : > { %s8867_s23 = smov 128   ;;  %s8868_s11 = smov 8  }
0x22f6   : > { %7852 = dma.vmem_to_hbm [thread:$0]  (%p7919_p9), %s6513_s0, 256, %s10612_s14, [#allocation5], %s8867_s23, %s8867_s23, %s8868_s11  }
0x22f7   : > { %8810 = dma.done.wait (%p7919_p9), [#allocation5], 256  }
0x22f8   : > { %8812 = vsyncadd (%p7919_p9), [#allocation5], 4294967040 }
0x22f9 PF: > { %s10613_s21 = sld [smem:[#allocation44_spill]]  ;;  %s10614_s0 = sld [smem:[#allocation41_spill]] }
0x22fa   : > { %s10615_s30 = sld [smem:[#allocation42_spill]]  ;;  %s10616_s20 = sld [smem:[#allocation45_spill]] }
0x22ff   : > { %p48_p11 = scmp.ge.s32.totalorder %s10613_s21, 4  }
0x2301   :  { %50 = sbr.rel (!%p48_p11) target bundleno = 33 (0x21), region = 293 }
0x2308   :  { %6528 = vsyncpa [#allocation4], 1 }
0x2309   :  { %6530 = vsyncpa [#allocation4 + $0x1], 1 }
0x230a   :  { %6531 = vsyncpa [#allocation7], 1 }
0x230b   :  { %6532 = vsyncpa [#allocation10], 1 }
0x230c   :  { %6533 = vsyncpa [#allocation13], 1 }
0x230d   :  { %6535 = vsyncpa [#allocation13 + $0x1], 1 }
0x230e   :  { %6536 = vsyncpa [#allocation16], 1 }
0x230f   :  { %6538 = vsyncpa [#allocation16 + $0x1], 1 }
0x2310   :  { %6539 = vsyncpa [#allocation19], 1 }
0x2311   :  { %6541 = vsyncpa [#allocation19 + $0x1], 1 }
0x2312   :  { %6542 = vsyncpa [#allocation22], 1 }
0x2313   :  { %6544 = vsyncpa [#allocation22 + $0x1], 1 }
0x2314   :  { %6545 = vsyncpa [#allocation25], 1 }
0x2315   :  { %6547 = vsyncpa [#allocation25 + $0x1], 1 }
0x2316   :  { %6548 = vsyncpa [#allocation28], 1 }
0x2317   :  { %6550 = vsyncpa [#allocation28 + $0x1], 1 }
0x2318   :  { %6551 = vsyncpa [#allocation5], 1 }
0x2319   :  { %6553 = vsyncpa [#allocation5 + $0x1], 1 }

</bundles_post_ra>
